<compile_context>
chip_gen: v7x
topology: tpu7x:2x2x1
jax: 0.10.0
libtpu: 0.0.40
codegen_flags: <defaults>
</compile_context>

<pallas_src>
import functools

import jax
import jax.numpy as jnp
from jax import lax
from jax.experimental import pallas as pl
from jax.experimental.pallas import tpu as pltpu


def _round_up(x, m):
    return ((x + m - 1) // m) * m


def _vmem_capacity_bytes():
    """Physical VMEM per TensorCore (v5e/v6e: 128 MiB, v7x: 64 MiB)."""
    try:
        info = pltpu.get_tpu_info()
        cap = getattr(info, "vmem_capacity_bytes", None)
        if cap:
            return int(cap)
    except Exception:
        pass
    return 64 * 1024 * 1024  # conservative default (v7x per-core VMEM)


def _pick_d_tile(d):
    # 256 fills the 256-wide MXU on v6e/v7x and is layout friendly on v5e's
    # 128-wide MXU.  Never 512: no extra MXU utilization on any generation,
    # just more VMEM and vector-store pressure.
    for cand in (256, 128):
        if d >= cand and d % cand == 0:
            return cand
    return d


def _lightgcn_kernel(adj_ref, emb_ref, out_ref, *, num_layers, out_scale):
    """Fused LightGCN propagation + layer-mean for one D column slab.

    adj_ref : (Np, Np) bf16  normalized adjacency, resident in VMEM
    emb_ref : (Np, TD) f32   layer-0 embeddings, column slab
    out_ref : (Np, TD) f32   mean over the (num_layers + 1) layer embeddings
    """
    e0 = emb_ref[...]
    # The output block doubles as the f32 running layer-sum accumulator.
    out_ref[...] = e0

    if num_layers > 0:
        def body(_, cur_bf16):
            # ego_{l+1} = norm_adj @ ego_l  (bf16 MXU inputs, f32 accumulation)
            y = jnp.dot(adj_ref[...], cur_bf16,
                        preferred_element_type=jnp.float32)
            out_ref[...] = out_ref[...] + y
            return y.astype(jnp.bfloat16)

        carry = e0.astype(jnp.bfloat16)
        if num_layers > 1:
            carry = lax.fori_loop(0, num_layers - 1, body, carry,
                                  unroll=(num_layers <= 8))
        # Peeled final layer: its result is only accumulated, so the dead bf16
        # re-cast/store of the last carry is never emitted.
        out_ref[...] = out_ref[...] + jnp.dot(adj_ref[...], carry,
                                              preferred_element_type=jnp.float32)

    out_ref[...] = out_ref[...] * out_scale


def _run_lightgcn_pallas(adj, ego, *, num_layers, d_tile, use_pipeline_mode):
    n_pad, d = ego.shape
    num_tiles = d // d_tile

    vmem_cap = _vmem_capacity_bytes()
    vmem_target = int(vmem_cap * 0.85)  # headroom for compiler temps / spills

    if use_pipeline_mode:
        adj_bufs = 1  # constant block index -> exactly one resident copy
        # Double-buffer the emb/out slabs only when there is something to
        # pipeline across grid steps and VMEM allows it.
        io_bufs = 2 if num_tiles > 2 else 1
        if io_bufs == 2 and (n_pad * n_pad * 2
                             + 2 * 2 * n_pad * d_tile * 4) > vmem_target:
            io_bufs = 1
    else:
        adj_bufs = 2
        io_bufs = 2

    footprint = (adj_bufs * n_pad * n_pad * 2      # adjacency (bf16)
                 + io_bufs * n_pad * d_tile * 4    # emb slab(s) (f32)
                 + io_bufs * n_pad * d_tile * 4)   # out slab(s) (f32)
    vmem_limit = int(min(max(footprint + (4 << 20), 16 << 20), vmem_cap))
    # TODO(synk): if the adjacency alone exceeds VMEM, fall back to a
    #             row-panel streamed grid instead of this resident design.

    def spec(shape, index_map, bufs):
        if use_pipeline_mode:
            return pl.BlockSpec(shape, index_map, pipeline_mode=pl.Buffered(bufs))
        return pl.BlockSpec(shape, index_map)

    kernel = functools.partial(_lightgcn_kernel,
                               num_layers=int(num_layers),
                               out_scale=1.0 / float(num_layers + 1))

    return pl.pallas_call(
        kernel,
        out_shape=jax.ShapeDtypeStruct((n_pad, d), jnp.float32),
        grid_spec=pltpu.PrefetchScalarGridSpec(
            num_scalar_prefetch=0,
            grid=(num_tiles,),
            in_specs=[
                # Constant block index: fetched once, stays resident across all
                # D tiles; Buffered(1) avoids a dead second N^2 VMEM copy.
                spec((n_pad, n_pad), lambda j: (0, 0), adj_bufs),
                spec((n_pad, d_tile), lambda j: (0, j), io_bufs),
            ],
            out_specs=spec((n_pad, d_tile), lambda j: (0, j), io_bufs),
        ),
        compiler_params=pltpu.CompilerParams(
            # D column slabs are fully independent (no program_id-gated init),
            # so this axis can be sharded across TensorCores (v7x megacore).
            dimension_semantics=("parallel",),
            vmem_limit_bytes=vmem_limit,
        ),
    )(adj, ego)


def lightgcn_forward(norm_adj, user_emb, item_emb, num_layers, *, d_tile=None):
    """Matches LightGCN.forward() (eval mode): returns (user_final, item_final)."""
    num_users = int(user_emb.shape[0])
    num_items = int(item_emb.shape[0])
    ego = jnp.concatenate([user_emb, item_emb], axis=0).astype(jnp.float32)
    n, d = ego.shape
    assert norm_adj.shape == (n, n)

    # bf16 adjacency for the MXU (in-kernel accumulation stays f32).  Callers
    # should pass a pre-cast, persistent bf16 adjacency so the 4*N^2-byte cast
    # is not re-read from HBM on every forward (the demo below does).
    adj = norm_adj if norm_adj.dtype == jnp.bfloat16 else norm_adj.astype(jnp.bfloat16)

    # Pad N to a multiple of 256 (full-width MXU tiles on v6e/v7x, clean
    # (8,128) layout).  Zero rows/cols are inert for propagation & layer-mean.
    n_pad = _round_up(n, 256)
    if n_pad != n:
        adj = jnp.pad(adj, ((0, n_pad - n), (0, n_pad - n)))
        ego = jnp.pad(ego, ((0, n_pad - n), (0, 0)))

    if d_tile is None:
        d_tile = _pick_d_tile(d)
    d_tile = min(d_tile, d)
    assert d % d_tile == 0, "embed_dim must be divisible by the D tile"

    try:
        out = _run_lightgcn_pallas(adj, ego, num_layers=num_layers,
                                   d_tile=d_tile, use_pipeline_mode=True)
    except Exception:
        # JAX build without BlockSpec(pipeline_mode=...): fall back to default
        # double-buffering (one extra N^2 bf16 VMEM copy, otherwise identical).
        out = _run_lightgcn_pallas(adj, ego, num_layers=num_layers,
                                   d_tile=d_tile, use_pipeline_mode=False)

    user_final = out[:num_users]
    item_final = out[num_users:num_users + num_items]
    return user_final, item_final


def _xavier_uniform(key, shape):
    fan_in, fan_out = shape
    bound = (6.0 / (fan_in + fan_out)) ** 0.5
    return jax.random.uniform(key, shape, jnp.float32, -bound, bound)


def _build_norm_adj(key, num_users, num_items):
    """Dense symmetric-normalized bipartite adjacency D^-1/2 A D^-1/2."""
    n = num_users + num_items
    r = (jax.random.uniform(key, (num_users, num_items)) < 0.1).astype(jnp.float32)
    a = jnp.zeros((n, n), jnp.float32)
    a = a.at[:num_users, num_users:].set(r)
    a = a.at[num_users:, :num_users].set(r.T)
    deg = a.sum(axis=1)
    d_inv_sqrt = jnp.where(deg > 0, 1.0 / jnp.sqrt(jnp.maximum(deg, 1e-12)), 0.0)
    return a * d_inv_sqrt[:, None] * d_inv_sqrt[None, :]


if __name__ == "__main__":
    num_users, num_items = 48, 80          # N = 128 (padded to 256 inside)
    embed_dim = 256                        # one 256-wide D tile
    num_layers = 3

    key = jax.random.PRNGKey(0)
    k_adj, k_user, k_item = jax.random.split(key, 3)

    norm_adj_f32 = _build_norm_adj(k_adj, num_users, num_items)
    # Persist the bf16 adjacency once (don't re-cast 4*N^2 bytes per forward).
    norm_adj_bf16 = norm_adj_f32.astype(jnp.bfloat16)

    user_emb = _xavier_uniform(k_user, (num_users, embed_dim))
    item_emb = _xavier_uniform(k_item, (num_items, embed_dim))

    user_final, item_final = jax.block_until_ready(
        lightgcn_forward(norm_adj_bf16, user_emb, item_emb, num_layers)
    )

    # Plain-JAX f32 reference.  Tolerance accommodates the bf16 MXU inputs
    # (accumulation in the kernel stays f32).
    ego = jnp.concatenate([user_emb, item_emb], axis=0)
    layers = [ego]
    cur = ego
    for _ in range(num_layers):
        cur = norm_adj_f32 @ cur
        layers.append(cur)
    ref = jnp.mean(jnp.stack(layers, axis=1), axis=1)
    ref_user, ref_item = ref[:num_users], ref[num_users:]

    assert user_final.shape == (num_users, embed_dim)
    assert item_final.shape == (num_items, embed_dim)
    assert jnp.allclose(user_final, ref_user, atol=2e-2, rtol=2e-2), \
        float(jnp.max(jnp.abs(user_final - ref_user)))
    assert jnp.allclose(item_final, ref_item, atol=2e-2, rtol=2e-2), \
        float(jnp.max(jnp.abs(item_final - ref_item)))

    print("KERNEL_OK")
</pallas_src>

<mosaic_0001>
module attributes {stable_mosaic.version = 11 : i64} {
  func.func @_lightgcn_kernel(%arg0: i32, %arg1: memref<256x256xbf16, #tpu.memory_space<vmem>>, %arg2: memref<256x256xf32, #tpu.memory_space<vmem>>, %arg3: memref<256x256xf32, #tpu.memory_space<vmem>>) attributes {dimension_semantics = [#tpu.dimension_semantics<parallel>], iteration_bounds = array<i64: 1>, scalar_prefetch = 0 : i64, scratch_operands = 0 : i64, tpu.core_type = #tpu.core_type<tc>, window_params = [{pipeline_mode = #tpu.pipeline_mode<synchronous>, transform_indices = @transform_0, window_bounds = array<i64: 256, 256>}, {pipeline_mode = #tpu.pipeline_mode<synchronous>, transform_indices = @transform_1, window_bounds = array<i64: 256, 256>}, {pipeline_mode = #tpu.pipeline_mode<synchronous>, transform_indices = @transform_2, window_bounds = array<i64: 256, 256>}]} {
    %c0 = arith.constant 0 : index
    %c0_0 = arith.constant 0 : index
    %0 = vector.load %arg2[%c0, %c0_0] : memref<256x256xf32, #tpu.memory_space<vmem>>, vector<256x256xf32>
    %c0_1 = arith.constant 0 : index
    %c0_2 = arith.constant 0 : index
    %1 = vector.load %arg3[%c0_1, %c0_2] : memref<256x256xf32, #tpu.memory_space<vmem>>, vector<256x256xf32>
    tpu.vector_store %arg3[%c0_1, %c0_2], %0 {strides = array<i32>} : memref<256x256xf32, #tpu.memory_space<vmem>>, vector<256x256xf32>,
    %2 = arith.truncf %0 : vector<256x256xf32> to vector<256x256xbf16>
    %c0_i32 = arith.constant 0 : i32
    %c0_3 = arith.constant 0 : index
    %c0_4 = arith.constant 0 : index
    %3 = vector.load %arg1[%c0_3, %c0_4] : memref<256x256xbf16, #tpu.memory_space<vmem>>, vector<256x256xbf16>
    %cst = arith.constant dense<0.000000e+00> : vector<256x256xf32>
    %4 = tpu.matmul %3, %2, %cst {dimension_numbers = #tpu.dot_dimension_numbers<[1], [0], [0], [1], [0, 0, 1, 1], [], []>} : vector<256x256xbf16>, vector<256x256xbf16>, vector<256x256xf32> -> vector<256x256xf32>
    %c0_5 = arith.constant 0 : index
    %c0_6 = arith.constant 0 : index
    %5 = vector.load %arg3[%c0_5, %c0_6] : memref<256x256xf32, #tpu.memory_space<vmem>>, vector<256x256xf32>
    %6 = arith.addf %5, %4 : vector<256x256xf32>
    %c0_7 = arith.constant 0 : index
    %c0_8 = arith.constant 0 : index
    %7 = vector.load %arg3[%c0_7, %c0_8] : memref<256x256xf32, #tpu.memory_space<vmem>>, vector<256x256xf32>
    tpu.vector_store %arg3[%c0_7, %c0_8], %6 {strides = array<i32>} : memref<256x256xf32, #tpu.memory_space<vmem>>, vector<256x256xf32>,
    %8 = arith.truncf %4 : vector<256x256xf32> to vector<256x256xbf16>
    %c1_i32 = arith.constant 1 : i32
    %c0_9 = arith.constant 0 : index
    %c0_10 = arith.constant 0 : index
    %9 = vector.load %arg1[%c0_9, %c0_10] : memref<256x256xbf16, #tpu.memory_space<vmem>>, vector<256x256xbf16>
    %cst_11 = arith.constant dense<0.000000e+00> : vector<256x256xf32>
    %10 = tpu.matmul %9, %8, %cst_11 {dimension_numbers = #tpu.dot_dimension_numbers<[1], [0], [0], [1], [0, 0, 1, 1], [], []>} : vector<256x256xbf16>, vector<256x256xbf16>, vector<256x256xf32> -> vector<256x256xf32>
    %c0_12 = arith.constant 0 : index
    %c0_13 = arith.constant 0 : index
    %11 = vector.load %arg3[%c0_12, %c0_13] : memref<256x256xf32, #tpu.memory_space<vmem>>, vector<256x256xf32>
    %12 = arith.addf %11, %10 : vector<256x256xf32>
    %c0_14 = arith.constant 0 : index
    %c0_15 = arith.constant 0 : index
    %13 = vector.load %arg3[%c0_14, %c0_15] : memref<256x256xf32, #tpu.memory_space<vmem>>, vector<256x256xf32>
    tpu.vector_store %arg3[%c0_14, %c0_15], %12 {strides = array<i32>} : memref<256x256xf32, #tpu.memory_space<vmem>>, vector<256x256xf32>,
    %14 = arith.truncf %10 : vector<256x256xf32> to vector<256x256xbf16>
    %c0_16 = arith.constant 0 : index
    %c0_17 = arith.constant 0 : index
    %15 = vector.load %arg3[%c0_16, %c0_17] : memref<256x256xf32, #tpu.memory_space<vmem>>, vector<256x256xf32>
    %c0_18 = arith.constant 0 : index
    %c0_19 = arith.constant 0 : index
    %16 = vector.load %arg1[%c0_18, %c0_19] : memref<256x256xbf16, #tpu.memory_space<vmem>>, vector<256x256xbf16>
    %cst_20 = arith.constant dense<0.000000e+00> : vector<256x256xf32>
    %17 = tpu.matmul %16, %14, %cst_20 {dimension_numbers = #tpu.dot_dimension_numbers<[1], [0], [0], [1], [0, 0, 1, 1], [], []>} : vector<256x256xbf16>, vector<256x256xbf16>, vector<256x256xf32> -> vector<256x256xf32>
    %18 = arith.addf %15, %17 : vector<256x256xf32>
    %c0_21 = arith.constant 0 : index
    %c0_22 = arith.constant 0 : index
    %19 = vector.load %arg3[%c0_21, %c0_22] : memref<256x256xf32, #tpu.memory_space<vmem>>, vector<256x256xf32>
    tpu.vector_store %arg3[%c0_21, %c0_22], %18 {strides = array<i32>} : memref<256x256xf32, #tpu.memory_space<vmem>>, vector<256x256xf32>,
    %c0_23 = arith.constant 0 : index
    %c0_24 = arith.constant 0 : index
    %20 = vector.load %arg3[%c0_23, %c0_24] : memref<256x256xf32, #tpu.memory_space<vmem>>, vector<256x256xf32>
    %cst_25 = arith.constant 2.500000e-01 : f32
    %21 = vector.broadcast %cst_25 : f32 to vector<256x256xf32>
    %22 = arith.mulf %20, %21 : vector<256x256xf32>
    %c0_26 = arith.constant 0 : index
    %c0_27 = arith.constant 0 : index
    %23 = vector.load %arg3[%c0_26, %c0_27] : memref<256x256xf32, #tpu.memory_space<vmem>>, vector<256x256xf32>
    tpu.vector_store %arg3[%c0_26, %c0_27], %22 {strides = array<i32>} : memref<256x256xf32, #tpu.memory_space<vmem>>, vector<256x256xf32>,
    return
  }
  func.func @transform_0(%arg0: i32) -> (i32, i32) {
    %c0_i32 = arith.constant 0 : i32
    %c0_i32_0 = arith.constant 0 : i32
    %c0_i32_1 = arith.constant 0 : i32
    return %c0_i32, %c0_i32_0 : i32, i32
  }
  func.func @transform_1(%arg0: i32) -> (i32, i32) {
    %c0_i32 = arith.constant 0 : i32
    %c0_i32_0 = arith.constant 0 : i32
    return %c0_i32, %arg0 : i32, i32
  }
  func.func @transform_2(%arg0: i32) -> (i32, i32) {
    %c0_i32 = arith.constant 0 : i32
    %c0_i32_0 = arith.constant 0 : i32
    return %c0_i32, %arg0 : i32, i32
  }
}

module attributes {stable_mosaic.version = 11 : i64} {
  func.func @_lightgcn_kernel(%arg0: i32, %arg1: memref<256x256xbf16, #tpu.memory_space<vmem>>, %arg2: memref<256x256xf32, #tpu.memory_space<vmem>>, %arg3: memref<256x256xf32, #tpu.memory_space<vmem>>) attributes {dimension_semantics = [#tpu.dimension_semantics<parallel>], iteration_bounds = array<i64: 1>, scalar_prefetch = 0 : i64, scratch_operands = 0 : i64, tpu.core_type = #tpu.core_type<tc>, window_params = [{pipeline_mode = #tpu.pipeline_mode<synchronous>, transform_indices = @transform_0, window_bounds = array<i64: 256, 256>}, {transform_indices = @transform_1, window_bounds = array<i64: 256, 256>}, {transform_indices = @transform_2, window_bounds = array<i64: 256, 256>}]} {
    %c0 = arith.constant 0 : index
    %c0_0 = arith.constant 0 : index
    %0 = vector.load %arg2[%c0, %c0_0] : memref<256x256xf32, #tpu.memory_space<vmem>>, vector<256x256xf32>
    %c0_1 = arith.constant 0 : index
    %c0_2 = arith.constant 0 : index
    %1 = vector.load %arg3[%c0_1, %c0_2] : memref<256x256xf32, #tpu.memory_space<vmem>>, vector<256x256xf32>
    tpu.vector_store %arg3[%c0_1, %c0_2], %0 {strides = array<i32>} : memref<256x256xf32, #tpu.memory_space<vmem>>, vector<256x256xf32>,
    %2 = arith.truncf %0 : vector<256x256xf32> to vector<256x256xbf16>
    %c0_i32 = arith.constant 0 : i32
    %c0_3 = arith.constant 0 : index
    %c0_4 = arith.constant 0 : index
    %3 = vector.load %arg1[%c0_3, %c0_4] : memref<256x256xbf16, #tpu.memory_space<vmem>>, vector<256x256xbf16>
    %cst = arith.constant dense<0.000000e+00> : vector<256x256xf32>
    %4 = tpu.matmul %3, %2, %cst {dimension_numbers = #tpu.dot_dimension_numbers<[1], [0], [0], [1], [0, 0, 1, 1], [], []>} : vector<256x256xbf16>, vector<256x256xbf16>, vector<256x256xf32> -> vector<256x256xf32>
    %c0_5 = arith.constant 0 : index
    %c0_6 = arith.constant 0 : index
    %5 = vector.load %arg3[%c0_5, %c0_6] : memref<256x256xf32, #tpu.memory_space<vmem>>, vector<256x256xf32>
    %6 = arith.addf %5, %4 : vector<256x256xf32>
    %c0_7 = arith.constant 0 : index
    %c0_8 = arith.constant 0 : index
    %7 = vector.load %arg3[%c0_7, %c0_8] : memref<256x256xf32, #tpu.memory_space<vmem>>, vector<256x256xf32>
    tpu.vector_store %arg3[%c0_7, %c0_8], %6 {strides = array<i32>} : memref<256x256xf32, #tpu.memory_space<vmem>>, vector<256x256xf32>,
    %8 = arith.truncf %4 : vector<256x256xf32> to vector<256x256xbf16>
    %c1_i32 = arith.constant 1 : i32
    %c0_9 = arith.constant 0 : index
    %c0_10 = arith.constant 0 : index
    %9 = vector.load %arg1[%c0_9, %c0_10] : memref<256x256xbf16, #tpu.memory_space<vmem>>, vector<256x256xbf16>
    %cst_11 = arith.constant dense<0.000000e+00> : vector<256x256xf32>
    %10 = tpu.matmul %9, %8, %cst_11 {dimension_numbers = #tpu.dot_dimension_numbers<[1], [0], [0], [1], [0, 0, 1, 1], [], []>} : vector<256x256xbf16>, vector<256x256xbf16>, vector<256x256xf32> -> vector<256x256xf32>
    %c0_12 = arith.constant 0 : index
    %c0_13 = arith.constant 0 : index
    %11 = vector.load %arg3[%c0_12, %c0_13] : memref<256x256xf32, #tpu.memory_space<vmem>>, vector<256x256xf32>
    %12 = arith.addf %11, %10 : vector<256x256xf32>
    %c0_14 = arith.constant 0 : index
    %c0_15 = arith.constant 0 : index
    %13 = vector.load %arg3[%c0_14, %c0_15] : memref<256x256xf32, #tpu.memory_space<vmem>>, vector<256x256xf32>
    tpu.vector_store %arg3[%c0_14, %c0_15], %12 {strides = array<i32>} : memref<256x256xf32, #tpu.memory_space<vmem>>, vector<256x256xf32>,
    %14 = arith.truncf %10 : vector<256x256xf32> to vector<256x256xbf16>
    %c0_16 = arith.constant 0 : index
    %c0_17 = arith.constant 0 : index
    %15 = vector.load %arg3[%c0_16, %c0_17] : memref<256x256xf32, #tpu.memory_space<vmem>>, vector<256x256xf32>
    %c0_18 = arith.constant 0 : index
    %c0_19 = arith.constant 0 : index
    %16 = vector.load %arg1[%c0_18, %c0_19] : memref<256x256xbf16, #tpu.memory_space<vmem>>, vector<256x256xbf16>
    %cst_20 = arith.constant dense<0.000000e+00> : vector<256x256xf32>
    %17 = tpu.matmul %16, %14, %cst_20 {dimension_numbers = #tpu.dot_dimension_numbers<[1], [0], [0], [1], [0, 0, 1, 1], [], []>} : vector<256x256xbf16>, vector<256x256xbf16>, vector<256x256xf32> -> vector<256x256xf32>
    %18 = arith.addf %15, %17 : vector<256x256xf32>
    %c0_21 = arith.constant 0 : index
    %c0_22 = arith.constant 0 : index
    %19 = vector.load %arg3[%c0_21, %c0_22] : memref<256x256xf32, #tpu.memory_space<vmem>>, vector<256x256xf32>
    tpu.vector_store %arg3[%c0_21, %c0_22], %18 {strides = array<i32>} : memref<256x256xf32, #tpu.memory_space<vmem>>, vector<256x256xf32>,
    %c0_23 = arith.constant 0 : index
    %c0_24 = arith.constant 0 : index
    %20 = vector.load %arg3[%c0_23, %c0_24] : memref<256x256xf32, #tpu.memory_space<vmem>>, vector<256x256xf32>
    %cst_25 = arith.constant 2.500000e-01 : f32
    %21 = vector.broadcast %cst_25 : f32 to vector<256x256xf32>
    %22 = arith.mulf %20, %21 : vector<256x256xf32>
    %c0_26 = arith.constant 0 : index
    %c0_27 = arith.constant 0 : index
    %23 = vector.load %arg3[%c0_26, %c0_27] : memref<256x256xf32, #tpu.memory_space<vmem>>, vector<256x256xf32>
    tpu.vector_store %arg3[%c0_26, %c0_27], %22 {strides = array<i32>} : memref<256x256xf32, #tpu.memory_space<vmem>>, vector<256x256xf32>,
    return
  }
  func.func @transform_0(%arg0: i32) -> (i32, i32) {
    %c0_i32 = arith.constant 0 : i32
    %c0_i32_0 = arith.constant 0 : i32
    %c0_i32_1 = arith.constant 0 : i32
    return %c0_i32, %c0_i32_0 : i32, i32
  }
  func.func @transform_1(%arg0: i32) -> (i32, i32) {
    %c0_i32 = arith.constant 0 : i32
    %c0_i32_0 = arith.constant 0 : i32
    return %c0_i32, %arg0 : i32, i32
  }
  func.func @transform_2(%arg0: i32) -> (i32, i32) {
    %c0_i32 = arith.constant 0 : i32
    %c0_i32_0 = arith.constant 0 : i32
    return %c0_i32, %arg0 : i32, i32
  }
}

</mosaic_0001>

<bundles_post_ra>
// kernel: tpu_custom_call.1
= control target key start
LH: loop header
LB: loop body
LE: loop exit
PB: predicated region body
PF: predicated region fallthrough
CT: control target
= control target key end

     0   :  { %7 = vsyncpa [#allocation3], 0  ;;  %s3386_s0 = inlined_call_operand.hbm [shape: bf16[256,256], index: 0, kind: input, shape index: {}]   ;;  %s3387_s1 = inlined_call_operand.hbm [shape: f32[256,256], index: 1, kind: input, shape index: {}]   ;;  %s3388_s2 = inlined_call_operand.hbm [shape: f32[256,256], index: 2, kind: output, shape index: {}]  }
   0x1   :  { %8 = vsyncpa [#allocation6], 0 }
   0x2   :  { %9 = vsyncpa [#allocation4], 0  ;;  %s2508_s9 = smov [#allocation2]   ;;  %s2436_s13 = scalar_lea.hbm %s3386_s0, 4096 }
   0x3   :  { %s15_s10 = sshll.u32 %s2508_s9, 4  ;;  %p2437_p0 = scmp.ne.s32.totalorder %s3386_s0, %s2436_s13  ;;  %s16_s10 = int_to_ptr.vmem [resolvable:$true] %s15_s10 }
   0x4   :  { %p2440_p1 = scmp.lt.u32.totalorder %s2436_s13, %s3386_s0 }
   0x6   :  { %p2442_p2 = pnand %p2440_p1, %p2437_p0 }
   0x8   :  { %2445 = shalt.err (!%p2442_p2)
}
   0x9   :  { %s2446_s18 = scalar_lea.vmem %s16_s10, 4096  ;;  %p2451_p4 = scmp.lt.s32.totalorder %s16_s10, %s16_s10 }
   0xa   :  { %p2447_p3 = scmp.ne.s32.totalorder %s16_s10, %s2446_s18  ;;  %p2452_p5 = scmp.lt.s32.totalorder %s2446_s18, %s2446_s18 }
   0xc   :  { %p2453_p6 = por %p2452_p5, %p2451_p4 }
   0xe   :  { %p2454_p7 = pnand %p2453_p6, %p2447_p3 }
  0x10   :  { %2457 = shalt.err (!%p2454_p7)
}
  0x11   :  { %s2509_s19 = smov 128   ;;  %s2510_s20 = smov 8  }
  0x12   :  { %21 = dma.hbm_to_vmem [thread:$0]  %s3386_s0, 4096, %s16_s10, [#allocation3], %s2509_s19, %s2509_s19, %s2510_s20  }
  0x13   :  { %s2511_s23 = smov [#allocation5]   ;;  %s2458_s27 = scalar_lea.hbm %s3387_s1, 8192 }
  0x14   :  { %s27_s24 = sshll.u32 %s2511_s23, 4  ;;  %p2459_p8 = scmp.ne.s32.totalorder %s3387_s1, %s2458_s27  ;;  %s28_s24 = int_to_ptr.vmem [resolvable:$true] %s27_s24 }
  0x15   :  { %p2462_p9 = scmp.lt.u32.totalorder %s2458_s27, %s3387_s1 }
  0x17   :  { %p2464_p10 = pnand %p2462_p9, %p2459_p8 }
  0x19   :  { %2467 = shalt.err (!%p2464_p10)
}
  0x1a   :  { %s2468_s4 = scalar_lea.vmem %s28_s24, 8192  ;;  %p2473_p12 = scmp.lt.s32.totalorder %s28_s24, %s28_s24 }
  0x1b   :  { %p2469_p11 = scmp.ne.s32.totalorder %s28_s24, %s2468_s4  ;;  %p2474_p13 = scmp.lt.s32.totalorder %s2468_s4, %s2468_s4 }
  0x1d   :  { %p2475_p0 = por %p2474_p13, %p2473_p12 }
  0x1f   :  { %p2476_p1 = pnand %p2475_p0, %p2469_p11 }
  0x21   :  { %2479 = shalt.err (!%p2476_p1)
}
  0x22   :  { %s2512_s0 = smov 256   ;;  %s2513_s5 = smov 16  }
  0x23   :  { %33 = dma.hbm_to_vmem [thread:$0]  %s3387_s1, 8192, %s28_s24, [#allocation6], %s2512_s0, %s2512_s0, %s2513_s5  }
  0x24   :  { %2502 = dma.done.wait [#allocation3], 4096  }
  0x25   :  { %2503 = vsyncadd [#allocation3], 4294963200 }
  0x26   :  { %2504 = dma.done.wait [#allocation6], 8192  }
  0x27   :  { %2505 = vsyncadd [#allocation6], 4294959104  ;;  %v2557_v0 = vld [vmem:[#allocation5 + $0x8] sm:$0xff]  ;;  %v2559_v1 = vld [vmem:[#allocation5 + $0x18] sm:$0xff]  ;;  %s2514_s1 = smov [#allocation7]  }
  0x28   :  { %3498 = vst [vmem:[#allocation11_spill] sm:$0xff] %v2557_v0  ;;  %3499 = vst [vmem:[#allocation12_spill] sm:$0xff] %v2559_v1  ;;  %v2561_v2 = vld [vmem:[#allocation5] sm:$0xff]  ;;  %v169_v3 = vpack.c.bf16 %v2559_v1, %v2557_v0  ;;  %v2565_v4 = vld [vmem:[#allocation5 + $0x10] sm:$0xff]  ;;  %s2192_s8 = sshll.u32 %s2514_s1, 4  ;;  %s2193_s8 = int_to_ptr.vmem [resolvable:$true] %s2192_s8 }
  0x29   :  { %3500 = vst [vmem:[#allocation13_spill] sm:$0xff] %v2561_v2  ;;  %3501 = vst [vmem:[#allocation14_spill] sm:$0xff] %v2565_v4  ;;  %v2567_v5 = vld [vmem:[#allocation5 + $0x28] sm:$0xff]  ;;  %v2569_v6 = vld [vmem:[#allocation5 + $0x38] sm:$0xff]  ;;  %v168_v7 = vpack.c.bf16 %v2565_v4, %v2561_v2  ;;  %s2480_s9 = scalar_lea.vmem %s2193_s8, 8192  ;;  %p2485_p3 = scmp.lt.s32.totalorder %s2193_s8, %s2193_s8 }
  0x2a   :  { %3502 = vst [vmem:[#allocation15_spill] sm:$0xff] %v2567_v5  ;;  %3503 = vst [vmem:[#allocation16_spill] sm:$0xff] %v2569_v6  ;;  %v171_v8 = vpack.c.bf16 %v2569_v6, %v2567_v5  ;;  %v2575_v9 = vld [vmem:[#allocation5 + $0x20] sm:$0xff]  ;;  %v2577_v10 = vld [vmem:[#allocation5 + $0x30] sm:$0xff]  ;;  %392 = vmatprep.subr.bf16.mxu0 %v169_v3  ;;  %2301 = vmatprep.subr.bf16.mxu1 %v169_v3  ;;  %p2481_p2 = scmp.ne.s32.totalorder %s2193_s8, %s2480_s9  ;;  %p2486_p4 = scmp.lt.s32.totalorder %s2480_s9, %s2480_s9 }
  0x2b   :  { %3504 = vst [vmem:[#allocation17_spill] sm:$0xff] %v2575_v9  ;;  %3505 = vst [vmem:[#allocation18_spill] sm:$0xff] %v2577_v10  ;;  %v2579_v11 = vld [vmem:[#allocation5 + $0x48] sm:$0xff]  ;;  %v2581_v12 = vld [vmem:[#allocation5 + $0x58] sm:$0xff]  ;;  %393 = vmatpush1.bf16.msra.mxu0 %v168_v7  ;;  %v170_v13 = vpack.c.bf16 %v2577_v10, %v2575_v9  ;;  %2317 = vmatpush1.bf16.msra.mxu1 %v168_v7 }
  0x2c   :  { %3506 = vst [vmem:[#allocation19_spill] sm:$0xff] %v2579_v11  ;;  %3507 = vst [vmem:[#allocation20_spill] sm:$0xff] %v2581_v12  ;;  %394 = vmatprep.subr.bf16.mxu0 %v171_v8  ;;  %v173_v14 = vpack.c.bf16 %v2581_v12, %v2579_v11  ;;  %v2587_v15 = vld [vmem:[#allocation5 + $0x40] sm:$0xff]  ;;  %v2589_v16 = vld [vmem:[#allocation5 + $0x50] sm:$0xff]  ;;  %2302 = vmatprep.subr.bf16.mxu1 %v171_v8  ;;  %p2487_p5 = por %p2486_p4, %p2485_p3 }
  0x2d   :  { %3508 = vst [vmem:[#allocation21_spill] sm:$0xff] %v2587_v15  ;;  %3509 = vst [vmem:[#allocation22_spill] sm:$0xff] %v2589_v16  ;;  %v2591_v17 = vld [vmem:[#allocation5 + $0x68] sm:$0xff]  ;;  %v2593_v18 = vld [vmem:[#allocation5 + $0x78] sm:$0xff]  ;;  %v172_v19 = vpack.c.bf16 %v2589_v16, %v2587_v15 }
  0x2e   :  { %3510 = vst [vmem:[#allocation23_spill] sm:$0xff] %v2591_v17  ;;  %3511 = vst [vmem:[#allocation24_spill] sm:$0xff] %v2593_v18  ;;  %v175_v20 = vpack.c.bf16 %v2593_v18, %v2591_v17  ;;  %v2599_v21 = vld [vmem:[#allocation5 + $0x60] sm:$0xff]  ;;  %v2601_v22 = vld [vmem:[#allocation5 + $0x70] sm:$0xff]  ;;  %p2488_p6 = pnand %p2487_p5, %p2481_p2 }
  0x2f   :  { %395 = vmatpush1.bf16.msra.mxu0 %v170_v13  ;;  %2318 = vmatpush1.bf16.msra.mxu1 %v170_v13  ;;  %3512 = vst [vmem:[#allocation25_spill] sm:$0xff] %v2599_v21  ;;  %3513 = vst [vmem:[#allocation26_spill] sm:$0xff] %v2601_v22  ;;  %v2603_v23 = vld [vmem:[#allocation5 + $0x88] sm:$0xff]  ;;  %v2605_v24 = vld [vmem:[#allocation5 + $0x98] sm:$0xff]  ;;  %v174_v25 = vpack.c.bf16 %v2601_v22, %v2599_v21 }
  0x30   :  { %396 = vmatprep.subr.bf16.mxu0 %v173_v14  ;;  %2303 = vmatprep.subr.bf16.mxu1 %v173_v14  ;;  %3514 = vst [vmem:[#allocation27_spill] sm:$0xff] %v2603_v23  ;;  %3515 = vst [vmem:[#allocation28_spill] sm:$0xff] %v2605_v24  ;;  %v177_v26 = vpack.c.bf16 %v2605_v24, %v2603_v23  ;;  %v2611_v27 = vld [vmem:[#allocation5 + $0x80] sm:$0xff]  ;;  %v2613_v28 = vld [vmem:[#allocation5 + $0x90] sm:$0xff] }
  0x31   :  { %3516 = vst [vmem:[#allocation29_spill] sm:$0xff] %v2611_v27  ;;  %3517 = vst [vmem:[#allocation30_spill] sm:$0xff] %v2613_v28  ;;  %v2615_v29 = vld [vmem:[#allocation5 + $0xa8] sm:$0xff]  ;;  %v2617_v30 = vld [vmem:[#allocation5 + $0xb8] sm:$0xff]  ;;  %v176_v31 = vpack.c.bf16 %v2613_v28, %v2611_v27 }
  0x32   :  { %3518 = vst [vmem:[#allocation31_spill] sm:$0xff] %v2615_v29  ;;  %3519 = vst [vmem:[#allocation32_spill] sm:$0xff] %v2617_v30  ;;  %v179_v32 = vpack.c.bf16 %v2617_v30, %v2615_v29  ;;  %v2623_v33 = vld [vmem:[#allocation5 + $0xa0] sm:$0xff]  ;;  %v2625_v34 = vld [vmem:[#allocation5 + $0xb0] sm:$0xff] }
  0x33   :  { %397 = vmatpush1.bf16.msra.mxu0 %v172_v19  ;;  %2319 = vmatpush1.bf16.msra.mxu1 %v172_v19  ;;  %3520 = vst [vmem:[#allocation33_spill] sm:$0xff] %v2623_v33  ;;  %3521 = vst [vmem:[#allocation34_spill] sm:$0xff] %v2625_v34  ;;  %v2627_v35 = vld [vmem:[#allocation5 + $0xc8] sm:$0xff]  ;;  %v2629_v36 = vld [vmem:[#allocation5 + $0xd8] sm:$0xff]  ;;  %v178_v37 = vpack.c.bf16 %v2625_v34, %v2623_v33 }
  0x34   :  { %398 = vmatprep.subr.bf16.mxu0 %v175_v20  ;;  %2304 = vmatprep.subr.bf16.mxu1 %v175_v20  ;;  %3522 = vst [vmem:[#allocation35_spill] sm:$0xff] %v2627_v35  ;;  %3523 = vst [vmem:[#allocation36_spill] sm:$0xff] %v2629_v36  ;;  %v2633_v38 = vld [vmem:[#allocation5 + $0xc0] sm:$0xff]  ;;  %v2635_v39 = vld [vmem:[#allocation5 + $0xd0] sm:$0xff]  ;;  %v181_v40 = vpack.c.bf16 %v2629_v36, %v2627_v35 }
  0x35   :  { %3524 = vst [vmem:[#allocation37_spill] sm:$0xff] %v2633_v38  ;;  %3525 = vst [vmem:[#allocation38_spill] sm:$0xff] %v2635_v39  ;;  %v2639_v41 = vld [vmem:[#allocation5 + $0xe8] sm:$0xff]  ;;  %v2641_v42 = vld [vmem:[#allocation5 + $0xf8] sm:$0xff]  ;;  %v180_v44 = vpack.c.bf16 %v2635_v39, %v2633_v38 }
  0x36   :  { %3526 = vst [vmem:[#allocation39_spill] sm:$0xff] %v2639_v41  ;;  %3527 = vst [vmem:[#allocation40_spill] sm:$0xff] %v2641_v42  ;;  %v2643_v43 = vld [vmem:[#allocation2 + $0x4] ss:$8 sps:$4 sm:$0xff]   ;;  %v183_v46 = vpack.c.bf16 %v2641_v42, %v2639_v41  ;;  %v2651_v47 = vld [vmem:[#allocation5 + $0xf0] sm:$0xff] }
  0x37   :  { %399 = vmatpush1.bf16.msra.mxu0 %v174_v25  ;;  %2320 = vmatpush1.bf16.msra.mxu1 %v174_v25  ;;  %v2647_v45 = vld [vmem:[#allocation5 + $0xe0] sm:$0xff]  ;;  %3529 = vst [vmem:[#allocation42_spill] sm:$0xff] %v2651_v47  ;;  %v2653_v48 = vld [vmem:[#allocation5 + $0x108] sm:$0xff]  ;;  %v2655_v49 = vld [vmem:[#allocation5 + $0x118] sm:$0xff] }
  0x38   :  { %400 = vmatprep.subr.bf16.mxu0 %v177_v26  ;;  %2305 = vmatprep.subr.bf16.mxu1 %v177_v26  ;;  %3528 = vst [vmem:[#allocation41_spill] sm:$0xff] %v2647_v45  ;;  %3530 = vst [vmem:[#allocation43_spill] sm:$0xff] %v2653_v48  ;;  %v2658_v50 = vld [vmem:[#allocation2 + $0x84] ss:$8 sps:$4 sm:$0xff]   ;;  %v182_v51 = vpack.c.bf16 %v2651_v47, %v2647_v45  ;;  %v185_v53 = vpack.c.bf16 %v2655_v49, %v2653_v48  ;;  %v2666_v54 = vld [vmem:[#allocation5 + $0x110] sm:$0xff] }
  0x39   :  { %3531 = vst [vmem:[#allocation44_spill] sm:$0xff] %v2655_v49  ;;  %424 = vmatprep.mubr.bf16.mxu0 %v2643_v43  ;;  %v2662_v52 = vld [vmem:[#allocation5 + $0x100] sm:$0xff]  ;;  %3533 = vst [vmem:[#allocation46_spill] sm:$0xff] %v2666_v54  ;;  %v2668_v55 = vld [vmem:[#allocation5 + $0x128] sm:$0xff]  ;;  %504 = vmatprep.mubr.bf16.mxu1 %v2658_v50 }
  0x3a   :  { %3532 = vst [vmem:[#allocation45_spill] sm:$0xff] %v2662_v52  ;;  %3534 = vst [vmem:[#allocation47_spill] sm:$0xff] %v2668_v55  ;;  %v2670_v56 = vld [vmem:[#allocation5 + $0x138] sm:$0xff]  ;;  %v184_v57 = vpack.c.bf16 %v2666_v54, %v2662_v52  ;;  %v2675_v58 = vld [vmem:[#allocation5 + $0x120] sm:$0xff] }
  0x3b   :  { %401 = vmatpush1.bf16.msra.mxu0 %v176_v31  ;;  %2321 = vmatpush1.bf16.msra.mxu1 %v176_v31  ;;  %3535 = vst [vmem:[#allocation48_spill] sm:$0xff] %v2670_v56  ;;  %3536 = vst [vmem:[#allocation49_spill] sm:$0xff] %v2675_v58  ;;  %v187_v59 = vpack.c.bf16 %v2670_v56, %v2668_v55  ;;  %v2679_v60 = vld [vmem:[#allocation5 + $0x130] sm:$0xff]  ;;  %v2681_v61 = vld [vmem:[#allocation5 + $0x148] sm:$0xff] }
  0x3c   :  { %402 = vmatprep.subr.bf16.mxu0 %v179_v32  ;;  %2306 = vmatprep.subr.bf16.mxu1 %v179_v32  ;;  %3537 = vst [vmem:[#allocation50_spill] sm:$0xff] %v2679_v60  ;;  %3538 = vst [vmem:[#allocation51_spill] sm:$0xff] %v2681_v61  ;;  %v2683_v62 = vld [vmem:[#allocation5 + $0x158] sm:$0xff]  ;;  %v186_v63 = vpack.c.bf16 %v2679_v60, %v2675_v58  ;;  %v2687_v3 = vld [vmem:[#allocation5 + $0x140] sm:$0xff] }
  0x3d   :  { %3539 = vst [vmem:[#allocation52_spill] sm:$0xff] %v2683_v62  ;;  %3540 = vst [vmem:[#allocation53_spill] sm:$0xff] %v2687_v3  ;;  %v189_v7 = vpack.c.bf16 %v2683_v62, %v2681_v61  ;;  %v2691_v8 = vld [vmem:[#allocation5 + $0x150] sm:$0xff]  ;;  %v2693_v13 = vld [vmem:[#allocation5 + $0x168] sm:$0xff] }
  0x3e   :  { %3541 = vst [vmem:[#allocation54_spill] sm:$0xff] %v2691_v8  ;;  %3542 = vst [vmem:[#allocation55_spill] sm:$0xff] %v2693_v13  ;;  %v2695_v14 = vld [vmem:[#allocation5 + $0x178] sm:$0xff]  ;;  %v188_v19 = vpack.c.bf16 %v2691_v8, %v2687_v3  ;;  %v2699_v20 = vld [vmem:[#allocation5 + $0x160] sm:$0xff] }
  0x3f   :  { %403 = vmatpush1.bf16.msra.mxu0 %v178_v37  ;;  %2322 = vmatpush1.bf16.msra.mxu1 %v178_v37  ;;  %3543 = vst [vmem:[#allocation56_spill] sm:$0xff] %v2695_v14  ;;  %3544 = vst [vmem:[#allocation57_spill] sm:$0xff] %v2699_v20  ;;  %v191_v25 = vpack.c.bf16 %v2695_v14, %v2693_v13  ;;  %v2703_v26 = vld [vmem:[#allocation5 + $0x170] sm:$0xff]  ;;  %v2705_v31 = vld [vmem:[#allocation5 + $0x188] sm:$0xff] }
  0x40   :  { %404 = vmatprep.subr.bf16.mxu0 %v181_v40  ;;  %2307 = vmatprep.subr.bf16.mxu1 %v181_v40  ;;  %3545 = vst [vmem:[#allocation58_spill] sm:$0xff] %v2703_v26  ;;  %3546 = vst [vmem:[#allocation59_spill] sm:$0xff] %v2705_v31  ;;  %v2707_v32 = vld [vmem:[#allocation5 + $0x198] sm:$0xff]  ;;  %v2709_v37 = vld [vmem:[#allocation5 + $0x180] sm:$0xff] }
  0x41   :  { %3547 = vst [vmem:[#allocation60_spill] sm:$0xff] %v2707_v32  ;;  %3548 = vst [vmem:[#allocation61_spill] sm:$0xff] %v2709_v37  ;;  %v2711_v40 = vld [vmem:[#allocation5 + $0x190] sm:$0xff]  ;;  %v2729_v14 = vld [vmem:[#allocation5 + $0x1d8] sm:$0xff] }
  0x42   :  { %3549 = vst [vmem:[#allocation62_spill] sm:$0xff] %v2711_v40  ;;  %3555 = vst [vmem:[#allocation68_spill] sm:$0xff] %v2729_v14  ;;  %v2803_v13 = vld [vmem:[#allocation2 + $0x40] ss:$8 sps:$4 sm:$0xff]   ;;  %v2807_v62 = vld [vmem:[#allocation2 + $0x54] ss:$8 sps:$4 sm:$0xff]  }
  0x43   :  { %405 = vmatpush1.bf16.msra.mxu0 %v180_v44  ;;  %2323 = vmatpush1.bf16.msra.mxu1 %v180_v44  ;;  %v190_v44 = vpack.c.bf16 %v2703_v26, %v2699_v20  ;;  %v2797_v26 = vld [vmem:[#allocation2 + $0xc4] ss:$8 sps:$4 sm:$0xff]   ;;  %v2805_v20 = vld [vmem:[#allocation2 + $0xc0] ss:$8 sps:$4 sm:$0xff]   ;;  %v2809_v8 = vld [vmem:[#allocation2 + $0xd4] ss:$8 sps:$4 sm:$0xff]  }
  0x44   :  { %406 = vmatprep.subr.bf16.mxu0 %v183_v46  ;;  %2308 = vmatprep.subr.bf16.mxu1 %v183_v46  ;;  %v2715_v46 = vld [vmem:[#allocation5 + $0x1a8] sm:$0xff]  ;;  %v2815_v61 = vld [vmem:[#allocation2 + $0x50] ss:$8 sps:$4 sm:$0xff]   ;;  %v2831_v49 = vld [vmem:[#allocation2 + $0x74] ss:$8 sps:$4 sm:$0xff]  }
  0x45   :  { %3550 = vst [vmem:[#allocation63_spill] sm:$0xff] %v2715_v46  ;;  %v2817_v3 = vld [vmem:[#allocation2 + $0xd0] ss:$8 sps:$4 sm:$0xff]   ;;  %v2819_v56 = vld [vmem:[#allocation2 + $0x64] ss:$8 sps:$4 sm:$0xff]  }
  0x46   :  { %v2821_v60 = vld [vmem:[#allocation2 + $0xe4] ss:$8 sps:$4 sm:$0xff]   ;;  %v2827_v55 = vld [vmem:[#allocation2 + $0x60] ss:$8 sps:$4 sm:$0xff]   ;;  %v2833_v54 = vld [vmem:[#allocation2 + $0xf4] ss:$8 sps:$4 sm:$0xff]  }
  0x47   :  { %407 = vmatpush1.bf16.msra.mxu0 %v182_v51  ;;  %2324 = vmatpush1.bf16.msra.mxu1 %v182_v51  ;;  %v2717_v51 = vld [vmem:[#allocation5 + $0x1b8] sm:$0xff]  ;;  %v2829_v58 = vld [vmem:[#allocation2 + $0xe0] ss:$8 sps:$4 sm:$0xff]   ;;  %3562 = vst [vmem:[#allocation75_spill] sm:$0xff] %v2833_v54 }
  0x48   :  { %408 = vmatprep.subr.bf16.mxu0 %v185_v53  ;;  %2309 = vmatprep.subr.bf16.mxu1 %v185_v53  ;;  %3551 = vst [vmem:[#allocation64_spill] sm:$0xff] %v2717_v51  ;;  %v193_v53 = vpack.c.bf16 %v2707_v32, %v2705_v31  ;;  %v2739_v31 = vld [vmem:[#allocation5 + $0x1d0] sm:$0xff] }
  0x49   :  { %3557 = vst [vmem:[#allocation70_spill] sm:$0xff] %v2739_v31  ;;  %v2839_v48 = vld [vmem:[#allocation2 + $0x70] ss:$8 sps:$4 sm:$0xff]  }
  0x4a   :  { %v2841_v52 = vld [vmem:[#allocation2 + $0xf0] ss:$8 sps:$4 sm:$0xff]  }
  0x4b   :  { %409 = vmatpush1.bf16.msra.mxu0 %v184_v57  ;;  %2325 = vmatpush1.bf16.msra.mxu1 %v184_v57  ;;  %v2721_v57 = vld [vmem:[#allocation5 + $0x1a0] sm:$0xff]  ;;  %3563 = vst [vmem:[#allocation76_spill] sm:$0xff] %v2841_v52 }
  0x4c   :  { %410 = vmatprep.subr.bf16.mxu0 %v187_v59  ;;  %2310 = vmatprep.subr.bf16.mxu1 %v187_v59  ;;  %3552 = vst [vmem:[#allocation65_spill] sm:$0xff] %v2721_v57  ;;  %v2723_v59 = vld [vmem:[#allocation5 + $0x1b0] sm:$0xff] }
  0x4d   :  { %3553 = vst [vmem:[#allocation66_spill] sm:$0xff] %v2723_v59 }
  0x4f   :  { %411 = vmatpush1.bf16.msra.mxu0 %v186_v63  ;;  %2326 = vmatpush1.bf16.msra.mxu1 %v186_v63  ;;  %v192_v63 = vpack.c.bf16 %v2711_v40, %v2709_v37  ;;  %v2737_v40 = vld [vmem:[#allocation5 + $0x1c0] sm:$0xff]  ;;  %v2743_v37 = vld [vmem:[#allocation5 + $0x1f8] sm:$0xff] }
  0x50   :  { %412 = vmatprep.subr.bf16.mxu0 %v189_v7  ;;  %2311 = vmatprep.subr.bf16.mxu1 %v189_v7  ;;  %v2727_v7 = vld [vmem:[#allocation5 + $0x1c8] sm:$0xff]  ;;  %3556 = vst [vmem:[#allocation69_spill] sm:$0xff] %v2737_v40  ;;  %3559 = vst [vmem:[#allocation72_spill] sm:$0xff] %v2743_v37 }
  0x51   :  { %3554 = vst [vmem:[#allocation67_spill] sm:$0xff] %v2727_v7  ;;  %v197_v32 = vpack.c.bf16 %v2729_v14, %v2727_v7  ;;  %v2751_v14 = vld [vmem:[#allocation5 + $0x1f0] sm:$0xff]  ;;  %v2755_v7 = vld [vmem:[#allocation2] ss:$8 sps:$4 sm:$0xff]  }
  0x52   :  { %3561 = vst [vmem:[#allocation74_spill] sm:$0xff] %v2751_v14 }
  0x53   :  { %413 = vmatpush1.bf16.msra.mxu0 %v188_v19  ;;  %2327 = vmatpush1.bf16.msra.mxu1 %v188_v19  ;;  %v195_v19 = vpack.c.bf16 %v2717_v51, %v2715_v46  ;;  %v2749_v51 = vld [vmem:[#allocation5 + $0x1e0] sm:$0xff]  ;;  %v2793_v46 = vld [vmem:[#allocation2 + $0xb0] ss:$8 sps:$4 sm:$0xff]  }
  0x54   :  { %414 = vmatprep.subr.bf16.mxu0 %v191_v25  ;;  %2312 = vmatprep.subr.bf16.mxu1 %v191_v25  ;;  %v194_v25 = vpack.c.bf16 %v2723_v59, %v2721_v57  ;;  %3560 = vst [vmem:[#allocation73_spill] sm:$0xff] %v2749_v51  ;;  %v2791_v59 = vld [vmem:[#allocation2 + $0x30] ss:$8 sps:$4 sm:$0xff]   ;;  %v2795_v57 = vld [vmem:[#allocation2 + $0x44] ss:$8 sps:$4 sm:$0xff]  }
  0x57   :  { %415 = vmatpush1.bf16.msra.mxu0 %v190_v44  ;;  %2328 = vmatpush1.bf16.msra.mxu1 %v190_v44  ;;  %v2741_v44 = vld [vmem:[#allocation5 + $0x1e8] sm:$0xff] }
  0x58   :  { %416 = vmatprep.subr.bf16.mxu0 %v193_v53  ;;  %2313 = vmatprep.subr.bf16.mxu1 %v193_v53  ;;  %3558 = vst [vmem:[#allocation71_spill] sm:$0xff] %v2741_v44  ;;  %v196_v53 = vpack.c.bf16 %v2739_v31, %v2737_v40  ;;  %v2757_v31 = vld [vmem:[#allocation2 + $0x80] ss:$8 sps:$4 sm:$0xff]   ;;  %v2785_v40 = vld [vmem:[#allocation2 + $0xb4] ss:$8 sps:$4 sm:$0xff]  }
  0x5b   :  { %417 = vmatpush1.bf16.msra.mxu0 %v192_v63  ;;  %2329 = vmatpush1.bf16.msra.mxu1 %v192_v63  ;;  %v199_v63 = vpack.c.bf16 %v2743_v37, %v2741_v44  ;;  %v2761_v37 = vld [vmem:[#allocation2 + $0x94] ss:$8 sps:$4 sm:$0xff]   ;;  %v2781_v44 = vld [vmem:[#allocation2 + $0xa0] ss:$8 sps:$4 sm:$0xff]  }
  0x5c   :  { %418 = vmatprep.subr.bf16.mxu0 %v195_v19  ;;  %2314 = vmatprep.subr.bf16.mxu1 %v195_v19  ;;  %v198_v19 = vpack.c.bf16 %v2751_v14, %v2749_v51  ;;  %v2773_v14 = vld [vmem:[#allocation2 + $0xa4] ss:$8 sps:$4 sm:$0xff]   ;;  %v2783_v51 = vld [vmem:[#allocation2 + $0x34] ss:$8 sps:$4 sm:$0xff]  }
  0x5f   :  { %419 = vmatpush1.bf16.msra.mxu0 %v194_v25  ;;  %2330 = vmatpush1.bf16.msra.mxu1 %v194_v25  ;;  %v2759_v25 = vld [vmem:[#allocation2 + $0x14] ss:$8 sps:$4 sm:$0xff]  }
  0x60   :  { %420 = vmatprep.subr.bf16.mxu0 %v197_v32  ;;  %2315 = vmatprep.subr.bf16.mxu1 %v197_v32  ;;  %v2767_v32 = vld [vmem:[#allocation2 + $0x10] ss:$8 sps:$4 sm:$0xff]  }
  0x63   :  { %421 = vmatpush1.bf16.msra.mxu0 %v196_v53  ;;  %2331 = vmatpush1.bf16.msra.mxu1 %v196_v53  ;;  %v2769_v53 = vld [vmem:[#allocation2 + $0x90] ss:$8 sps:$4 sm:$0xff]  }
  0x64   :  { %422 = vmatprep.subr.bf16.mxu0 %v199_v63  ;;  %2316 = vmatprep.subr.bf16.mxu1 %v199_v63  ;;  %v2771_v63 = vld [vmem:[#allocation2 + $0x24] ss:$8 sps:$4 sm:$0xff]  }
  0x67   :  { %423 = vmatpush1.bf16.msra.mxu0 %v198_v19  ;;  %2332 = vmatpush1.bf16.msra.mxu1 %v198_v19  ;;  %v2779_v19 = vld [vmem:[#allocation2 + $0x20] ss:$8 sps:$4 sm:$0xff]  }
  0x6a   :  { %425 = vmatmul.mubr.bf16.vlgmr.msra.gmra.mrb[0].mxu0 %v2755_v7  ;;  %505 = vmatmul.mubr.bf16.vlgmr.msra.gmra.mrb[0].mxu1 %v2757_v31 }
  0x6b   :  { %434 = vmatprep.mubr.bf16.mxu0 %v2759_v25  ;;  %514 = vmatprep.mubr.bf16.mxu1 %v2761_v37 }
  0x72   :  { %435 = vmatmul.mubr.bf16.gmra.mrb[4].mxu0 %v2767_v32  ;;  %515 = vmatmul.mubr.bf16.gmra.mrb[4].mxu1 %v2769_v53 }
  0x73   :  { %444 = vmatprep.mubr.bf16.mxu0 %v2771_v63  ;;  %524 = vmatprep.mubr.bf16.mxu1 %v2773_v14 }
  0x7a   :  { %445 = vmatmul.mubr.bf16.gmra.mrb[8].mxu0 %v2779_v19  ;;  %525 = vmatmul.mubr.bf16.gmra.mrb[8].mxu1 %v2781_v44 }
  0x7b   :  { %454 = vmatprep.mubr.bf16.mxu0 %v2783_v51  ;;  %534 = vmatprep.mubr.bf16.mxu1 %v2785_v40 }
  0x82   :  { %455 = vmatmul.mubr.bf16.gmra.mrb[12].mxu0 %v2791_v59  ;;  %535 = vmatmul.mubr.bf16.gmra.mrb[12].mxu1 %v2793_v46 }
  0x83   :  { %464 = vmatprep.mubr.bf16.mxu0 %v2795_v57  ;;  %544 = vmatprep.mubr.bf16.mxu1 %v2797_v26 }
  0x8a   :  { %465 = vmatmul.mubr.bf16.gmra.mrb[16].mxu0 %v2803_v13  ;;  %545 = vmatmul.mubr.bf16.gmra.mrb[16].mxu1 %v2805_v20 }
  0x8b   :  { %474 = vmatprep.mubr.bf16.mxu0 %v2807_v62  ;;  %554 = vmatprep.mubr.bf16.mxu1 %v2809_v8 }
  0x92   :  { %475 = vmatmul.mubr.bf16.gmra.mrb[20].mxu0 %v2815_v61  ;;  %555 = vmatmul.mubr.bf16.gmra.mrb[20].mxu1 %v2817_v3 }
  0x93   :  { %484 = vmatprep.mubr.bf16.mxu0 %v2819_v56  ;;  %564 = vmatprep.mubr.bf16.mxu1 %v2821_v60 }
  0x9a   :  { %485 = vmatmul.mubr.bf16.gmra.mrb[24].mxu0 %v2827_v55  ;;  %565 = vmatmul.mubr.bf16.gmra.mrb[24].mxu1 %v2829_v58 }
  0x9b   :  { %494 = vmatprep.mubr.bf16.mxu0 %v2831_v49  ;;  %574 = vmatprep.mubr.bf16.mxu1 %v2833_v54 }
  0xa2   :  { %495 = vmatmul.mubr.bf16.gmra.mrb[28].mxu0 %v2839_v48  ;;  %575 = vmatmul.mubr.bf16.gmra.mrb[28].mxu1 %v2841_v52 }
  0xa3   :  { %1033 = vmatprep.mubr.bf16.mxu1 %v2643_v43 }
 0x13d   :  { %v2846_v42 = vpop.f32.mrb[0].mxu0  ;;  %v2848_v47 = vpop.f32.mrb[0].mxu1 }
 0x13e   :  { %3564 = vst [vmem:[#allocation77_spill] sm:$0xff] %v2846_v42  ;;  %v2850_v41 = vpop.f32.mrb[1].mxu0  ;;  %v2852_v45 = vpop.f32.mrb[1].mxu1 }
 0x13f   :  { %3565 = vst [vmem:[#allocation78_spill] sm:$0xff] %v2850_v41  ;;  %v2854_v36 = vpop.f32.mrb[2].mxu0  ;;  %v2856_v39 = vpop.f32.mrb[2].mxu1 }
 0x140   :  { %3566 = vst [vmem:[#allocation79_spill] sm:$0xff] %v2854_v36  ;;  %v777_v35 = vpack.c.bf16 %v2854_v36, %v2846_v42  ;;  %v2860_v38 = vpop.f32.mrb[3].mxu0  ;;  %v2864_v30 = vpop.f32.mrb[3].mxu1 }
 0x141   :  { %3567 = vst [vmem:[#allocation80_spill] sm:$0xff] %v2860_v38  ;;  %v778_v34 = vpack.c.bf16 %v2860_v38, %v2850_v41 }
 0x143   :  { %1001 = vmatprep.subr.bf16.mxu1 %v778_v34 }
 0x144   :  { %1002 = vmatpush1.bf16.msra.mxu1 %v777_v35 }
 0x145   :  { %v2870_v33 = vpop.f32.mrb[4].mxu0  ;;  %v2872_v24 = vpop.f32.mrb[4].mxu1 }
 0x146   :  { %3568 = vst [vmem:[#allocation81_spill] sm:$0xff] %v2870_v33  ;;  %v2874_v28 = vpop.f32.mrb[5].mxu0  ;;  %v2876_v23 = vpop.f32.mrb[5].mxu1 }
 0x147   :  { %3569 = vst [vmem:[#allocation82_spill] sm:$0xff] %v2874_v28  ;;  %v2878_v27 = vpop.f32.mrb[6].mxu0  ;;  %v2880_v43 = vpop.f32.mrb[6].mxu1 }
 0x148   :  { %3570 = vst [vmem:[#allocation83_spill] sm:$0xff] %v2878_v27  ;;  %v779_v18 = vpack.c.bf16 %v2878_v27, %v2870_v33  ;;  %v2884_v22 = vpop.f32.mrb[7].mxu0  ;;  %v2888_v35 = vpop.f32.mrb[7].mxu1 }
 0x149   :  { %3571 = vst [vmem:[#allocation84_spill] sm:$0xff] %v2884_v22  ;;  %v780_v29 = vpack.c.bf16 %v2884_v22, %v2874_v28 }
 0x14b   :  { %1003 = vmatprep.subr.bf16.mxu1 %v780_v29 }
 0x14c   :  { %1004 = vmatpush1.bf16.msra.mxu1 %v779_v18 }
 0x14d   :  { %v2894_v21 = vpop.f32.mrb[8].mxu0  ;;  %v2896_v12 = vpop.f32.mrb[8].mxu1 }
 0x14e   :  { %3572 = vst [vmem:[#allocation85_spill] sm:$0xff] %v2894_v21  ;;  %v2898_v16 = vpop.f32.mrb[9].mxu0  ;;  %v2900_v11 = vpop.f32.mrb[9].mxu1 }
 0x14f   :  { %3573 = vst [vmem:[#allocation86_spill] sm:$0xff] %v2898_v16  ;;  %v2902_v15 = vpop.f32.mrb[10].mxu0  ;;  %v2904_v34 = vpop.f32.mrb[10].mxu1 }
 0x150   :  { %3574 = vst [vmem:[#allocation87_spill] sm:$0xff] %v2902_v15  ;;  %v781_v22 = vpack.c.bf16 %v2902_v15, %v2894_v21  ;;  %v2908_v6 = vpop.f32.mrb[11].mxu0  ;;  %v2912_v29 = vpop.f32.mrb[11].mxu1 }
 0x151   :  { %3575 = vst [vmem:[#allocation88_spill] sm:$0xff] %v2908_v6  ;;  %v782_v17 = vpack.c.bf16 %v2908_v6, %v2898_v16 }
 0x153   :  { %1005 = vmatprep.subr.bf16.mxu1 %v782_v17 }
 0x154   :  { %1006 = vmatpush1.bf16.msra.mxu1 %v781_v22 }
 0x155   :  { %v2918_v10 = vpop.f32.mrb[12].mxu0  ;;  %v2920_v28 = vpop.f32.mrb[12].mxu1 }
 0x156   :  { %3576 = vst [vmem:[#allocation89_spill] sm:$0xff] %v2918_v10  ;;  %v2922_v15 = vpop.f32.mrb[13].mxu0  ;;  %v2924_v21 = vpop.f32.mrb[13].mxu1 }
 0x157   :  { %3577 = vst [vmem:[#allocation90_spill] sm:$0xff] %v2922_v15  ;;  %v2926_v5 = vpop.f32.mrb[14].mxu0  ;;  %v2928_v18 = vpop.f32.mrb[14].mxu1 }
 0x158   :  { %3578 = vst [vmem:[#allocation91_spill] sm:$0xff] %v2926_v5  ;;  %v783_v6 = vpack.c.bf16 %v2926_v5, %v2918_v10  ;;  %v2932_v16 = vpop.f32.mrb[15].mxu0  ;;  %v2936_v22 = vpop.f32.mrb[15].mxu1 }
 0x159   :  { %3579 = vst [vmem:[#allocation92_spill] sm:$0xff] %v2932_v16  ;;  %v784_v27 = vpack.c.bf16 %v2932_v16, %v2922_v15 }
 0x15b   :  { %1007 = vmatprep.subr.bf16.mxu1 %v784_v27 }
 0x15c   :  { %1008 = vmatpush1.bf16.msra.mxu1 %v783_v6 }
 0x15d   :  { %v2942_v9 = vpop.f32.mrb[16].mxu0  ;;  %v2944_v38 = vpop.f32.mrb[16].mxu1 }
 0x15e   :  { %3580 = vst [vmem:[#allocation93_spill] sm:$0xff] %v2942_v9  ;;  %3581 = vst [vmem:[#allocation94_spill] sm:$0xff] %v2944_v38  ;;  %v2946_v5 = vpop.f32.mrb[17].mxu0  ;;  %v2948_v10 = vpop.f32.mrb[17].mxu1 }
 0x15f   :  { %3582 = vst [vmem:[#allocation95_spill] sm:$0xff] %v2946_v5  ;;  %3583 = vst [vmem:[#allocation96_spill] sm:$0xff] %v2948_v10  ;;  %v2950_v1 = vpop.f32.mrb[18].mxu0  ;;  %v2952_v17 = vpop.f32.mrb[18].mxu1 }
 0x160   :  { %3584 = vst [vmem:[#allocation97_spill] sm:$0xff] %v2950_v1  ;;  %3585 = vst [vmem:[#allocation98_spill] sm:$0xff] %v2952_v17  ;;  %v785_v16 = vpack.c.bf16 %v2950_v1, %v2942_v9  ;;  %v2956_v15 = vpop.f32.mrb[19].mxu0  ;;  %v801_v6 = vpack.c.bf16 %v2952_v17, %v2944_v38  ;;  %v2960_v27 = vpop.f32.mrb[19].mxu1 }
 0x161   :  { %3586 = vst [vmem:[#allocation99_spill] sm:$0xff] %v2956_v15  ;;  %3587 = vst [vmem:[#allocation100_spill] sm:$0xff] %v2960_v27  ;;  %v786_v33 = vpack.c.bf16 %v2956_v15, %v2946_v5  ;;  %v802_v36 = vpack.c.bf16 %v2960_v27, %v2948_v10 }
 0x163   :  { %1009 = vmatprep.subr.bf16.mxu1 %v786_v33 }
 0x164   :  { %1010 = vmatpush1.bf16.msra.mxu1 %v785_v16 }
 0x165   :  { %v2966_v4 = vpop.f32.mrb[20].mxu0  ;;  %v2968_v41 = vpop.f32.mrb[20].mxu1 }
 0x166   :  { %3588 = vst [vmem:[#allocation101_spill] sm:$0xff] %v2966_v4  ;;  %3589 = vst [vmem:[#allocation102_spill] sm:$0xff] %v2968_v41  ;;  %v2970_v1 = vpop.f32.mrb[21].mxu0  ;;  %v2972_v9 = vpop.f32.mrb[21].mxu1 }
 0x167   :  { %3590 = vst [vmem:[#allocation103_spill] sm:$0xff] %v2970_v1  ;;  %3591 = vst [vmem:[#allocation104_spill] sm:$0xff] %v2972_v9  ;;  %v2974_v0 = vpop.f32.mrb[22].mxu0  ;;  %v2976_v17 = vpop.f32.mrb[22].mxu1 }
 0x168   :  { %3592 = vst [vmem:[#allocation105_spill] sm:$0xff] %v2974_v0  ;;  %3593 = vst [vmem:[#allocation106_spill] sm:$0xff] %v2976_v17  ;;  %v787_v38 = vpack.c.bf16 %v2974_v0, %v2966_v4  ;;  %v2980_v15 = vpop.f32.mrb[23].mxu0  ;;  %v803_v16 = vpack.c.bf16 %v2976_v17, %v2968_v41  ;;  %v2984_v33 = vpop.f32.mrb[23].mxu1 }
 0x169   :  { %3594 = vst [vmem:[#allocation107_spill] sm:$0xff] %v2980_v15  ;;  %3595 = vst [vmem:[#allocation108_spill] sm:$0xff] %v2984_v33  ;;  %v788_v27 = vpack.c.bf16 %v2980_v15, %v2970_v1  ;;  %v804_v10 = vpack.c.bf16 %v2984_v33, %v2972_v9 }
 0x16b   :  { %1011 = vmatprep.subr.bf16.mxu1 %v788_v27 }
 0x16c   :  { %1012 = vmatpush1.bf16.msra.mxu1 %v787_v38 }
 0x16d   :  { %v2990_v5 = vpop.f32.mrb[24].mxu0  ;;  %v2992_v42 = vpop.f32.mrb[24].mxu1 }
 0x16e   :  { %3596 = vst [vmem:[#allocation109_spill] sm:$0xff] %v2990_v5  ;;  %3597 = vst [vmem:[#allocation110_spill] sm:$0xff] %v2992_v42  ;;  %v2994_v0 = vpop.f32.mrb[25].mxu0  ;;  %v2996_v4 = vpop.f32.mrb[25].mxu1 }
 0x16f   :  { %3598 = vst [vmem:[#allocation111_spill] sm:$0xff] %v2994_v0  ;;  %3599 = vst [vmem:[#allocation112_spill] sm:$0xff] %v2996_v4  ;;  %v2998_v2 = vpop.f32.mrb[26].mxu0  ;;  %v3000_v17 = vpop.f32.mrb[26].mxu1 }
 0x170   :  { %3600 = vst [vmem:[#allocation113_spill] sm:$0xff] %v2998_v2  ;;  %3601 = vst [vmem:[#allocation114_spill] sm:$0xff] %v3000_v17  ;;  %v789_v41 = vpack.c.bf16 %v2998_v2, %v2990_v5  ;;  %v3004_v15 = vpop.f32.mrb[27].mxu0  ;;  %v805_v38 = vpack.c.bf16 %v3000_v17, %v2992_v42  ;;  %v3008_v27 = vpop.f32.mrb[27].mxu1 }
 0x171   :  { %3602 = vst [vmem:[#allocation115_spill] sm:$0xff] %v3004_v15  ;;  %3603 = vst [vmem:[#allocation116_spill] sm:$0xff] %v3008_v27  ;;  %v790_v33 = vpack.c.bf16 %v3004_v15, %v2994_v0  ;;  %v806_v9 = vpack.c.bf16 %v3008_v27, %v2996_v4  ;;  %v3607_v0 = vpack.c.bf16 %v2864_v30, %v2852_v45 }
 0x173   :  { %1013 = vmatprep.subr.bf16.mxu1 %v790_v33 }
 0x174   :  { %1014 = vmatpush1.bf16.msra.mxu1 %v789_v41 }
 0x175   :  { %v3014_v1 = vpop.f32.mrb[28].mxu0  ;;  %v3016_v52 = vpop.f32.mrb[28].mxu1 }
 0x176   :  { %3604 = vst [vmem:[#allocation117_spill] sm:$0xff] %v3016_v52  ;;  %v3018_v2 = vpop.f32.mrb[29].mxu0  ;;  %v3020_v5 = vpop.f32.mrb[29].mxu1 }
 0x177   :  { %v3022_v54 = vpop.f32.mrb[30].mxu0  ;;  %v3024_v17 = vpop.f32.mrb[30].mxu1 }
 0x178   :  { %3605 = vst [vmem:[#allocation118_spill] sm:$0xff] %v3022_v54  ;;  %3606 = vst [vmem:[#allocation119_spill] sm:$0xff] %v3024_v17  ;;  %v791_v42 = vpack.c.bf16 %v3022_v54, %v3014_v1  ;;  %v3028_v15 = vpop.f32.mrb[31].mxu0  ;;  %v807_v41 = vpack.c.bf16 %v3024_v17, %v3016_v52  ;;  %v3032_v33 = vpop.f32.mrb[31].mxu1  ;;  %v3608_v54 = vpack.c.bf16 %v2856_v39, %v2848_v47 }
 0x179   :  { %v792_v27 = vpack.c.bf16 %v3028_v15, %v3018_v2  ;;  %v808_v4 = vpack.c.bf16 %v3032_v33, %v3020_v5  ;;  %v3609_v17 = vpack.c.bf16 %v2888_v35, %v2876_v23  ;;  %v3610_v52 = vpack.c.bf16 %v2880_v43, %v2872_v24 }
 0x17b   :  { %1015 = vmatprep.subr.bf16.mxu1 %v792_v27  ;;  %v3611_v27 = vpack.c.bf16 %v2912_v29, %v2900_v11 }
 0x17c   :  { %1016 = vmatpush1.bf16.msra.mxu1 %v791_v42  ;;  %v3612_v42 = vpack.c.bf16 %v2904_v34, %v2896_v12 }
 0x17d   :  { %1017 = vmatprep.subr.bf16.mxu1 %v3607_v0  ;;  %v3613_v0 = vpack.c.bf16 %v2936_v22, %v2924_v21 }
 0x180   :  { %1018 = vmatpush1.bf16.msra.mxu1 %v3608_v54  ;;  %v3614_v54 = vpack.c.bf16 %v2928_v18, %v2920_v28 }
 0x181   :  { %1019 = vmatprep.subr.bf16.mxu1 %v3609_v17 }
 0x184   :  { %1020 = vmatpush1.bf16.msra.mxu1 %v3610_v52  ;;  %v3620_v52 = vld [vmem:[#allocation78_spill] sm:$0xff] }
 0x185   :  { %1021 = vmatprep.subr.bf16.mxu1 %v3611_v27 }
 0x188   :  { %1022 = vmatpush1.bf16.msra.mxu1 %v3612_v42 }
 0x189   :  { %1023 = vmatprep.subr.bf16.mxu1 %v3613_v0 }
 0x18c   :  { %1024 = vmatpush1.bf16.msra.mxu1 %v3614_v54 }
 0x18d   :  { %1025 = vmatprep.subr.bf16.mxu1 %v802_v36  ;;  %v3618_v36 = vld [vmem:[#allocation77_spill] sm:$0xff] }
 0x190   :  { %1026 = vmatpush1.bf16.msra.mxu1 %v801_v6 }
 0x191   :  { %1027 = vmatprep.subr.bf16.mxu1 %v804_v10  ;;  %v3617_v10 = vld [vmem:[#allocation13_spill] sm:$0xff] }
 0x194   :  { %1028 = vmatpush1.bf16.msra.mxu1 %v803_v16 }
 0x195   :  { %1029 = vmatprep.subr.bf16.mxu1 %v806_v9  ;;  %v3616_v9 = vld [vmem:[#allocation76_spill] sm:$0xff] }
 0x198   :  { %1030 = vmatpush1.bf16.msra.mxu1 %v805_v38  ;;  %v3631_v38 = vld [vmem:[#allocation16_spill] sm:$0xff] }
 0x199   :  { %1031 = vmatprep.subr.bf16.mxu1 %v808_v4  ;;  %v3615_v4 = vld [vmem:[#allocation75_spill] sm:$0xff] }
 0x19c   :  { %1032 = vmatpush1.bf16.msra.mxu1 %v807_v41  ;;  %v3632_v41 = vld [vmem:[#allocation84_spill] sm:$0xff] }
 0x19d   :  { %v656_v27 = vadd.f32 %v3632_v41, %v3631_v38  ;;  %v3645_v41 = vld [vmem:[#allocation26_spill] sm:$0xff] }
 0x19f   :  { %1034 = vmatmul.mubr.bf16.vlgmr.msra.gmra.mrb[32].mxu1 %v2755_v7 }
 0x1a0   :  { %1043 = vmatprep.mubr.bf16.mxu1 %v2759_v25  ;;  %v3628_v25 = vld [vmem:[#allocation82_spill] sm:$0xff] }
 0x1a7   :  { %1044 = vmatmul.mubr.bf16.gmra.mrb[36].mxu1 %v2767_v32 }
 0x1a8   :  { %1053 = vmatprep.mubr.bf16.mxu1 %v2771_v63  ;;  %v3629_v63 = vld [vmem:[#allocation18_spill] sm:$0xff] }
 0x1af   :  { %1054 = vmatmul.mubr.bf16.gmra.mrb[40].mxu1 %v2779_v19  ;;  %v3630_v19 = vld [vmem:[#allocation83_spill] sm:$0xff] }
 0x1b0   :  { %1063 = vmatprep.mubr.bf16.mxu1 %v2783_v51  ;;  %v655_v17 = vadd.f32 %v3630_v19, %v3629_v63  ;;  %v3643_v19 = vld [vmem:[#allocation23_spill] sm:$0xff] }
 0x1b7   :  { %1064 = vmatmul.mubr.bf16.gmra.mrb[44].mxu1 %v2791_v59  ;;  %v3626_v59 = vld [vmem:[#allocation81_spill] sm:$0xff] }
 0x1b8   :  { %1073 = vmatprep.mubr.bf16.mxu1 %v2795_v57  ;;  %v3625_v57 = vld [vmem:[#allocation17_spill] sm:$0xff] }
 0x1b9   :  { %v653_v7 = vadd.f32 %v3626_v59, %v3625_v57 }
 0x1bf   :  { %1074 = vmatmul.mubr.bf16.gmra.mrb[48].mxu1 %v2803_v13  ;;  %v3624_v13 = vld [vmem:[#allocation80_spill] sm:$0xff] }
 0x1c0   :  { %1083 = vmatprep.mubr.bf16.mxu1 %v2807_v62  ;;  %v3622_v62 = vld [vmem:[#allocation79_spill] sm:$0xff] }
 0x1c7   :  { %1084 = vmatmul.mubr.bf16.gmra.mrb[52].mxu1 %v2815_v61  ;;  %v3621_v61 = vld [vmem:[#allocation14_spill] sm:$0xff] }
 0x1c8   :  { %1093 = vmatprep.mubr.bf16.mxu1 %v2819_v56 }
 0x1cf   :  { %1094 = vmatmul.mubr.bf16.gmra.mrb[56].mxu1 %v2827_v55 }
 0x1d0   :  { %1103 = vmatprep.mubr.bf16.mxu1 %v2831_v49  ;;  %v2390_v49 = vld [vmem:[#allocation2 + $0x4] ss:$8 sps:$4 sm:$0xff]  }
 0x1d1   :  { %1706 = vmatprep.mubr.bf16.mxu0 %v2390_v49  ;;  %v3634_v49 = vld [vmem:[#allocation85_spill] sm:$0xff] }
 0x1d7   :  { %1104 = vmatmul.mubr.bf16.gmra.mrb[60].mxu1 %v2839_v48  ;;  %v649_v48 = vadd.f32 %v3618_v36, %v3617_v10 }
 0x1d8   :  { %1113 = vmatprep.mubr.bf16.mxu1 %v2658_v50  ;;  %v3619_v50 = vld [vmem:[#allocation11_spill] sm:$0xff] }
 0x1d9   :  { %v650_v55 = vadd.f32 %v3620_v52, %v3619_v50  ;;  %v3635_v52 = vld [vmem:[#allocation19_spill] sm:$0xff] }
 0x1df   :  { %1114 = vmatmul.mubr.bf16.gmra.mrb[64].mxu1 %v2757_v31 }
 0x1e0   :  { %1123 = vmatprep.mubr.bf16.mxu1 %v2761_v37 }
 0x1e7   :  { %1124 = vmatmul.mubr.bf16.gmra.mrb[68].mxu1 %v2769_v53 }
 0x1e8   :  { %1133 = vmatprep.mubr.bf16.mxu1 %v2773_v14 }
 0x1ef   :  { %1134 = vmatmul.mubr.bf16.gmra.mrb[72].mxu1 %v2781_v44  ;;  %v3627_v44 = vld [vmem:[#allocation15_spill] sm:$0xff] }
 0x1f0   :  { %1143 = vmatprep.mubr.bf16.mxu1 %v2785_v40  ;;  %v654_v32 = vadd.f32 %v3628_v25, %v3627_v44 }
 0x1f7   :  { %1144 = vmatmul.mubr.bf16.gmra.mrb[76].mxu1 %v2793_v46 }
 0x1f8   :  { %1153 = vmatprep.mubr.bf16.mxu1 %v2797_v26 }
 0x1ff   :  { %1154 = vmatmul.mubr.bf16.gmra.mrb[80].mxu1 %v2805_v20 }
 0x200   :  { %1163 = vmatprep.mubr.bf16.mxu1 %v2809_v8  ;;  %v651_v8 = vadd.f32 %v3622_v62, %v3621_v61  ;;  %v3637_v62 = vld [vmem:[#allocation22_spill] sm:$0xff] }
 0x207   :  { %1164 = vmatmul.mubr.bf16.gmra.mrb[84].mxu1 %v2817_v3 }
 0x208   :  { %1173 = vmatprep.mubr.bf16.mxu1 %v2821_v60 }
 0x20f   :  { %1174 = vmatmul.mubr.bf16.gmra.mrb[88].mxu1 %v2829_v58  ;;  %v3623_v58 = vld [vmem:[#allocation12_spill] sm:$0xff] }
 0x210   :  { %1183 = vmatprep.mubr.bf16.mxu1 %v3615_v4  ;;  %v652_v14 = vadd.f32 %v3624_v13, %v3623_v58 }
 0x217   :  { %1184 = vmatmul.mubr.bf16.gmra.mrb[92].mxu1 %v3616_v9 }
 0x272   :  { %v1035_v56 = vpop.f32.mrb[32].mxu1 }
 0x273   :  { %v3099_v3 = vadd.f32 %v1035_v56, %v649_v48  ;;  %v1037_v60 = vpop.f32.mrb[33].mxu1  ;;  %v3633_v48 = vld [vmem:[#allocation21_spill] sm:$0xff] }
 0x274   :  { %v3103_v20 = vadd.f32 %v1037_v60, %v650_v55  ;;  %v1039_v26 = vpop.f32.mrb[34].mxu1  ;;  %v657_v50 = vadd.f32 %v3634_v49, %v3633_v48  ;;  %v3636_v55 = vld [vmem:[#allocation86_spill] sm:$0xff]  ;;  %v3648_v48 = vld [vmem:[#allocation92_spill] sm:$0xff] }
 0x275   :  { %v3105_v31 = vadd.f32 %v1039_v26, %v651_v8  ;;  %v1386_v37 = vpack.c.bf16 %v1039_v26, %v1035_v56  ;;  %v1041_v40 = vpop.f32.mrb[35].mxu1  ;;  %v658_v56 = vadd.f32 %v3636_v55, %v3635_v52  ;;  %v3638_v8 = vld [vmem:[#allocation87_spill] sm:$0xff]  ;;  %v3640_v26 = vld [vmem:[#allocation88_spill] sm:$0xff] }
 0x276   :  { %v3107_v46 = vadd.f32 %v1041_v40, %v652_v14  ;;  %v1387_v51 = vpack.c.bf16 %v1041_v40, %v1037_v60  ;;  %v659_v60 = vadd.f32 %v3638_v8, %v3637_v62  ;;  %v3639_v14 = vld [vmem:[#allocation20_spill] sm:$0xff] }
 0x278   :  { %1674 = vmatprep.subr.bf16.mxu0 %v1387_v51 }
 0x279   :  { %1675 = vmatpush1.bf16.msra.mxu0 %v1386_v37  ;;  %v660_v37 = vadd.f32 %v3640_v26, %v3639_v14  ;;  %v3651_v26 = vld [vmem:[#allocation27_spill] sm:$0xff] }
 0x27a   :  { %v1045_v53 = vpop.f32.mrb[36].mxu1 }
 0x27b   :  { %v3115_v6 = vadd.f32 %v1045_v53, %v653_v7  ;;  %v1047_v16 = vpop.f32.mrb[37].mxu1 }
 0x27c   :  { %v3119_v42 = vadd.f32 %v1047_v16, %v654_v32  ;;  %v1049_v0 = vpop.f32.mrb[38].mxu1  ;;  %v3641_v32 = vld [vmem:[#allocation25_spill] sm:$0xff] }
 0x27d   :  { %v3121_v54 = vadd.f32 %v1049_v0, %v655_v17  ;;  %v1388_v4 = vpack.c.bf16 %v1049_v0, %v1045_v53  ;;  %v1051_v9 = vpop.f32.mrb[39].mxu1  ;;  %v3642_v53 = vld [vmem:[#allocation89_spill] sm:$0xff]  ;;  %v3644_v17 = vld [vmem:[#allocation90_spill] sm:$0xff] }
 0x27e   :  { %v3123_v10 = vadd.f32 %v1051_v9, %v656_v27  ;;  %v1389_v36 = vpack.c.bf16 %v1051_v9, %v1047_v16  ;;  %v661_v63 = vadd.f32 %v3642_v53, %v3641_v32  ;;  %v662_v16 = vadd.f32 %v3644_v17, %v3643_v19  ;;  %v3646_v27 = vld [vmem:[#allocation91_spill] sm:$0xff]  ;;  %v3655_v19 = vld [vmem:[#allocation28_spill] sm:$0xff] }
 0x27f   :  { %v663_v0 = vadd.f32 %v3646_v27, %v3645_v41  ;;  %v3656_v17 = vld [vmem:[#allocation99_spill] sm:$0xff] }
 0x280   :  { %1676 = vmatprep.subr.bf16.mxu0 %v1389_v36  ;;  %v3647_v36 = vld [vmem:[#allocation24_spill] sm:$0xff] }
 0x281   :  { %1677 = vmatpush1.bf16.msra.mxu0 %v1388_v4  ;;  %v664_v49 = vadd.f32 %v3648_v48, %v3647_v36 }
 0x282   :  { %v1055_v61 = vpop.f32.mrb[40].mxu1 }
 0x283   :  { %v3131_v58 = vadd.f32 %v1055_v61, %v657_v50  ;;  %v1057_v13 = vpop.f32.mrb[41].mxu1 }
 0x284   :  { %v3135_v40 = vadd.f32 %v1057_v13, %v658_v56  ;;  %v1059_v51 = vpop.f32.mrb[42].mxu1 }
 0x285   :  { %v3137_v57 = vadd.f32 %v1059_v51, %v659_v60  ;;  %v1390_v59 = vpack.c.bf16 %v1059_v51, %v1055_v61  ;;  %v1061_v7 = vpop.f32.mrb[43].mxu1  ;;  %v3649_v60 = vld [vmem:[#allocation29_spill] sm:$0xff] }
 0x286   :  { %v3139_v44 = vadd.f32 %v1061_v7, %v660_v37  ;;  %v1391_v25 = vpack.c.bf16 %v1061_v7, %v1057_v13  ;;  %v3650_v13 = vld [vmem:[#allocation93_spill] sm:$0xff]  ;;  %v3652_v37 = vld [vmem:[#allocation95_spill] sm:$0xff]  ;;  %v3653_v7 = vld [vmem:[#allocation30_spill] sm:$0xff] }
 0x287   :  { %v665_v14 = vadd.f32 %v3650_v13, %v3649_v60  ;;  %v666_v51 = vadd.f32 %v3652_v37, %v3651_v26  ;;  %v3662_v26 = vld [vmem:[#allocation105_spill] sm:$0xff] }
 0x288   :  { %1678 = vmatprep.subr.bf16.mxu0 %v1391_v25  ;;  %v3654_v25 = vld [vmem:[#allocation97_spill] sm:$0xff] }
 0x289   :  { %1679 = vmatpush1.bf16.msra.mxu0 %v1390_v59  ;;  %v667_v32 = vadd.f32 %v3654_v25, %v3653_v7  ;;  %v3664_v25 = vld [vmem:[#allocation107_spill] sm:$0xff] }
 0x28a   :  { %v1065_v38 = vpop.f32.mrb[44].mxu1 }
 0x28b   :  { %v3147_v4 = vadd.f32 %v1065_v38, %v661_v63  ;;  %v1067_v9 = vpop.f32.mrb[45].mxu1 }
 0x28c   :  { %v3151_v50 = vadd.f32 %v1067_v9, %v662_v16  ;;  %v1069_v52 = vpop.f32.mrb[46].mxu1  ;;  %v668_v16 = vadd.f32 %v3656_v17, %v3655_v19 }
 0x28d   :  { %v3153_v55 = vadd.f32 %v1069_v52, %v663_v0  ;;  %v1392_v56 = vpack.c.bf16 %v1069_v52, %v1065_v38  ;;  %v1071_v61 = vpop.f32.mrb[47].mxu1  ;;  %v3658_v52 = vld [vmem:[#allocation101_spill] sm:$0xff] }
 0x28e   :  { %v3155_v62 = vadd.f32 %v1071_v61, %v664_v49  ;;  %v1393_v8 = vpack.c.bf16 %v1071_v61, %v1067_v9  ;;  %v3657_v49 = vld [vmem:[#allocation33_spill] sm:$0xff]  ;;  %v3659_v61 = vld [vmem:[#allocation31_spill] sm:$0xff] }
 0x290   :  { %1680 = vmatprep.subr.bf16.mxu0 %v1393_v8  ;;  %v3660_v8 = vld [vmem:[#allocation103_spill] sm:$0xff] }
 0x291   :  { %1681 = vmatpush1.bf16.msra.mxu0 %v1392_v56  ;;  %v669_v56 = vadd.f32 %v3658_v52, %v3657_v49  ;;  %v670_v60 = vadd.f32 %v3660_v8, %v3659_v61  ;;  %v3667_v49 = vld [vmem:[#allocation109_spill] sm:$0xff]  ;;  %v3669_v61 = vld [vmem:[#allocation111_spill] sm:$0xff] }
 0x292   :  { %v1075_v59 = vpop.f32.mrb[48].mxu1 }
 0x293   :  { %v3163_v53 = vadd.f32 %v1075_v59, %v665_v14  ;;  %v1077_v63 = vpop.f32.mrb[49].mxu1  ;;  %v3661_v14 = vld [vmem:[#allocation34_spill] sm:$0xff] }
 0x294   :  { %v3167_v38 = vadd.f32 %v1077_v63, %v666_v51  ;;  %v1079_v41 = vpop.f32.mrb[50].mxu1  ;;  %v671_v37 = vadd.f32 %v3662_v26, %v3661_v14  ;;  %v3670_v26 = vld [vmem:[#allocation38_spill] sm:$0xff] }
 0x295   :  { %v3169_v27 = vadd.f32 %v1079_v41, %v667_v32  ;;  %v1394_v0 = vpack.c.bf16 %v1079_v41, %v1075_v59  ;;  %v1081_v9 = vpop.f32.mrb[51].mxu1  ;;  %v3663_v59 = vld [vmem:[#allocation32_spill] sm:$0xff] }
 0x296   :  { %v3171_v36 = vadd.f32 %v1081_v9, %v668_v16  ;;  %v1395_v48 = vpack.c.bf16 %v1081_v9, %v1077_v63  ;;  %v672_v32 = vadd.f32 %v3664_v25, %v3663_v59 }
 0x298   :  { %1682 = vmatprep.subr.bf16.mxu0 %v1395_v48  ;;  %v3666_v48 = vld [vmem:[#allocation37_spill] sm:$0xff] }
 0x299   :  { %1683 = vmatpush1.bf16.msra.mxu0 %v1394_v0  ;;  %v673_v52 = vadd.f32 %v3667_v49, %v3666_v48 }
 0x29a   :  { %v1085_v13 = vpop.f32.mrb[52].mxu1 }
 0x29b   :  { %v3179_v51 = vadd.f32 %v1085_v13, %v669_v56  ;;  %v1087_v7 = vpop.f32.mrb[53].mxu1  ;;  %v3668_v56 = vld [vmem:[#allocation35_spill] sm:$0xff] }
 0x29c   :  { %v3183_v19 = vadd.f32 %v1087_v7, %v670_v60  ;;  %v1089_v63 = vpop.f32.mrb[54].mxu1  ;;  %v674_v8 = vadd.f32 %v3669_v61, %v3668_v56  ;;  %v3671_v60 = vld [vmem:[#allocation113_spill] sm:$0xff] }
 0x29d   :  { %v3185_v17 = vadd.f32 %v1089_v63, %v671_v37  ;;  %v1396_v16 = vpack.c.bf16 %v1089_v63, %v1085_v13  ;;  %v1091_v41 = vpop.f32.mrb[55].mxu1  ;;  %v675_v59 = vadd.f32 %v3671_v60, %v3670_v26  ;;  %v3672_v13 = vld [vmem:[#allocation36_spill] sm:$0xff]  ;;  %v3673_v63 = vld [vmem:[#allocation115_spill] sm:$0xff]  ;;  %v3675_v56 = vld [vmem:[#allocation41_spill] sm:$0xff] }
 0x29e   :  { %v3187_v0 = vadd.f32 %v1091_v41, %v672_v32  ;;  %v1397_v9 = vpack.c.bf16 %v1091_v41, %v1087_v7  ;;  %v676_v32 = vadd.f32 %v3673_v63, %v3672_v13  ;;  %v677_v61 = vadd.f32 %v3014_v1, %v3675_v56  ;;  %v3677_v13 = vld [vmem:[#allocation42_spill] sm:$0xff]  ;;  %v3680_v56 = vld [vmem:[#allocation45_spill] sm:$0xff] }
 0x2a0   :  { %3665 = vst [vmem:[#allocation75_spill] sm:$0xff] %v3187_v0  ;;  %1684 = vmatprep.subr.bf16.mxu0 %v1397_v9 }
 0x2a1   :  { %1685 = vmatpush1.bf16.msra.mxu0 %v1396_v16 }
 0x2a2   :  { %v1095_v14 = vpop.f32.mrb[56].mxu1 }
 0x2a3   :  { %v3195_v25 = vadd.f32 %v1095_v14, %v673_v52  ;;  %v1097_v37 = vpop.f32.mrb[57].mxu1  ;;  %v3676_v52 = vld [vmem:[#allocation39_spill] sm:$0xff] }
 0x2a4   :  { %v3199_v0 = vadd.f32 %v1097_v37, %v674_v8  ;;  %v1099_v7 = vpop.f32.mrb[58].mxu1  ;;  %v678_v26 = vadd.f32 %v3018_v2, %v3676_v52  ;;  %v3678_v8 = vld [vmem:[#allocation118_spill] sm:$0xff]  ;;  %v681_v52 = vadd.f32 %v2848_v47, %v3680_v56  ;;  %v3684_v56 = vld [vmem:[#allocation49_spill] sm:$0xff] }
 0x2a5   :  { %v3201_v41 = vadd.f32 %v1099_v7, %v675_v59  ;;  %v1398_v9 = vpack.c.bf16 %v1099_v7, %v1095_v14  ;;  %v1101_v16 = vpop.f32.mrb[59].mxu1  ;;  %v679_v63 = vadd.f32 %v3678_v8, %v3677_v13  ;;  %v3679_v14 = vld [vmem:[#allocation40_spill] sm:$0xff] }
 0x2a6   :  { %3674 = vst [vmem:[#allocation76_spill] sm:$0xff] %v3199_v0  ;;  %v3203_v48 = vadd.f32 %v1101_v16, %v676_v32  ;;  %v1399_v49 = vpack.c.bf16 %v1101_v16, %v1097_v37  ;;  %v680_v32 = vadd.f32 %v3028_v15, %v3679_v14  ;;  %v3682_v15 = vld [vmem:[#allocation46_spill] sm:$0xff] }
 0x2a8   :  { %1686 = vmatprep.subr.bf16.mxu0 %v1399_v49 }
 0x2a9   :  { %1687 = vmatpush1.bf16.msra.mxu0 %v1398_v9 }
 0x2aa   :  { %v1105_v60 = vpop.f32.mrb[60].mxu1 }
 0x2ab   :  { %v3211_v0 = vadd.f32 %v1105_v60, %v677_v61  ;;  %v1107_v59 = vpop.f32.mrb[61].mxu1  ;;  %v3681_v61 = vld [vmem:[#allocation43_spill] sm:$0xff] }
 0x2ac   :  { %v3215_v7 = vadd.f32 %v1107_v59, %v678_v26  ;;  %v1109_v37 = vpop.f32.mrb[62].mxu1  ;;  %v682_v13 = vadd.f32 %v2852_v45, %v3681_v61  ;;  %v683_v26 = vadd.f32 %v2856_v39, %v3682_v15  ;;  %v685_v39 = vadd.f32 %v2872_v24, %v3684_v56  ;;  %v3688_v56 = vld [vmem:[#allocation53_spill] sm:$0xff] }
 0x2ad   :  { %v3217_v16 = vadd.f32 %v1109_v37, %v679_v63  ;;  %v1400_v1 = vpack.c.bf16 %v1109_v37, %v1105_v60  ;;  %v1111_v9 = vpop.f32.mrb[63].mxu1  ;;  %v3683_v60 = vld [vmem:[#allocation44_spill] sm:$0xff] }
 0x2ae   :  { %v3219_v49 = vadd.f32 %v1111_v9, %v680_v32  ;;  %v1401_v2 = vpack.c.bf16 %v1111_v9, %v1107_v59  ;;  %v684_v32 = vadd.f32 %v2864_v30, %v3683_v60  ;;  %v3686_v30 = vld [vmem:[#allocation50_spill] sm:$0xff] }
 0x2b0   :  { %1688 = vmatprep.subr.bf16.mxu0 %v1401_v2 }
 0x2b1   :  { %1689 = vmatpush1.bf16.msra.mxu0 %v1400_v1 }
 0x2b2   :  { %v1115_v8 = vpop.f32.mrb[64].mxu1 }
 0x2b3   :  { %v3227_v14 = vadd.f32 %v1115_v8, %v681_v52  ;;  %v1117_v63 = vpop.f32.mrb[65].mxu1  ;;  %v3685_v52 = vld [vmem:[#allocation47_spill] sm:$0xff] }
 0x2b4   :  { %v3231_v37 = vadd.f32 %v1117_v63, %v682_v13  ;;  %v1119_v59 = vpop.f32.mrb[66].mxu1  ;;  %v686_v61 = vadd.f32 %v2876_v23, %v3685_v52  ;;  %v687_v13 = vadd.f32 %v2880_v43, %v3686_v30  ;;  %v689_v43 = vadd.f32 %v2896_v12, %v3688_v56  ;;  %v3693_v56 = vld [vmem:[#allocation57_spill] sm:$0xff] }
 0x2b5   :  { %v3233_v9 = vadd.f32 %v1119_v59, %v683_v26  ;;  %v1402_v47 = vpack.c.bf16 %v1119_v59, %v1115_v8  ;;  %v1121_v1 = vpop.f32.mrb[67].mxu1  ;;  %v3687_v8 = vld [vmem:[#allocation48_spill] sm:$0xff] }
 0x2b6   :  { %v3235_v2 = vadd.f32 %v1121_v1, %v684_v32  ;;  %v1403_v45 = vpack.c.bf16 %v1121_v1, %v1117_v63  ;;  %v688_v32 = vadd.f32 %v2888_v35, %v3687_v8  ;;  %v3690_v35 = vld [vmem:[#allocation54_spill] sm:$0xff] }
 0x2b8   :  { %1690 = vmatprep.subr.bf16.mxu0 %v1403_v45 }
 0x2b9   :  { %1691 = vmatpush1.bf16.msra.mxu0 %v1402_v47 }
 0x2ba   :  { %v1125_v15 = vpop.f32.mrb[68].mxu1 }
 0x2bb   :  { %v3243_v60 = vadd.f32 %v1125_v15, %v685_v39  ;;  %v1127_v26 = vpop.f32.mrb[69].mxu1  ;;  %v3689_v39 = vld [vmem:[#allocation51_spill] sm:$0xff] }
 0x2bc   :  { %v3247_v59 = vadd.f32 %v1127_v26, %v686_v61  ;;  %v1129_v63 = vpop.f32.mrb[70].mxu1  ;;  %v690_v52 = vadd.f32 %v2900_v11, %v3689_v39  ;;  %v691_v61 = vadd.f32 %v2904_v34, %v3690_v35  ;;  %v693_v34 = vadd.f32 %v2920_v28, %v3693_v56  ;;  %v3701_v56 = vld [vmem:[#allocation61_spill] sm:$0xff] }
 0x2bd   :  { %v3249_v1 = vadd.f32 %v1129_v63, %v687_v13  ;;  %v1404_v24 = vpack.c.bf16 %v1129_v63, %v1125_v15  ;;  %v1131_v47 = vpop.f32.mrb[71].mxu1  ;;  %v3691_v15 = vld [vmem:[#allocation52_spill] sm:$0xff] }
 0x2be   :  { %v3251_v45 = vadd.f32 %v1131_v47, %v688_v32  ;;  %v1405_v23 = vpack.c.bf16 %v1131_v47, %v1127_v26  ;;  %v692_v32 = vadd.f32 %v2912_v29, %v3691_v15  ;;  %v3695_v29 = vld [vmem:[#allocation58_spill] sm:$0xff] }
 0x2c0   :  { %1692 = vmatprep.subr.bf16.mxu0 %v1405_v23 }
 0x2c1   :  { %1693 = vmatpush1.bf16.msra.mxu0 %v1404_v24 }
 0x2c2   :  { %v1135_v30 = vpop.f32.mrb[72].mxu1 }
 0x2c3   :  { %v3259_v8 = vadd.f32 %v1135_v30, %v689_v43  ;;  %v1137_v13 = vpop.f32.mrb[73].mxu1  ;;  %v3694_v43 = vld [vmem:[#allocation55_spill] sm:$0xff] }
 0x2c4   :  { %v3263_v63 = vadd.f32 %v1137_v13, %v690_v52  ;;  %v1139_v26 = vpop.f32.mrb[74].mxu1  ;;  %v694_v39 = vadd.f32 %v2924_v21, %v3694_v43  ;;  %v695_v52 = vadd.f32 %v2928_v18, %v3695_v29  ;;  %v3702_v43 = vld [vmem:[#allocation94_spill] sm:$0xff]  ;;  %v3704_v29 = vld [vmem:[#allocation96_spill] sm:$0xff] }
 0x2c5   :  { %v3265_v47 = vadd.f32 %v1139_v26, %v691_v61  ;;  %v1406_v12 = vpack.c.bf16 %v1139_v26, %v1135_v30  ;;  %v1141_v24 = vpop.f32.mrb[75].mxu1  ;;  %v3697_v30 = vld [vmem:[#allocation56_spill] sm:$0xff]  ;;  %v697_v18 = vadd.f32 %v3702_v43, %v3701_v56 }
 0x2c6   :  { %v3267_v23 = vadd.f32 %v1141_v24, %v692_v32  ;;  %v1407_v11 = vpack.c.bf16 %v1141_v24, %v1137_v13  ;;  %v696_v32 = vadd.f32 %v2936_v22, %v3697_v30  ;;  %v3705_v22 = vld [vmem:[#allocation62_spill] sm:$0xff] }
 0x2c8   :  { %3692 = vst [vmem:[#allocation13_spill] sm:$0xff] %v3267_v23  ;;  %1694 = vmatprep.subr.bf16.mxu0 %v1407_v11 }
 0x2c9   :  { %1695 = vmatpush1.bf16.msra.mxu0 %v1406_v12 }
 0x2ca   :  { %v1145_v35 = vpop.f32.mrb[76].mxu1 }
 0x2cb   :  { %v3275_v15 = vadd.f32 %v1145_v35, %v693_v34  ;;  %v1147_v61 = vpop.f32.mrb[77].mxu1  ;;  %v3703_v34 = vld [vmem:[#allocation59_spill] sm:$0xff] }
 0x2cc   :  { %v3279_v26 = vadd.f32 %v1147_v61, %v694_v39  ;;  %v1149_v13 = vpop.f32.mrb[78].mxu1  ;;  %v3706_v39 = vld [vmem:[#allocation98_spill] sm:$0xff] }
 0x2cd   :  { %3696 = vst [vmem:[#allocation77_spill] sm:$0xff] %v3275_v15  ;;  %v3281_v24 = vadd.f32 %v1149_v13, %v695_v52  ;;  %v1408_v28 = vpack.c.bf16 %v1149_v13, %v1145_v35  ;;  %v1151_v12 = vpop.f32.mrb[79].mxu1  ;;  %v698_v15 = vadd.f32 %v3704_v29, %v3703_v34  ;;  %v699_v30 = vadd.f32 %v3706_v39, %v3705_v22  ;;  %v3708_v35 = vld [vmem:[#allocation60_spill] sm:$0xff]  ;;  %v3711_v34 = vld [vmem:[#allocation65_spill] sm:$0xff]  ;;  %v3712_v29 = vld [vmem:[#allocation102_spill] sm:$0xff] }
 0x2ce   :  { %3698 = vst [vmem:[#allocation11_spill] sm:$0xff] %v3279_v26  ;;  %v3283_v11 = vadd.f32 %v1151_v12, %v696_v32  ;;  %v1409_v21 = vpack.c.bf16 %v1151_v12, %v1147_v61  ;;  %v3709_v13 = vld [vmem:[#allocation100_spill] sm:$0xff]  ;;  %v701_v22 = vadd.f32 %v3712_v29, %v3711_v34  ;;  %v3719_v29 = vld [vmem:[#allocation69_spill] sm:$0xff] }
 0x2cf   :  { %3699 = vst [vmem:[#allocation78_spill] sm:$0xff] %v3281_v24  ;;  %v700_v32 = vadd.f32 %v3709_v13, %v3708_v35  ;;  %v3714_v39 = vld [vmem:[#allocation104_spill] sm:$0xff]  ;;  %v3715_v35 = vld [vmem:[#allocation66_spill] sm:$0xff] }
 0x2d0   :  { %3700 = vst [vmem:[#allocation14_spill] sm:$0xff] %v3283_v11  ;;  %1696 = vmatprep.subr.bf16.mxu0 %v1409_v21 }
 0x2d1   :  { %1697 = vmatpush1.bf16.msra.mxu0 %v1408_v28 }
 0x2d2   :  { %v1155_v23 = vpop.f32.mrb[80].mxu1 }
 0x2d3   :  { %v3291_v26 = vadd.f32 %v1155_v23, %v697_v18  ;;  %v1157_v52 = vpop.f32.mrb[81].mxu1  ;;  %v3713_v18 = vld [vmem:[#allocation63_spill] sm:$0xff] }
 0x2d4   :  { %v3295_v11 = vadd.f32 %v1157_v52, %v698_v15  ;;  %v1159_v61 = vpop.f32.mrb[82].mxu1  ;;  %v3716_v15 = vld [vmem:[#allocation106_spill] sm:$0xff] }
 0x2d5   :  { %3707 = vst [vmem:[#allocation79_spill] sm:$0xff] %v3291_v26  ;;  %v1308_v12 = vadd.f32 %v1159_v61, %v699_v30  ;;  %v1410_v21 = vpack.c.bf16 %v1159_v61, %v1155_v23  ;;  %v1161_v56 = vpop.f32.mrb[83].mxu1  ;;  %v702_v26 = vadd.f32 %v3714_v39, %v3713_v18  ;;  %v703_v13 = vadd.f32 %v3716_v15, %v3715_v35  ;;  %v3717_v23 = vld [vmem:[#allocation64_spill] sm:$0xff]  ;;  %v3720_v18 = vld [vmem:[#allocation110_spill] sm:$0xff] }
 0x2d6   :  { %3710 = vst [vmem:[#allocation12_spill] sm:$0xff] %v3295_v11  ;;  %v1309_v28 = vadd.f32 %v1161_v56, %v700_v32  ;;  %v1411_v43 = vpack.c.bf16 %v1161_v56, %v1157_v52  ;;  %v3718_v61 = vld [vmem:[#allocation108_spill] sm:$0xff]  ;;  %v705_v39 = vadd.f32 %v3720_v18, %v3719_v29  ;;  %v3727_v18 = vld [vmem:[#allocation73_spill] sm:$0xff] }
 0x2d7   :  { %1372 = vst [vmem:[#allocation7 + $0x190] sm:$0xff] %v1308_v12  ;;  %v704_v32 = vadd.f32 %v3718_v61, %v3717_v23  ;;  %v3722_v35 = vld [vmem:[#allocation112_spill] sm:$0xff]  ;;  %v3724_v61 = vld [vmem:[#allocation114_spill] sm:$0xff] }
 0x2d8   :  { %1373 = vst [vmem:[#allocation7 + $0x198] sm:$0xff] %v1309_v28  ;;  %1698 = vmatprep.subr.bf16.mxu0 %v1411_v43 }
 0x2d9   :  { %1699 = vmatpush1.bf16.msra.mxu0 %v1410_v21 }
 0x2da   :  { %v1165_v24 = vpop.f32.mrb[84].mxu1 }
 0x2db   :  { %v1310_v11 = vadd.f32 %v1165_v24, %v701_v22  ;;  %v1167_v30 = vpop.f32.mrb[85].mxu1  ;;  %v3721_v22 = vld [vmem:[#allocation67_spill] sm:$0xff] }
 0x2dc   :  { %v1311_v52 = vadd.f32 %v1167_v30, %v702_v26  ;;  %v1169_v12 = vpop.f32.mrb[86].mxu1  ;;  %v706_v15 = vadd.f32 %v3722_v35, %v3721_v22  ;;  %v3723_v26 = vld [vmem:[#allocation70_spill] sm:$0xff]  ;;  %v3728_v22 = vld [vmem:[#allocation117_spill] sm:$0xff] }
 0x2dd   :  { %1374 = vst [vmem:[#allocation7 + $0x1a0] sm:$0xff] %v1310_v11  ;;  %v1312_v56 = vadd.f32 %v1169_v12, %v703_v13  ;;  %v1412_v28 = vpack.c.bf16 %v1169_v12, %v1165_v24  ;;  %v1171_v43 = vpop.f32.mrb[87].mxu1  ;;  %v707_v11 = vadd.f32 %v3724_v61, %v3723_v26  ;;  %v3725_v12 = vld [vmem:[#allocation68_spill] sm:$0xff]  ;;  %v709_v35 = vadd.f32 %v3728_v22, %v3727_v18  ;;  %v2393_v18 = vld [vmem:[#allocation2 + $0x10] ss:$8 sps:$4 sm:$0xff]  }
 0x2de   :  { %1375 = vst [vmem:[#allocation7 + $0x1a8] sm:$0xff] %v1311_v52  ;;  %v1313_v21 = vadd.f32 %v1171_v43, %v704_v32  ;;  %v1413_v34 = vpack.c.bf16 %v1171_v43, %v1167_v30  ;;  %v3726_v52 = vld [vmem:[#allocation116_spill] sm:$0xff] }
 0x2df   :  { %1376 = vst [vmem:[#allocation7 + $0x1b0] sm:$0xff] %v1312_v56  ;;  %v708_v32 = vadd.f32 %v3726_v52, %v3725_v12  ;;  %v3731_v12 = vld [vmem:[#allocation119_spill] sm:$0xff]  ;;  %v3732_v52 = vld [vmem:[#allocation72_spill] sm:$0xff] }
 0x2e0   :  { %1377 = vst [vmem:[#allocation7 + $0x1b8] sm:$0xff] %v1313_v21  ;;  %1700 = vmatprep.subr.bf16.mxu0 %v1413_v34  ;;  %v2394_v22 = vld [vmem:[#allocation2 + $0x24] ss:$8 sps:$4 sm:$0xff]  }
 0x2e1   :  { %1701 = vmatpush1.bf16.msra.mxu0 %v1412_v28 }
 0x2e2   :  { %v1175_v23 = vpop.f32.mrb[88].mxu1 }
 0x2e3   :  { %v1314_v13 = vadd.f32 %v1175_v23, %v705_v39  ;;  %v1177_v24 = vpop.f32.mrb[89].mxu1  ;;  %v3729_v39 = vld [vmem:[#allocation71_spill] sm:$0xff] }
 0x2e4   :  { %v1315_v30 = vadd.f32 %v1177_v24, %v706_v15  ;;  %v1179_v56 = vpop.f32.mrb[90].mxu1  ;;  %v710_v26 = vadd.f32 %v3020_v5, %v3729_v39  ;;  %v3730_v15 = vld [vmem:[#allocation74_spill] sm:$0xff]  ;;  %v2388_v5 = vld [vmem:[#allocation2] ss:$8 sps:$4 sm:$0xff]  }
 0x2e5   :  { %1378 = vst [vmem:[#allocation7 + $0x1c0] sm:$0xff] %v1314_v13  ;;  %v1316_v43 = vadd.f32 %v1179_v56, %v707_v11  ;;  %v1414_v21 = vpack.c.bf16 %v1179_v56, %v1175_v23  ;;  %v1181_v34 = vpop.f32.mrb[91].mxu1  ;;  %v711_v13 = vadd.f32 %v3731_v12, %v3730_v15  ;;  %v2399_v39 = vld [vmem:[#allocation2 + $0x30] ss:$8 sps:$4 sm:$0xff]   ;;  %v2403_v15 = vld [vmem:[#allocation2 + $0x54] ss:$8 sps:$4 sm:$0xff]  }
 0x2e6   :  { %1379 = vst [vmem:[#allocation7 + $0x1c8] sm:$0xff] %v1315_v30  ;;  %v1317_v28 = vadd.f32 %v1181_v34, %v708_v32  ;;  %v1415_v29 = vpack.c.bf16 %v1181_v34, %v1177_v24  ;;  %v712_v32 = vadd.f32 %v3032_v33, %v3732_v52  ;;  %v2396_v33 = vld [vmem:[#allocation2 + $0x20] ss:$8 sps:$4 sm:$0xff]   ;;  %v2405_v12 = vld [vmem:[#allocation2 + $0x50] ss:$8 sps:$4 sm:$0xff]  }
 0x2e7   :  { %1380 = vst [vmem:[#allocation7 + $0x1d0] sm:$0xff] %v1316_v43  ;;  %v2411_v52 = vld [vmem:[#allocation2 + $0x70] ss:$8 sps:$4 sm:$0xff]  }
 0x2e8   :  { %1381 = vst [vmem:[#allocation7 + $0x1d8] sm:$0xff] %v1317_v28  ;;  %1702 = vmatprep.subr.bf16.mxu0 %v1415_v29  ;;  %v2391_v29 = vld [vmem:[#allocation2 + $0x14] ss:$8 sps:$4 sm:$0xff]  }
 0x2e9   :  { %1703 = vmatpush1.bf16.msra.mxu0 %v1414_v21 }
 0x2ea   :  { %v1185_v61 = vpop.f32.mrb[92].mxu1 }
 0x2eb   :  { %v1318_v11 = vadd.f32 %v1185_v61, %v709_v35  ;;  %v1187_v23 = vpop.f32.mrb[93].mxu1  ;;  %v2397_v35 = vld [vmem:[#allocation2 + $0x34] ss:$8 sps:$4 sm:$0xff]  }
 0x2ec   :  { %v1319_v24 = vadd.f32 %v1187_v23, %v710_v26  ;;  %v1189_v30 = vpop.f32.mrb[94].mxu1  ;;  %v2400_v26 = vld [vmem:[#allocation2 + $0x44] ss:$8 sps:$4 sm:$0xff]  }
 0x2ed   :  { %1382 = vst [vmem:[#allocation7 + $0x1e0] sm:$0xff] %v1318_v11  ;;  %v1320_v56 = vadd.f32 %v1189_v30, %v711_v13  ;;  %v1416_v43 = vpack.c.bf16 %v1189_v30, %v1185_v61  ;;  %v1191_v34 = vpop.f32.mrb[95].mxu1  ;;  %v2402_v61 = vld [vmem:[#allocation2 + $0x40] ss:$8 sps:$4 sm:$0xff]   ;;  %v2406_v13 = vld [vmem:[#allocation2 + $0x64] ss:$8 sps:$4 sm:$0xff]  }
 0x2ee   :  { %1383 = vst [vmem:[#allocation7 + $0x1e8] sm:$0xff] %v1319_v24  ;;  %v1321_v21 = vadd.f32 %v1191_v34, %v712_v32  ;;  %v1417_v28 = vpack.c.bf16 %v1191_v34, %v1187_v23  ;;  %v2408_v11 = vld [vmem:[#allocation2 + $0x60] ss:$8 sps:$4 sm:$0xff]   ;;  %v2409_v23 = vld [vmem:[#allocation2 + $0x74] ss:$8 sps:$4 sm:$0xff]  }
 0x2ef   :  { %1384 = vst [vmem:[#allocation7 + $0x1f0] sm:$0xff] %v1320_v56  ;;  %v2412_v32 = vld [vmem:[#allocation2 + $0x84] ss:$8 sps:$4 sm:$0xff]   ;;  %v2414_v24 = vld [vmem:[#allocation2 + $0x80] ss:$8 sps:$4 sm:$0xff]  }
 0x2f0   :  { %1385 = vst [vmem:[#allocation7 + $0x1f8] sm:$0xff] %v1321_v21  ;;  %1704 = vmatprep.subr.bf16.mxu0 %v1417_v28  ;;  %v2415_v30 = vld [vmem:[#allocation2 + $0x94] ss:$8 sps:$4 sm:$0xff]   ;;  %v2417_v56 = vld [vmem:[#allocation2 + $0x90] ss:$8 sps:$4 sm:$0xff]  }
 0x2f1   :  { %1705 = vmatpush1.bf16.msra.mxu0 %v1416_v43  ;;  %v2418_v43 = vld [vmem:[#allocation2 + $0xa4] ss:$8 sps:$4 sm:$0xff]   ;;  %v2420_v34 = vld [vmem:[#allocation2 + $0xa0] ss:$8 sps:$4 sm:$0xff]   ;;  %v2421_v21 = vld [vmem:[#allocation2 + $0xb4] ss:$8 sps:$4 sm:$0xff]  }
 0x2f2   :  { %v2423_v28 = vld [vmem:[#allocation2 + $0xb0] ss:$8 sps:$4 sm:$0xff]  }
 0x2f4   :  { %1707 = vmatmul.mubr.bf16.vlgmr.msra.gmra.mrb[32].mxu0 %v2388_v5  ;;  %v2424_v5 = vld [vmem:[#allocation2 + $0xc4] ss:$8 sps:$4 sm:$0xff]  }
 0x2f5   :  { %1716 = vmatprep.mubr.bf16.mxu0 %v2391_v29  ;;  %v2426_v29 = vld [vmem:[#allocation2 + $0xc0] ss:$8 sps:$4 sm:$0xff]  }
 0x2fc   :  { %1717 = vmatmul.mubr.bf16.gmra.mrb[36].mxu0 %v2393_v18  ;;  %v2427_v18 = vld [vmem:[#allocation2 + $0xd4] ss:$8 sps:$4 sm:$0xff]  }
 0x2fd   :  { %1726 = vmatprep.mubr.bf16.mxu0 %v2394_v22  ;;  %v2429_v22 = vld [vmem:[#allocation2 + $0xd0] ss:$8 sps:$4 sm:$0xff]  }
 0x304   :  { %1727 = vmatmul.mubr.bf16.gmra.mrb[40].mxu0 %v2396_v33  ;;  %v2430_v33 = vld [vmem:[#allocation2 + $0xe4] ss:$8 sps:$4 sm:$0xff]  }
 0x305   :  { %1736 = vmatprep.mubr.bf16.mxu0 %v2397_v35  ;;  %v2432_v35 = vld [vmem:[#allocation2 + $0xe0] ss:$8 sps:$4 sm:$0xff]  }
 0x30c   :  { %1737 = vmatmul.mubr.bf16.gmra.mrb[44].mxu0 %v2399_v39  ;;  %v2433_v39 = vld [vmem:[#allocation2 + $0xf4] ss:$8 sps:$4 sm:$0xff]  }
 0x30d   :  { %1746 = vmatprep.mubr.bf16.mxu0 %v2400_v26  ;;  %v2435_v26 = vld [vmem:[#allocation2 + $0xf0] ss:$8 sps:$4 sm:$0xff]  }
 0x314   :  { %1747 = vmatmul.mubr.bf16.gmra.mrb[48].mxu0 %v2402_v61 }
 0x315   :  { %1756 = vmatprep.mubr.bf16.mxu0 %v2403_v15 }
 0x31c   :  { %1757 = vmatmul.mubr.bf16.gmra.mrb[52].mxu0 %v2405_v12 }
 0x31d   :  { %1766 = vmatprep.mubr.bf16.mxu0 %v2406_v13 }
 0x324   :  { %1767 = vmatmul.mubr.bf16.gmra.mrb[56].mxu0 %v2408_v11 }
 0x325   :  { %1776 = vmatprep.mubr.bf16.mxu0 %v2409_v23 }
 0x32c   :  { %1777 = vmatmul.mubr.bf16.gmra.mrb[60].mxu0 %v2411_v52 }
 0x32d   :  { %1786 = vmatprep.mubr.bf16.mxu0 %v2412_v32 }
 0x334   :  { %1787 = vmatmul.mubr.bf16.gmra.mrb[64].mxu0 %v2414_v24 }
 0x335   :  { %1796 = vmatprep.mubr.bf16.mxu0 %v2415_v30 }
 0x33c   :  { %1797 = vmatmul.mubr.bf16.gmra.mrb[68].mxu0 %v2417_v56 }
 0x33d   :  { %1806 = vmatprep.mubr.bf16.mxu0 %v2418_v43 }
 0x344   :  { %1807 = vmatmul.mubr.bf16.gmra.mrb[72].mxu0 %v2420_v34 }
 0x345   :  { %1816 = vmatprep.mubr.bf16.mxu0 %v2421_v21 }
 0x34c   :  { %1817 = vmatmul.mubr.bf16.gmra.mrb[76].mxu0 %v2423_v28 }
 0x34d   :  { %1826 = vmatprep.mubr.bf16.mxu0 %v2424_v5 }
 0x354   :  { %1827 = vmatmul.mubr.bf16.gmra.mrb[80].mxu0 %v2426_v29 }
 0x355   :  { %1836 = vmatprep.mubr.bf16.mxu0 %v2427_v18 }
 0x35c   :  { %1837 = vmatmul.mubr.bf16.gmra.mrb[84].mxu0 %v2429_v22 }
 0x35d   :  { %1846 = vmatprep.mubr.bf16.mxu0 %v2430_v33 }
 0x364   :  { %1847 = vmatmul.mubr.bf16.gmra.mrb[88].mxu0 %v2432_v35 }
 0x365   :  { %1856 = vmatprep.mubr.bf16.mxu0 %v2433_v39 }
 0x36c   :  { %1857 = vmatmul.mubr.bf16.gmra.mrb[92].mxu0 %v2435_v26 }
 0x3c7   :  { %v1708_v61 = vpop.f32.mrb[32].mxu0 }
 0x3c8   :  { %v1867_v15 = vadd.f32 %v1708_v61, %v3099_v3  ;;  %v1710_v12 = vpop.f32.mrb[33].mxu0 }
 0x3c9   :  { %v1868_v13 = vadd.f32 %v1710_v12, %v3103_v20  ;;  %v1712_v11 = vpop.f32.mrb[34].mxu0 }
 0x3ca   :  { %v2059_v23 = vmul.f32 0.25, %v1867_v15  ;;  %v1869_v52 = vadd.f32 %v1712_v11, %v3105_v31  ;;  %v1714_v32 = vpop.f32.mrb[35].mxu0 }
 0x3cb   :  { %v2060_v24 = vmul.f32 0.25, %v1868_v13  ;;  %v1870_v30 = vadd.f32 %v1714_v32, %v3107_v46 }
 0x3cc   :  { %2123 = vst [vmem:[#allocation7] sm:$0xff] %v2059_v23  ;;  %v2061_v56 = vmul.f32 0.25, %v1869_v52 }
 0x3cd   :  { %2124 = vst [vmem:[#allocation7 + $0x8] sm:$0xff] %v2060_v24  ;;  %v2062_v43 = vmul.f32 0.25, %v1870_v30 }
 0x3ce   :  { %2125 = vst [vmem:[#allocation7 + $0x10] sm:$0xff] %v2061_v56 }
 0x3cf   :  { %2126 = vst [vmem:[#allocation7 + $0x18] sm:$0xff] %v2062_v43  ;;  %v1718_v34 = vpop.f32.mrb[36].mxu0 }
 0x3d0   :  { %v1871_v3 = vadd.f32 %v1718_v34, %v3115_v6  ;;  %v1720_v21 = vpop.f32.mrb[37].mxu0 }
 0x3d1   :  { %v1872_v20 = vadd.f32 %v1720_v21, %v3119_v42  ;;  %v1722_v28 = vpop.f32.mrb[38].mxu0 }
 0x3d2   :  { %v2063_v5 = vmul.f32 0.25, %v1871_v3  ;;  %v1873_v31 = vadd.f32 %v1722_v28, %v3121_v54  ;;  %v1724_v29 = vpop.f32.mrb[39].mxu0 }
 0x3d3   :  { %v2064_v18 = vmul.f32 0.25, %v1872_v20  ;;  %v1874_v46 = vadd.f32 %v1724_v29, %v3123_v10 }
 0x3d4   :  { %2127 = vst [vmem:[#allocation7 + $0x20] sm:$0xff] %v2063_v5  ;;  %v2065_v22 = vmul.f32 0.25, %v1873_v31 }
 0x3d5   :  { %2128 = vst [vmem:[#allocation7 + $0x28] sm:$0xff] %v2064_v18  ;;  %v2066_v33 = vmul.f32 0.25, %v1874_v46 }
 0x3d6   :  { %2129 = vst [vmem:[#allocation7 + $0x30] sm:$0xff] %v2065_v22 }
 0x3d7   :  { %2130 = vst [vmem:[#allocation7 + $0x38] sm:$0xff] %v2066_v33  ;;  %v1728_v35 = vpop.f32.mrb[40].mxu0 }
 0x3d8   :  { %v1875_v6 = vadd.f32 %v1728_v35, %v3131_v58  ;;  %v1730_v39 = vpop.f32.mrb[41].mxu0 }
 0x3d9   :  { %v1876_v42 = vadd.f32 %v1730_v39, %v3135_v40  ;;  %v1732_v26 = vpop.f32.mrb[42].mxu0 }
 0x3da   :  { %v2067_v61 = vmul.f32 0.25, %v1875_v6  ;;  %v1877_v54 = vadd.f32 %v1732_v26, %v3137_v57  ;;  %v1734_v15 = vpop.f32.mrb[43].mxu0 }
 0x3db   :  { %v2068_v12 = vmul.f32 0.25, %v1876_v42  ;;  %v1878_v10 = vadd.f32 %v1734_v15, %v3139_v44  ;;  %v3733_v42 = vld [vmem:[#allocation75_spill] sm:$0xff] }
 0x3dc   :  { %2131 = vst [vmem:[#allocation7 + $0x40] sm:$0xff] %v2067_v61  ;;  %v2069_v13 = vmul.f32 0.25, %v1877_v54 }
 0x3dd   :  { %2132 = vst [vmem:[#allocation7 + $0x48] sm:$0xff] %v2068_v12  ;;  %v2070_v11 = vmul.f32 0.25, %v1878_v10  ;;  %v3734_v12 = vld [vmem:[#allocation76_spill] sm:$0xff] }
 0x3de   :  { %2133 = vst [vmem:[#allocation7 + $0x50] sm:$0xff] %v2069_v13 }
 0x3df   :  { %2134 = vst [vmem:[#allocation7 + $0x58] sm:$0xff] %v2070_v11  ;;  %v1738_v23 = vpop.f32.mrb[44].mxu0 }
 0x3e0   :  { %v1879_v58 = vadd.f32 %v1738_v23, %v3147_v4  ;;  %v1740_v52 = vpop.f32.mrb[45].mxu0 }
 0x3e1   :  { %v1880_v40 = vadd.f32 %v1740_v52, %v3151_v50  ;;  %v1742_v32 = vpop.f32.mrb[46].mxu0 }
 0x3e2   :  { %v2071_v24 = vmul.f32 0.25, %v1879_v58  ;;  %v1881_v57 = vadd.f32 %v1742_v32, %v3153_v55  ;;  %v1744_v30 = vpop.f32.mrb[47].mxu0 }
 0x3e3   :  { %v2072_v56 = vmul.f32 0.25, %v1880_v40  ;;  %v1882_v44 = vadd.f32 %v1744_v30, %v3155_v62 }
 0x3e4   :  { %2135 = vst [vmem:[#allocation7 + $0x60] sm:$0xff] %v2071_v24  ;;  %v2073_v43 = vmul.f32 0.25, %v1881_v57 }
 0x3e5   :  { %2136 = vst [vmem:[#allocation7 + $0x68] sm:$0xff] %v2072_v56  ;;  %v2074_v34 = vmul.f32 0.25, %v1882_v44 }
 0x3e6   :  { %2137 = vst [vmem:[#allocation7 + $0x70] sm:$0xff] %v2073_v43 }
 0x3e7   :  { %2138 = vst [vmem:[#allocation7 + $0x78] sm:$0xff] %v2074_v34  ;;  %v1748_v3 = vpop.f32.mrb[48].mxu0 }
 0x3e8   :  { %v1883_v4 = vadd.f32 %v1748_v3, %v3163_v53  ;;  %v1750_v21 = vpop.f32.mrb[49].mxu0 }
 0x3e9   :  { %v1884_v50 = vadd.f32 %v1750_v21, %v3167_v38  ;;  %v1752_v20 = vpop.f32.mrb[50].mxu0 }
 0x3ea   :  { %v2075_v28 = vmul.f32 0.25, %v1883_v4  ;;  %v1885_v55 = vadd.f32 %v1752_v20, %v3169_v27  ;;  %v1754_v5 = vpop.f32.mrb[51].mxu0 }
 0x3eb   :  { %v2076_v31 = vmul.f32 0.25, %v1884_v50  ;;  %v1886_v62 = vadd.f32 %v1754_v5, %v3171_v36 }
 0x3ec   :  { %2139 = vst [vmem:[#allocation7 + $0x80] sm:$0xff] %v2075_v28  ;;  %v2077_v29 = vmul.f32 0.25, %v1885_v55 }
 0x3ed   :  { %2140 = vst [vmem:[#allocation7 + $0x88] sm:$0xff] %v2076_v31  ;;  %v2078_v18 = vmul.f32 0.25, %v1886_v62 }
 0x3ee   :  { %2141 = vst [vmem:[#allocation7 + $0x90] sm:$0xff] %v2077_v29 }
 0x3ef   :  { %2142 = vst [vmem:[#allocation7 + $0x98] sm:$0xff] %v2078_v18  ;;  %v1758_v46 = vpop.f32.mrb[52].mxu0 }
 0x3f0   :  { %v1887_v53 = vadd.f32 %v1758_v46, %v3179_v51  ;;  %v1760_v22 = vpop.f32.mrb[53].mxu0 }
 0x3f1   :  { %v1888_v38 = vadd.f32 %v1760_v22, %v3183_v19  ;;  %v1762_v33 = vpop.f32.mrb[54].mxu0 }
 0x3f2   :  { %v2079_v35 = vmul.f32 0.25, %v1887_v53  ;;  %v1889_v27 = vadd.f32 %v1762_v33, %v3185_v17  ;;  %v1764_v6 = vpop.f32.mrb[55].mxu0 }
 0x3f3   :  { %v2080_v39 = vmul.f32 0.25, %v1888_v38  ;;  %v1890_v36 = vadd.f32 %v1764_v6, %v3733_v42 }
 0x3f4   :  { %2143 = vst [vmem:[#allocation7 + $0xa0] sm:$0xff] %v2079_v35  ;;  %v2081_v26 = vmul.f32 0.25, %v1889_v27 }
 0x3f5   :  { %2144 = vst [vmem:[#allocation7 + $0xa8] sm:$0xff] %v2080_v39  ;;  %v2082_v61 = vmul.f32 0.25, %v1890_v36 }
 0x3f6   :  { %2145 = vst [vmem:[#allocation7 + $0xb0] sm:$0xff] %v2081_v26  ;;  %v3735_v26 = vld [vmem:[#allocation13_spill] sm:$0xff] }
 0x3f7   :  { %2146 = vst [vmem:[#allocation7 + $0xb8] sm:$0xff] %v2082_v61  ;;  %v1768_v54 = vpop.f32.mrb[56].mxu0 }
 0x3f8   :  { %v1891_v51 = vadd.f32 %v1768_v54, %v3195_v25  ;;  %v1770_v15 = vpop.f32.mrb[57].mxu0 }
 0x3f9   :  { %v1892_v19 = vadd.f32 %v1770_v15, %v3734_v12  ;;  %v1772_v10 = vpop.f32.mrb[58].mxu0  ;;  %v3736_v15 = vld [vmem:[#allocation77_spill] sm:$0xff] }
 0x3fa   :  { %v2083_v13 = vmul.f32 0.25, %v1891_v51  ;;  %v1893_v17 = vadd.f32 %v1772_v10, %v3201_v41  ;;  %v1774_v11 = vpop.f32.mrb[59].mxu0 }
 0x3fb   :  { %v2084_v23 = vmul.f32 0.25, %v1892_v19  ;;  %v1894_v58 = vadd.f32 %v1774_v11, %v3203_v48  ;;  %v3737_v19 = vld [vmem:[#allocation11_spill] sm:$0xff] }
 0x3fc   :  { %2147 = vst [vmem:[#allocation7 + $0xc0] sm:$0xff] %v2083_v13  ;;  %v2085_v52 = vmul.f32 0.25, %v1893_v17  ;;  %v3738_v17 = vld [vmem:[#allocation78_spill] sm:$0xff] }
 0x3fd   :  { %2148 = vst [vmem:[#allocation7 + $0xc8] sm:$0xff] %v2084_v23  ;;  %v2086_v40 = vmul.f32 0.25, %v1894_v58  ;;  %v3739_v58 = vld [vmem:[#allocation14_spill] sm:$0xff] }
 0x3fe   :  { %2149 = vst [vmem:[#allocation7 + $0xd0] sm:$0xff] %v2085_v52 }
 0x3ff   :  { %2150 = vst [vmem:[#allocation7 + $0xd8] sm:$0xff] %v2086_v40  ;;  %v1778_v32 = vpop.f32.mrb[60].mxu0 }
 0x400   :  { %v1895_v25 = vadd.f32 %v1778_v32, %v3211_v0  ;;  %v1780_v24 = vpop.f32.mrb[61].mxu0 }
 0x401   :  { %v1896_v57 = vadd.f32 %v1780_v24, %v3215_v7  ;;  %v1782_v30 = vpop.f32.mrb[62].mxu0  ;;  %v3740_v24 = vld [vmem:[#allocation79_spill] sm:$0xff] }
 0x402   :  { %v2087_v56 = vmul.f32 0.25, %v1895_v25  ;;  %v1897_v41 = vadd.f32 %v1782_v30, %v3217_v16  ;;  %v1784_v44 = vpop.f32.mrb[63].mxu0 }
 0x403   :  { %v2088_v43 = vmul.f32 0.25, %v1896_v57  ;;  %v1898_v48 = vadd.f32 %v1784_v44, %v3219_v49  ;;  %v1468_v44 = vld [vmem:[#allocation7 + $0x190] sm:$0xff] }
 0x404   :  { %2151 = vst [vmem:[#allocation7 + $0xe0] sm:$0xff] %v2087_v56  ;;  %v2089_v34 = vmul.f32 0.25, %v1897_v41  ;;  %v3741_v56 = vld [vmem:[#allocation12_spill] sm:$0xff] }
 0x405   :  { %2152 = vst [vmem:[#allocation7 + $0xe8] sm:$0xff] %v2088_v43  ;;  %v2090_v3 = vmul.f32 0.25, %v1898_v48 }
 0x406   :  { %2153 = vst [vmem:[#allocation7 + $0xf0] sm:$0xff] %v2089_v34 }
 0x407   :  { %2154 = vst [vmem:[#allocation7 + $0xf8] sm:$0xff] %v2090_v3  ;;  %v1788_v4 = vpop.f32.mrb[64].mxu0  ;;  %v1469_v3 = vld [vmem:[#allocation7 + $0x198] sm:$0xff] }
 0x408   :  { %v1899_v0 = vadd.f32 %v1788_v4, %v3227_v14  ;;  %v1790_v21 = vpop.f32.mrb[65].mxu0 }
 0x409   :  { %v1900_v7 = vadd.f32 %v1790_v21, %v3231_v37  ;;  %v1792_v50 = vpop.f32.mrb[66].mxu0 }
 0x40a   :  { %v2091_v20 = vmul.f32 0.25, %v1899_v0  ;;  %v1901_v16 = vadd.f32 %v1792_v50, %v3233_v9  ;;  %v1794_v28 = vpop.f32.mrb[67].mxu0 }
 0x40b   :  { %v2092_v55 = vmul.f32 0.25, %v1900_v7  ;;  %v1902_v49 = vadd.f32 %v1794_v28, %v3235_v2 }
 0x40c   :  { %2155 = vst [vmem:[#allocation7 + $0x100] sm:$0xff] %v2091_v20  ;;  %v2093_v5 = vmul.f32 0.25, %v1901_v16  ;;  %v1470_v20 = vld [vmem:[#allocation7 + $0x1a0] sm:$0xff] }
 0x40d   :  { %2156 = vst [vmem:[#allocation7 + $0x108] sm:$0xff] %v2092_v55  ;;  %v2094_v31 = vmul.f32 0.25, %v1902_v49  ;;  %v1471_v55 = vld [vmem:[#allocation7 + $0x1a8] sm:$0xff] }
 0x40e   :  { %2157 = vst [vmem:[#allocation7 + $0x110] sm:$0xff] %v2093_v5 }
 0x40f   :  { %2158 = vst [vmem:[#allocation7 + $0x118] sm:$0xff] %v2094_v31  ;;  %v1798_v62 = vpop.f32.mrb[68].mxu0  ;;  %v1472_v31 = vld [vmem:[#allocation7 + $0x1b0] sm:$0xff] }
 0x410   :  { %v1903_v14 = vadd.f32 %v1798_v62, %v3243_v60  ;;  %v1800_v29 = vpop.f32.mrb[69].mxu0 }
 0x411   :  { %v1904_v37 = vadd.f32 %v1800_v29, %v3247_v59  ;;  %v1802_v18 = vpop.f32.mrb[70].mxu0 }
 0x412   :  { %v2095_v46 = vmul.f32 0.25, %v1903_v14  ;;  %v1905_v9 = vadd.f32 %v1802_v18, %v3249_v1  ;;  %v1804_v53 = vpop.f32.mrb[71].mxu0 }
 0x413   :  { %v2096_v22 = vmul.f32 0.25, %v1904_v37  ;;  %v1906_v2 = vadd.f32 %v1804_v53, %v3251_v45  ;;  %v1473_v37 = vld [vmem:[#allocation7 + $0x1b8] sm:$0xff] }
 0x414   :  { %2159 = vst [vmem:[#allocation7 + $0x120] sm:$0xff] %v2095_v46  ;;  %v2097_v38 = vmul.f32 0.25, %v1905_v9 }
 0x415   :  { %2160 = vst [vmem:[#allocation7 + $0x128] sm:$0xff] %v2096_v22  ;;  %v2098_v33 = vmul.f32 0.25, %v1906_v2  ;;  %v1474_v2 = vld [vmem:[#allocation7 + $0x1c0] sm:$0xff] }
 0x416   :  { %2161 = vst [vmem:[#allocation7 + $0x130] sm:$0xff] %v2097_v38 }
 0x417   :  { %2162 = vst [vmem:[#allocation7 + $0x138] sm:$0xff] %v2098_v33  ;;  %v1808_v35 = vpop.f32.mrb[72].mxu0 }
 0x418   :  { %v1907_v60 = vadd.f32 %v1808_v35, %v3259_v8  ;;  %v1810_v27 = vpop.f32.mrb[73].mxu0  ;;  %v1475_v35 = vld [vmem:[#allocation7 + $0x1c8] sm:$0xff] }
 0x419   :  { %v1908_v59 = vadd.f32 %v1810_v27, %v3263_v63  ;;  %v1812_v6 = vpop.f32.mrb[74].mxu0 }
 0x41a   :  { %v2099_v39 = vmul.f32 0.25, %v1907_v60  ;;  %v1909_v1 = vadd.f32 %v1812_v6, %v3265_v47  ;;  %v1814_v42 = vpop.f32.mrb[75].mxu0 }
 0x41b   :  { %v2100_v36 = vmul.f32 0.25, %v1908_v59  ;;  %v1910_v45 = vadd.f32 %v1814_v42, %v3735_v26  ;;  %v1476_v59 = vld [vmem:[#allocation7 + $0x1d0] sm:$0xff]  ;;  %v1477_v42 = vld [vmem:[#allocation7 + $0x1d8] sm:$0xff] }
 0x41c   :  { %2163 = vst [vmem:[#allocation7 + $0x140] sm:$0xff] %v2099_v39  ;;  %v2101_v61 = vmul.f32 0.25, %v1909_v1 }
 0x41d   :  { %2164 = vst [vmem:[#allocation7 + $0x148] sm:$0xff] %v2100_v36  ;;  %v2102_v54 = vmul.f32 0.25, %v1910_v45 }
 0x41e   :  { %2165 = vst [vmem:[#allocation7 + $0x150] sm:$0xff] %v2101_v61 }
 0x41f   :  { %2166 = vst [vmem:[#allocation7 + $0x158] sm:$0xff] %v2102_v54  ;;  %v1818_v51 = vpop.f32.mrb[76].mxu0 }
 0x420   :  { %v1911_v8 = vadd.f32 %v1818_v51, %v3736_v15  ;;  %v1820_v12 = vpop.f32.mrb[77].mxu0  ;;  %v1478_v51 = vld [vmem:[#allocation7 + $0x1e0] sm:$0xff] }
 0x421   :  { %v1912_v63 = vadd.f32 %v1820_v12, %v3737_v19  ;;  %v1822_v10 = vpop.f32.mrb[78].mxu0  ;;  %v1479_v12 = vld [vmem:[#allocation7 + $0x1e8] sm:$0xff] }
 0x422   :  { %v2103_v13 = vmul.f32 0.25, %v1911_v8  ;;  %v1913_v47 = vadd.f32 %v1822_v10, %v3738_v17  ;;  %v1824_v11 = vpop.f32.mrb[79].mxu0  ;;  %v1480_v10 = vld [vmem:[#allocation7 + $0x1f0] sm:$0xff] }
 0x423   :  { %v2104_v23 = vmul.f32 0.25, %v1912_v63  ;;  %v1914_v52 = vadd.f32 %v1824_v11, %v3739_v58  ;;  %v1481_v11 = vld [vmem:[#allocation7 + $0x1f8] sm:$0xff] }
 0x424   :  { %2167 = vst [vmem:[#allocation7 + $0x160] sm:$0xff] %v2103_v13  ;;  %v2105_v40 = vmul.f32 0.25, %v1913_v47 }
 0x425   :  { %2168 = vst [vmem:[#allocation7 + $0x168] sm:$0xff] %v2104_v23  ;;  %v2106_v32 = vmul.f32 0.25, %v1914_v52 }
 0x426   :  { %2169 = vst [vmem:[#allocation7 + $0x170] sm:$0xff] %v2105_v40 }
 0x427   :  { %2170 = vst [vmem:[#allocation7 + $0x178] sm:$0xff] %v2106_v32  ;;  %v1828_v25 = vpop.f32.mrb[80].mxu0 }
 0x428   :  { %v1915_v57 = vadd.f32 %v1828_v25, %v3740_v24  ;;  %v1830_v30 = vpop.f32.mrb[81].mxu0 }
 0x429   :  { %v1916_v41 = vadd.f32 %v1830_v30, %v3741_v56  ;;  %v1832_v43 = vpop.f32.mrb[82].mxu0 }
 0x42a   :  { %v2107_v48 = vmul.f32 0.25, %v1915_v57  ;;  %v1917_v34 = vadd.f32 %v1832_v43, %v1468_v44  ;;  %v1834_v4 = vpop.f32.mrb[83].mxu0 }
 0x42b   :  { %v2108_v0 = vmul.f32 0.25, %v1916_v41  ;;  %v1918_v21 = vadd.f32 %v1834_v4, %v1469_v3 }
 0x42c   :  { %2171 = vst [vmem:[#allocation7 + $0x180] sm:$0xff] %v2107_v48  ;;  %v2109_v7 = vmul.f32 0.25, %v1917_v34 }
 0x42d   :  { %2172 = vst [vmem:[#allocation7 + $0x188] sm:$0xff] %v2108_v0  ;;  %v2110_v50 = vmul.f32 0.25, %v1918_v21 }
 0x42e   :  { %2173 = vst [vmem:[#allocation7 + $0x190] sm:$0xff] %v2109_v7 }
 0x42f   :  { %2174 = vst [vmem:[#allocation7 + $0x198] sm:$0xff] %v2110_v50  ;;  %v1838_v16 = vpop.f32.mrb[84].mxu0 }
 0x430   :  { %v1919_v28 = vadd.f32 %v1838_v16, %v1470_v20  ;;  %v1840_v49 = vpop.f32.mrb[85].mxu0 }
 0x431   :  { %v1920_v5 = vadd.f32 %v1840_v49, %v1471_v55  ;;  %v1842_v62 = vpop.f32.mrb[86].mxu0 }
 0x432   :  { %v2111_v14 = vmul.f32 0.25, %v1919_v28  ;;  %v1921_v29 = vadd.f32 %v1842_v62, %v1472_v31  ;;  %v1844_v18 = vpop.f32.mrb[87].mxu0 }
 0x433   :  { %v2112_v46 = vmul.f32 0.25, %v1920_v5  ;;  %v1922_v9 = vadd.f32 %v1844_v18, %v1473_v37 }
 0x434   :  { %2175 = vst [vmem:[#allocation7 + $0x1a0] sm:$0xff] %v2111_v14  ;;  %v2113_v53 = vmul.f32 0.25, %v1921_v29 }
 0x435   :  { %2176 = vst [vmem:[#allocation7 + $0x1a8] sm:$0xff] %v2112_v46  ;;  %v2114_v22 = vmul.f32 0.25, %v1922_v9 }
 0x436   :  { %2177 = vst [vmem:[#allocation7 + $0x1b0] sm:$0xff] %v2113_v53 }
 0x437   :  { %2178 = vst [vmem:[#allocation7 + $0x1b8] sm:$0xff] %v2114_v22  ;;  %v1848_v38 = vpop.f32.mrb[88].mxu0 }
 0x438   :  { %v1923_v33 = vadd.f32 %v1848_v38, %v1474_v2  ;;  %v1850_v60 = vpop.f32.mrb[89].mxu0 }
 0x439   :  { %v1924_v27 = vadd.f32 %v1850_v60, %v1475_v35  ;;  %v1852_v6 = vpop.f32.mrb[90].mxu0 }
 0x43a   :  { %v2115_v39 = vmul.f32 0.25, %v1923_v33  ;;  %v1925_v1 = vadd.f32 %v1852_v6, %v1476_v59  ;;  %v1854_v36 = vpop.f32.mrb[91].mxu0 }
 0x43b   :  { %v2116_v26 = vmul.f32 0.25, %v1924_v27  ;;  %v1926_v45 = vadd.f32 %v1854_v36, %v1477_v42 }
 0x43c   :  { %2179 = vst [vmem:[#allocation7 + $0x1c0] sm:$0xff] %v2115_v39  ;;  %v2117_v61 = vmul.f32 0.25, %v1925_v1 }
 0x43d   :  { %2180 = vst [vmem:[#allocation7 + $0x1c8] sm:$0xff] %v2116_v26  ;;  %v2118_v54 = vmul.f32 0.25, %v1926_v45 }
 0x43e   :  { %2181 = vst [vmem:[#allocation7 + $0x1d0] sm:$0xff] %v2117_v61 }
 0x43f   :  { %2182 = vst [vmem:[#allocation7 + $0x1d8] sm:$0xff] %v2118_v54  ;;  %v1858_v15 = vpop.f32.mrb[92].mxu0 }
 0x440   :  { %v1927_v8 = vadd.f32 %v1858_v15, %v1478_v51  ;;  %v1860_v19 = vpop.f32.mrb[93].mxu0 }
 0x441   :  { %v1928_v63 = vadd.f32 %v1860_v19, %v1479_v12  ;;  %v1862_v13 = vpop.f32.mrb[94].mxu0 }
 0x442   :  { %v2119_v17 = vmul.f32 0.25, %v1927_v8  ;;  %v1929_v47 = vadd.f32 %v1862_v13, %v1480_v10  ;;  %v1864_v23 = vpop.f32.mrb[95].mxu0 }
 0x443   :  { %v2120_v58 = vmul.f32 0.25, %v1928_v63  ;;  %v1930_v52 = vadd.f32 %v1864_v23, %v1481_v11 }
 0x444   :  { %2183 = vst [vmem:[#allocation7 + $0x1e0] sm:$0xff] %v2119_v17  ;;  %v2121_v40 = vmul.f32 0.25, %v1929_v47 }
 0x445   :  { %2184 = vst [vmem:[#allocation7 + $0x1e8] sm:$0xff] %v2120_v58  ;;  %v2122_v32 = vmul.f32 0.25, %v1930_v52 }
 0x446   :  { %2185 = vst [vmem:[#allocation7 + $0x1f0] sm:$0xff] %v2121_v40 }
 0x447   :  { %2186 = vst [vmem:[#allocation7 + $0x1f8] sm:$0xff] %v2122_v32 }
 0x448   :  { %2491 = shalt.err (!%p2488_p6)
}
 0x449   :  { %s2492_s12 = scalar_lea.hbm %s3388_s2, 8192 }
 0x44a   :  { %p2493_p7 = scmp.ne.s32.totalorder %s3388_s2, %s2492_s12  ;;  %p2496_p8 = scmp.lt.u32.totalorder %s2492_s12, %s3388_s2 }
 0x44c   :  { %p2498_p9 = pnand %p2496_p8, %p2493_p7 }
 0x44e   :  { %2501 = shalt.err (!%p2498_p9)
}
 0x44f   :  { %2198 = dma.vmem_to_hbm [thread:$0]  %s2193_s8, 8192, %s3388_s2, [#allocation4], %s2512_s0, %s2512_s0, %s2513_s5  }
 0x450   :  { %2506 = dma.done.wait [#allocation4], 8192  }
 0x451   :  { %2507 = vsyncadd [#allocation4], 4294959104 }
 0x452   :  { %2202 = vsyncpa [#allocation3], 1 }
 0x453   :  { %2203 = vsyncpa [#allocation6], 1 }
 0x454   :  { %2204 = vsyncpa [#allocation4], 1 }

// kernel: tpu_custom_call.1
= control target key start
LH: loop header
LB: loop body
LE: loop exit
PB: predicated region body
PF: predicated region fallthrough
CT: control target
= control target key end

     0   :  { %7 = vsyncpa [#allocation3], 0  ;;  %s3386_s0 = inlined_call_operand.hbm [shape: bf16[256,256], index: 0, kind: input, shape index: {}]   ;;  %s3387_s1 = inlined_call_operand.hbm [shape: f32[256,256], index: 1, kind: input, shape index: {}]   ;;  %s3388_s2 = inlined_call_operand.hbm [shape: f32[256,256], index: 2, kind: output, shape index: {}]  }
   0x1   :  { %8 = vsyncpa [#allocation6], 0 }
   0x2   :  { %9 = vsyncpa [#allocation4], 0  ;;  %s2508_s9 = smov [#allocation2]   ;;  %s2436_s13 = scalar_lea.hbm %s3386_s0, 4096 }
   0x3   :  { %s15_s10 = sshll.u32 %s2508_s9, 4  ;;  %p2437_p0 = scmp.ne.s32.totalorder %s3386_s0, %s2436_s13  ;;  %s16_s10 = int_to_ptr.vmem [resolvable:$true] %s15_s10 }
   0x4   :  { %p2440_p1 = scmp.lt.u32.totalorder %s2436_s13, %s3386_s0 }
   0x6   :  { %p2442_p2 = pnand %p2440_p1, %p2437_p0 }
   0x8   :  { %2445 = shalt.err (!%p2442_p2)
}
   0x9   :  { %s2446_s18 = scalar_lea.vmem %s16_s10, 4096  ;;  %p2451_p4 = scmp.lt.s32.totalorder %s16_s10, %s16_s10 }
   0xa   :  { %p2447_p3 = scmp.ne.s32.totalorder %s16_s10, %s2446_s18  ;;  %p2452_p5 = scmp.lt.s32.totalorder %s2446_s18, %s2446_s18 }
   0xc   :  { %p2453_p6 = por %p2452_p5, %p2451_p4 }
   0xe   :  { %p2454_p7 = pnand %p2453_p6, %p2447_p3 }
  0x10   :  { %2457 = shalt.err (!%p2454_p7)
}
  0x11   :  { %s2509_s19 = smov 128   ;;  %s2510_s20 = smov 8  }
  0x12   :  { %21 = dma.hbm_to_vmem [thread:$0]  %s3386_s0, 4096, %s16_s10, [#allocation3], %s2509_s19, %s2509_s19, %s2510_s20  }
  0x13   :  { %s2511_s23 = smov [#allocation5]   ;;  %s2458_s27 = scalar_lea.hbm %s3387_s1, 8192 }
  0x14   :  { %s27_s24 = sshll.u32 %s2511_s23, 4  ;;  %p2459_p8 = scmp.ne.s32.totalorder %s3387_s1, %s2458_s27  ;;  %s28_s24 = int_to_ptr.vmem [resolvable:$true] %s27_s24 }
  0x15   :  { %p2462_p9 = scmp.lt.u32.totalorder %s2458_s27, %s3387_s1 }
  0x17   :  { %p2464_p10 = pnand %p2462_p9, %p2459_p8 }
  0x19   :  { %2467 = shalt.err (!%p2464_p10)
}
  0x1a   :  { %s2468_s4 = scalar_lea.vmem %s28_s24, 8192  ;;  %p2473_p12 = scmp.lt.s32.totalorder %s28_s24, %s28_s24 }
  0x1b   :  { %p2469_p11 = scmp.ne.s32.totalorder %s28_s24, %s2468_s4  ;;  %p2474_p13 = scmp.lt.s32.totalorder %s2468_s4, %s2468_s4 }
  0x1d   :  { %p2475_p0 = por %p2474_p13, %p2473_p12 }
  0x1f   :  { %p2476_p1 = pnand %p2475_p0, %p2469_p11 }
  0x21   :  { %2479 = shalt.err (!%p2476_p1)
}
  0x22   :  { %s2512_s0 = smov 256   ;;  %s2513_s5 = smov 16  }
  0x23   :  { %33 = dma.hbm_to_vmem [thread:$0]  %s3387_s1, 8192, %s28_s24, [#allocation6], %s2512_s0, %s2512_s0, %s2513_s5  }
  0x24   :  { %2502 = dma.done.wait [#allocation3], 4096  }
  0x25   :  { %2503 = vsyncadd [#allocation3], 4294963200 }
  0x26   :  { %2504 = dma.done.wait [#allocation6], 8192  }
  0x27   :  { %2505 = vsyncadd [#allocation6], 4294959104  ;;  %v2557_v0 = vld [vmem:[#allocation5 + $0x8] sm:$0xff]  ;;  %v2559_v1 = vld [vmem:[#allocation5 + $0x18] sm:$0xff]  ;;  %s2514_s1 = smov [#allocation7]  }
  0x28   :  { %3498 = vst [vmem:[#allocation11_spill] sm:$0xff] %v2557_v0  ;;  %3499 = vst [vmem:[#allocation12_spill] sm:$0xff] %v2559_v1  ;;  %v2561_v2 = vld [vmem:[#allocation5] sm:$0xff]  ;;  %v169_v3 = vpack.c.bf16 %v2559_v1, %v2557_v0  ;;  %v2565_v4 = vld [vmem:[#allocation5 + $0x10] sm:$0xff]  ;;  %s2192_s8 = sshll.u32 %s2514_s1, 4  ;;  %s2193_s8 = int_to_ptr.vmem [resolvable:$true] %s2192_s8 }
  0x29   :  { %3500 = vst [vmem:[#allocation13_spill] sm:$0xff] %v2561_v2  ;;  %3501 = vst [vmem:[#allocation14_spill] sm:$0xff] %v2565_v4  ;;  %v2567_v5 = vld [vmem:[#allocation5 + $0x28] sm:$0xff]  ;;  %v2569_v6 = vld [vmem:[#allocation5 + $0x38] sm:$0xff]  ;;  %v168_v7 = vpack.c.bf16 %v2565_v4, %v2561_v2  ;;  %s2480_s9 = scalar_lea.vmem %s2193_s8, 8192  ;;  %p2485_p3 = scmp.lt.s32.totalorder %s2193_s8, %s2193_s8 }
  0x2a   :  { %3502 = vst [vmem:[#allocation15_spill] sm:$0xff] %v2567_v5  ;;  %3503 = vst [vmem:[#allocation16_spill] sm:$0xff] %v2569_v6  ;;  %v171_v8 = vpack.c.bf16 %v2569_v6, %v2567_v5  ;;  %v2575_v9 = vld [vmem:[#allocation5 + $0x20] sm:$0xff]  ;;  %v2577_v10 = vld [vmem:[#allocation5 + $0x30] sm:$0xff]  ;;  %392 = vmatprep.subr.bf16.mxu0 %v169_v3  ;;  %2301 = vmatprep.subr.bf16.mxu1 %v169_v3  ;;  %p2481_p2 = scmp.ne.s32.totalorder %s2193_s8, %s2480_s9  ;;  %p2486_p4 = scmp.lt.s32.totalorder %s2480_s9, %s2480_s9 }
  0x2b   :  { %3504 = vst [vmem:[#allocation17_spill] sm:$0xff] %v2575_v9  ;;  %3505 = vst [vmem:[#allocation18_spill] sm:$0xff] %v2577_v10  ;;  %v2579_v11 = vld [vmem:[#allocation5 + $0x48] sm:$0xff]  ;;  %v2581_v12 = vld [vmem:[#allocation5 + $0x58] sm:$0xff]  ;;  %393 = vmatpush1.bf16.msra.mxu0 %v168_v7  ;;  %v170_v13 = vpack.c.bf16 %v2577_v10, %v2575_v9  ;;  %2317 = vmatpush1.bf16.msra.mxu1 %v168_v7 }
  0x2c   :  { %3506 = vst [vmem:[#allocation19_spill] sm:$0xff] %v2579_v11  ;;  %3507 = vst [vmem:[#allocation20_spill] sm:$0xff] %v2581_v12  ;;  %394 = vmatprep.subr.bf16.mxu0 %v171_v8  ;;  %v173_v14 = vpack.c.bf16 %v2581_v12, %v2579_v11  ;;  %v2587_v15 = vld [vmem:[#allocation5 + $0x40] sm:$0xff]  ;;  %v2589_v16 = vld [vmem:[#allocation5 + $0x50] sm:$0xff]  ;;  %2302 = vmatprep.subr.bf16.mxu1 %v171_v8  ;;  %p2487_p5 = por %p2486_p4, %p2485_p3 }
  0x2d   :  { %3508 = vst [vmem:[#allocation21_spill] sm:$0xff] %v2587_v15  ;;  %3509 = vst [vmem:[#allocation22_spill] sm:$0xff] %v2589_v16  ;;  %v2591_v17 = vld [vmem:[#allocation5 + $0x68] sm:$0xff]  ;;  %v2593_v18 = vld [vmem:[#allocation5 + $0x78] sm:$0xff]  ;;  %v172_v19 = vpack.c.bf16 %v2589_v16, %v2587_v15 }
  0x2e   :  { %3510 = vst [vmem:[#allocation23_spill] sm:$0xff] %v2591_v17  ;;  %3511 = vst [vmem:[#allocation24_spill] sm:$0xff] %v2593_v18  ;;  %v175_v20 = vpack.c.bf16 %v2593_v18, %v2591_v17  ;;  %v2599_v21 = vld [vmem:[#allocation5 + $0x60] sm:$0xff]  ;;  %v2601_v22 = vld [vmem:[#allocation5 + $0x70] sm:$0xff]  ;;  %p2488_p6 = pnand %p2487_p5, %p2481_p2 }
  0x2f   :  { %395 = vmatpush1.bf16.msra.mxu0 %v170_v13  ;;  %2318 = vmatpush1.bf16.msra.mxu1 %v170_v13  ;;  %3512 = vst [vmem:[#allocation25_spill] sm:$0xff] %v2599_v21  ;;  %3513 = vst [vmem:[#allocation26_spill] sm:$0xff] %v2601_v22  ;;  %v2603_v23 = vld [vmem:[#allocation5 + $0x88] sm:$0xff]  ;;  %v2605_v24 = vld [vmem:[#allocation5 + $0x98] sm:$0xff]  ;;  %v174_v25 = vpack.c.bf16 %v2601_v22, %v2599_v21 }
  0x30   :  { %396 = vmatprep.subr.bf16.mxu0 %v173_v14  ;;  %2303 = vmatprep.subr.bf16.mxu1 %v173_v14  ;;  %3514 = vst [vmem:[#allocation27_spill] sm:$0xff] %v2603_v23  ;;  %3515 = vst [vmem:[#allocation28_spill] sm:$0xff] %v2605_v24  ;;  %v177_v26 = vpack.c.bf16 %v2605_v24, %v2603_v23  ;;  %v2611_v27 = vld [vmem:[#allocation5 + $0x80] sm:$0xff]  ;;  %v2613_v28 = vld [vmem:[#allocation5 + $0x90] sm:$0xff] }
  0x31   :  { %3516 = vst [vmem:[#allocation29_spill] sm:$0xff] %v2611_v27  ;;  %3517 = vst [vmem:[#allocation30_spill] sm:$0xff] %v2613_v28  ;;  %v2615_v29 = vld [vmem:[#allocation5 + $0xa8] sm:$0xff]  ;;  %v2617_v30 = vld [vmem:[#allocation5 + $0xb8] sm:$0xff]  ;;  %v176_v31 = vpack.c.bf16 %v2613_v28, %v2611_v27 }
  0x32   :  { %3518 = vst [vmem:[#allocation31_spill] sm:$0xff] %v2615_v29  ;;  %3519 = vst [vmem:[#allocation32_spill] sm:$0xff] %v2617_v30  ;;  %v179_v32 = vpack.c.bf16 %v2617_v30, %v2615_v29  ;;  %v2623_v33 = vld [vmem:[#allocation5 + $0xa0] sm:$0xff]  ;;  %v2625_v34 = vld [vmem:[#allocation5 + $0xb0] sm:$0xff] }
  0x33   :  { %397 = vmatpush1.bf16.msra.mxu0 %v172_v19  ;;  %2319 = vmatpush1.bf16.msra.mxu1 %v172_v19  ;;  %3520 = vst [vmem:[#allocation33_spill] sm:$0xff] %v2623_v33  ;;  %3521 = vst [vmem:[#allocation34_spill] sm:$0xff] %v2625_v34  ;;  %v2627_v35 = vld [vmem:[#allocation5 + $0xc8] sm:$0xff]  ;;  %v2629_v36 = vld [vmem:[#allocation5 + $0xd8] sm:$0xff]  ;;  %v178_v37 = vpack.c.bf16 %v2625_v34, %v2623_v33 }
  0x34   :  { %398 = vmatprep.subr.bf16.mxu0 %v175_v20  ;;  %2304 = vmatprep.subr.bf16.mxu1 %v175_v20  ;;  %3522 = vst [vmem:[#allocation35_spill] sm:$0xff] %v2627_v35  ;;  %3523 = vst [vmem:[#allocation36_spill] sm:$0xff] %v2629_v36  ;;  %v2633_v38 = vld [vmem:[#allocation5 + $0xc0] sm:$0xff]  ;;  %v2635_v39 = vld [vmem:[#allocation5 + $0xd0] sm:$0xff]  ;;  %v181_v40 = vpack.c.bf16 %v2629_v36, %v2627_v35 }
  0x35   :  { %3524 = vst [vmem:[#allocation37_spill] sm:$0xff] %v2633_v38  ;;  %3525 = vst [vmem:[#allocation38_spill] sm:$0xff] %v2635_v39  ;;  %v2639_v41 = vld [vmem:[#allocation5 + $0xe8] sm:$0xff]  ;;  %v2641_v42 = vld [vmem:[#allocation5 + $0xf8] sm:$0xff]  ;;  %v180_v44 = vpack.c.bf16 %v2635_v39, %v2633_v38 }
  0x36   :  { %3526 = vst [vmem:[#allocation39_spill] sm:$0xff] %v2639_v41  ;;  %3527 = vst [vmem:[#allocation40_spill] sm:$0xff] %v2641_v42  ;;  %v2643_v43 = vld [vmem:[#allocation2 + $0x4] ss:$8 sps:$4 sm:$0xff]   ;;  %v183_v46 = vpack.c.bf16 %v2641_v42, %v2639_v41  ;;  %v2651_v47 = vld [vmem:[#allocation5 + $0xf0] sm:$0xff] }
  0x37   :  { %399 = vmatpush1.bf16.msra.mxu0 %v174_v25  ;;  %2320 = vmatpush1.bf16.msra.mxu1 %v174_v25  ;;  %v2647_v45 = vld [vmem:[#allocation5 + $0xe0] sm:$0xff]  ;;  %3529 = vst [vmem:[#allocation42_spill] sm:$0xff] %v2651_v47  ;;  %v2653_v48 = vld [vmem:[#allocation5 + $0x108] sm:$0xff]  ;;  %v2655_v49 = vld [vmem:[#allocation5 + $0x118] sm:$0xff] }
  0x38   :  { %400 = vmatprep.subr.bf16.mxu0 %v177_v26  ;;  %2305 = vmatprep.subr.bf16.mxu1 %v177_v26  ;;  %3528 = vst [vmem:[#allocation41_spill] sm:$0xff] %v2647_v45  ;;  %3530 = vst [vmem:[#allocation43_spill] sm:$0xff] %v2653_v48  ;;  %v2658_v50 = vld [vmem:[#allocation2 + $0x84] ss:$8 sps:$4 sm:$0xff]   ;;  %v182_v51 = vpack.c.bf16 %v2651_v47, %v2647_v45  ;;  %v185_v53 = vpack.c.bf16 %v2655_v49, %v2653_v48  ;;  %v2666_v54 = vld [vmem:[#allocation5 + $0x110] sm:$0xff] }
  0x39   :  { %3531 = vst [vmem:[#allocation44_spill] sm:$0xff] %v2655_v49  ;;  %424 = vmatprep.mubr.bf16.mxu0 %v2643_v43  ;;  %v2662_v52 = vld [vmem:[#allocation5 + $0x100] sm:$0xff]  ;;  %3533 = vst [vmem:[#allocation46_spill] sm:$0xff] %v2666_v54  ;;  %v2668_v55 = vld [vmem:[#allocation5 + $0x128] sm:$0xff]  ;;  %504 = vmatprep.mubr.bf16.mxu1 %v2658_v50 }
  0x3a   :  { %3532 = vst [vmem:[#allocation45_spill] sm:$0xff] %v2662_v52  ;;  %3534 = vst [vmem:[#allocation47_spill] sm:$0xff] %v2668_v55  ;;  %v2670_v56 = vld [vmem:[#allocation5 + $0x138] sm:$0xff]  ;;  %v184_v57 = vpack.c.bf16 %v2666_v54, %v2662_v52  ;;  %v2675_v58 = vld [vmem:[#allocation5 + $0x120] sm:$0xff] }
  0x3b   :  { %401 = vmatpush1.bf16.msra.mxu0 %v176_v31  ;;  %2321 = vmatpush1.bf16.msra.mxu1 %v176_v31  ;;  %3535 = vst [vmem:[#allocation48_spill] sm:$0xff] %v2670_v56  ;;  %3536 = vst [vmem:[#allocation49_spill] sm:$0xff] %v2675_v58  ;;  %v187_v59 = vpack.c.bf16 %v2670_v56, %v2668_v55  ;;  %v2679_v60 = vld [vmem:[#allocation5 + $0x130] sm:$0xff]  ;;  %v2681_v61 = vld [vmem:[#allocation5 + $0x148] sm:$0xff] }
  0x3c   :  { %402 = vmatprep.subr.bf16.mxu0 %v179_v32  ;;  %2306 = vmatprep.subr.bf16.mxu1 %v179_v32  ;;  %3537 = vst [vmem:[#allocation50_spill] sm:$0xff] %v2679_v60  ;;  %3538 = vst [vmem:[#allocation51_spill] sm:$0xff] %v2681_v61  ;;  %v2683_v62 = vld [vmem:[#allocation5 + $0x158] sm:$0xff]  ;;  %v186_v63 = vpack.c.bf16 %v2679_v60, %v2675_v58  ;;  %v2687_v3 = vld [vmem:[#allocation5 + $0x140] sm:$0xff] }
  0x3d   :  { %3539 = vst [vmem:[#allocation52_spill] sm:$0xff] %v2683_v62  ;;  %3540 = vst [vmem:[#allocation53_spill] sm:$0xff] %v2687_v3  ;;  %v189_v7 = vpack.c.bf16 %v2683_v62, %v2681_v61  ;;  %v2691_v8 = vld [vmem:[#allocation5 + $0x150] sm:$0xff]  ;;  %v2693_v13 = vld [vmem:[#allocation5 + $0x168] sm:$0xff] }
  0x3e   :  { %3541 = vst [vmem:[#allocation54_spill] sm:$0xff] %v2691_v8  ;;  %3542 = vst [vmem:[#allocation55_spill] sm:$0xff] %v2693_v13  ;;  %v2695_v14 = vld [vmem:[#allocation5 + $0x178] sm:$0xff]  ;;  %v188_v19 = vpack.c.bf16 %v2691_v8, %v2687_v3  ;;  %v2699_v20 = vld [vmem:[#allocation5 + $0x160] sm:$0xff] }
  0x3f   :  { %403 = vmatpush1.bf16.msra.mxu0 %v178_v37  ;;  %2322 = vmatpush1.bf16.msra.mxu1 %v178_v37  ;;  %3543 = vst [vmem:[#allocation56_spill] sm:$0xff] %v2695_v14  ;;  %3544 = vst [vmem:[#allocation57_spill] sm:$0xff] %v2699_v20  ;;  %v191_v25 = vpack.c.bf16 %v2695_v14, %v2693_v13  ;;  %v2703_v26 = vld [vmem:[#allocation5 + $0x170] sm:$0xff]  ;;  %v2705_v31 = vld [vmem:[#allocation5 + $0x188] sm:$0xff] }
  0x40   :  { %404 = vmatprep.subr.bf16.mxu0 %v181_v40  ;;  %2307 = vmatprep.subr.bf16.mxu1 %v181_v40  ;;  %3545 = vst [vmem:[#allocation58_spill] sm:$0xff] %v2703_v26  ;;  %3546 = vst [vmem:[#allocation59_spill] sm:$0xff] %v2705_v31  ;;  %v2707_v32 = vld [vmem:[#allocation5 + $0x198] sm:$0xff]  ;;  %v2709_v37 = vld [vmem:[#allocation5 + $0x180] sm:$0xff] }
  0x41   :  { %3547 = vst [vmem:[#allocation60_spill] sm:$0xff] %v2707_v32  ;;  %3548 = vst [vmem:[#allocation61_spill] sm:$0xff] %v2709_v37  ;;  %v2711_v40 = vld [vmem:[#allocation5 + $0x190] sm:$0xff]  ;;  %v2729_v14 = vld [vmem:[#allocation5 + $0x1d8] sm:$0xff] }
  0x42   :  { %3549 = vst [vmem:[#allocation62_spill] sm:$0xff] %v2711_v40  ;;  %3555 = vst [vmem:[#allocation68_spill] sm:$0xff] %v2729_v14  ;;  %v2803_v13 = vld [vmem:[#allocation2 + $0x40] ss:$8 sps:$4 sm:$0xff]   ;;  %v2807_v62 = vld [vmem:[#allocation2 + $0x54] ss:$8 sps:$4 sm:$0xff]  }
  0x43   :  { %405 = vmatpush1.bf16.msra.mxu0 %v180_v44  ;;  %2323 = vmatpush1.bf16.msra.mxu1 %v180_v44  ;;  %v190_v44 = vpack.c.bf16 %v2703_v26, %v2699_v20  ;;  %v2797_v26 = vld [vmem:[#allocation2 + $0xc4] ss:$8 sps:$4 sm:$0xff]   ;;  %v2805_v20 = vld [vmem:[#allocation2 + $0xc0] ss:$8 sps:$4 sm:$0xff]   ;;  %v2809_v8 = vld [vmem:[#allocation2 + $0xd4] ss:$8 sps:$4 sm:$0xff]  }
  0x44   :  { %406 = vmatprep.subr.bf16.mxu0 %v183_v46  ;;  %2308 = vmatprep.subr.bf16.mxu1 %v183_v46  ;;  %v2715_v46 = vld [vmem:[#allocation5 + $0x1a8] sm:$0xff]  ;;  %v2815_v61 = vld [vmem:[#allocation2 + $0x50] ss:$8 sps:$4 sm:$0xff]   ;;  %v2831_v49 = vld [vmem:[#allocation2 + $0x74] ss:$8 sps:$4 sm:$0xff]  }
  0x45   :  { %3550 = vst [vmem:[#allocation63_spill] sm:$0xff] %v2715_v46  ;;  %v2817_v3 = vld [vmem:[#allocation2 + $0xd0] ss:$8 sps:$4 sm:$0xff]   ;;  %v2819_v56 = vld [vmem:[#allocation2 + $0x64] ss:$8 sps:$4 sm:$0xff]  }
  0x46   :  { %v2821_v60 = vld [vmem:[#allocation2 + $0xe4] ss:$8 sps:$4 sm:$0xff]   ;;  %v2827_v55 = vld [vmem:[#allocation2 + $0x60] ss:$8 sps:$4 sm:$0xff]   ;;  %v2833_v54 = vld [vmem:[#allocation2 + $0xf4] ss:$8 sps:$4 sm:$0xff]  }
  0x47   :  { %407 = vmatpush1.bf16.msra.mxu0 %v182_v51  ;;  %2324 = vmatpush1.bf16.msra.mxu1 %v182_v51  ;;  %v2717_v51 = vld [vmem:[#allocation5 + $0x1b8] sm:$0xff]  ;;  %v2829_v58 = vld [vmem:[#allocation2 + $0xe0] ss:$8 sps:$4 sm:$0xff]   ;;  %3562 = vst [vmem:[#allocation75_spill] sm:$0xff] %v2833_v54 }
  0x48   :  { %408 = vmatprep.subr.bf16.mxu0 %v185_v53  ;;  %2309 = vmatprep.subr.bf16.mxu1 %v185_v53  ;;  %3551 = vst [vmem:[#allocation64_spill] sm:$0xff] %v2717_v51  ;;  %v193_v53 = vpack.c.bf16 %v2707_v32, %v2705_v31  ;;  %v2739_v31 = vld [vmem:[#allocation5 + $0x1d0] sm:$0xff] }
  0x49   :  { %3557 = vst [vmem:[#allocation70_spill] sm:$0xff] %v2739_v31  ;;  %v2839_v48 = vld [vmem:[#allocation2 + $0x70] ss:$8 sps:$4 sm:$0xff]  }
  0x4a   :  { %v2841_v52 = vld [vmem:[#allocation2 + $0xf0] ss:$8 sps:$4 sm:$0xff]  }
  0x4b   :  { %409 = vmatpush1.bf16.msra.mxu0 %v184_v57  ;;  %2325 = vmatpush1.bf16.msra.mxu1 %v184_v57  ;;  %v2721_v57 = vld [vmem:[#allocation5 + $0x1a0] sm:$0xff]  ;;  %3563 = vst [vmem:[#allocation76_spill] sm:$0xff] %v2841_v52 }
  0x4c   :  { %410 = vmatprep.subr.bf16.mxu0 %v187_v59  ;;  %2310 = vmatprep.subr.bf16.mxu1 %v187_v59  ;;  %3552 = vst [vmem:[#allocation65_spill] sm:$0xff] %v2721_v57  ;;  %v2723_v59 = vld [vmem:[#allocation5 + $0x1b0] sm:$0xff] }
  0x4d   :  { %3553 = vst [vmem:[#allocation66_spill] sm:$0xff] %v2723_v59 }
  0x4f   :  { %411 = vmatpush1.bf16.msra.mxu0 %v186_v63  ;;  %2326 = vmatpush1.bf16.msra.mxu1 %v186_v63  ;;  %v192_v63 = vpack.c.bf16 %v2711_v40, %v2709_v37  ;;  %v2737_v40 = vld [vmem:[#allocation5 + $0x1c0] sm:$0xff]  ;;  %v2743_v37 = vld [vmem:[#allocation5 + $0x1f8] sm:$0xff] }
  0x50   :  { %412 = vmatprep.subr.bf16.mxu0 %v189_v7  ;;  %2311 = vmatprep.subr.bf16.mxu1 %v189_v7  ;;  %v2727_v7 = vld [vmem:[#allocation5 + $0x1c8] sm:$0xff]  ;;  %3556 = vst [vmem:[#allocation69_spill] sm:$0xff] %v2737_v40  ;;  %3559 = vst [vmem:[#allocation72_spill] sm:$0xff] %v2743_v37 }
  0x51   :  { %3554 = vst [vmem:[#allocation67_spill] sm:$0xff] %v2727_v7  ;;  %v197_v32 = vpack.c.bf16 %v2729_v14, %v2727_v7  ;;  %v2751_v14 = vld [vmem:[#allocation5 + $0x1f0] sm:$0xff]  ;;  %v2755_v7 = vld [vmem:[#allocation2] ss:$8 sps:$4 sm:$0xff]  }
  0x52   :  { %3561 = vst [vmem:[#allocation74_spill] sm:$0xff] %v2751_v14 }
  0x53   :  { %413 = vmatpush1.bf16.msra.mxu0 %v188_v19  ;;  %2327 = vmatpush1.bf16.msra.mxu1 %v188_v19  ;;  %v195_v19 = vpack.c.bf16 %v2717_v51, %v2715_v46  ;;  %v2749_v51 = vld [vmem:[#allocation5 + $0x1e0] sm:$0xff]  ;;  %v2793_v46 = vld [vmem:[#allocation2 + $0xb0] ss:$8 sps:$4 sm:$0xff]  }
  0x54   :  { %414 = vmatprep.subr.bf16.mxu0 %v191_v25  ;;  %2312 = vmatprep.subr.bf16.mxu1 %v191_v25  ;;  %v194_v25 = vpack.c.bf16 %v2723_v59, %v2721_v57  ;;  %3560 = vst [vmem:[#allocation73_spill] sm:$0xff] %v2749_v51  ;;  %v2791_v59 = vld [vmem:[#allocation2 + $0x30] ss:$8 sps:$4 sm:$0xff]   ;;  %v2795_v57 = vld [vmem:[#allocation2 + $0x44] ss:$8 sps:$4 sm:$0xff]  }
  0x57   :  { %415 = vmatpush1.bf16.msra.mxu0 %v190_v44  ;;  %2328 = vmatpush1.bf16.msra.mxu1 %v190_v44  ;;  %v2741_v44 = vld [vmem:[#allocation5 + $0x1e8] sm:$0xff] }
  0x58   :  { %416 = vmatprep.subr.bf16.mxu0 %v193_v53  ;;  %2313 = vmatprep.subr.bf16.mxu1 %v193_v53  ;;  %3558 = vst [vmem:[#allocation71_spill] sm:$0xff] %v2741_v44  ;;  %v196_v53 = vpack.c.bf16 %v2739_v31, %v2737_v40  ;;  %v2757_v31 = vld [vmem:[#allocation2 + $0x80] ss:$8 sps:$4 sm:$0xff]   ;;  %v2785_v40 = vld [vmem:[#allocation2 + $0xb4] ss:$8 sps:$4 sm:$0xff]  }
  0x5b   :  { %417 = vmatpush1.bf16.msra.mxu0 %v192_v63  ;;  %2329 = vmatpush1.bf16.msra.mxu1 %v192_v63  ;;  %v199_v63 = vpack.c.bf16 %v2743_v37, %v2741_v44  ;;  %v2761_v37 = vld [vmem:[#allocation2 + $0x94] ss:$8 sps:$4 sm:$0xff]   ;;  %v2781_v44 = vld [vmem:[#allocation2 + $0xa0] ss:$8 sps:$4 sm:$0xff]  }
  0x5c   :  { %418 = vmatprep.subr.bf16.mxu0 %v195_v19  ;;  %2314 = vmatprep.subr.bf16.mxu1 %v195_v19  ;;  %v198_v19 = vpack.c.bf16 %v2751_v14, %v2749_v51  ;;  %v2773_v14 = vld [vmem:[#allocation2 + $0xa4] ss:$8 sps:$4 sm:$0xff]   ;;  %v2783_v51 = vld [vmem:[#allocation2 + $0x34] ss:$8 sps:$4 sm:$0xff]  }
  0x5f   :  { %419 = vmatpush1.bf16.msra.mxu0 %v194_v25  ;;  %2330 = vmatpush1.bf16.msra.mxu1 %v194_v25  ;;  %v2759_v25 = vld [vmem:[#allocation2 + $0x14] ss:$8 sps:$4 sm:$0xff]  }
  0x60   :  { %420 = vmatprep.subr.bf16.mxu0 %v197_v32  ;;  %2315 = vmatprep.subr.bf16.mxu1 %v197_v32  ;;  %v2767_v32 = vld [vmem:[#allocation2 + $0x10] ss:$8 sps:$4 sm:$0xff]  }
  0x63   :  { %421 = vmatpush1.bf16.msra.mxu0 %v196_v53  ;;  %2331 = vmatpush1.bf16.msra.mxu1 %v196_v53  ;;  %v2769_v53 = vld [vmem:[#allocation2 + $0x90] ss:$8 sps:$4 sm:$0xff]  }
  0x64   :  { %422 = vmatprep.subr.bf16.mxu0 %v199_v63  ;;  %2316 = vmatprep.subr.bf16.mxu1 %v199_v63  ;;  %v2771_v63 = vld [vmem:[#allocation2 + $0x24] ss:$8 sps:$4 sm:$0xff]  }
  0x67   :  { %423 = vmatpush1.bf16.msra.mxu0 %v198_v19  ;;  %2332 = vmatpush1.bf16.msra.mxu1 %v198_v19  ;;  %v2779_v19 = vld [vmem:[#allocation2 + $0x20] ss:$8 sps:$4 sm:$0xff]  }
  0x6a   :  { %425 = vmatmul.mubr.bf16.vlgmr.msra.gmra.mrb[0].mxu0 %v2755_v7  ;;  %505 = vmatmul.mubr.bf16.vlgmr.msra.gmra.mrb[0].mxu1 %v2757_v31 }
  0x6b   :  { %434 = vmatprep.mubr.bf16.mxu0 %v2759_v25  ;;  %514 = vmatprep.mubr.bf16.mxu1 %v2761_v37 }
  0x72   :  { %435 = vmatmul.mubr.bf16.gmra.mrb[4].mxu0 %v2767_v32  ;;  %515 = vmatmul.mubr.bf16.gmra.mrb[4].mxu1 %v2769_v53 }
  0x73   :  { %444 = vmatprep.mubr.bf16.mxu0 %v2771_v63  ;;  %524 = vmatprep.mubr.bf16.mxu1 %v2773_v14 }
  0x7a   :  { %445 = vmatmul.mubr.bf16.gmra.mrb[8].mxu0 %v2779_v19  ;;  %525 = vmatmul.mubr.bf16.gmra.mrb[8].mxu1 %v2781_v44 }
  0x7b   :  { %454 = vmatprep.mubr.bf16.mxu0 %v2783_v51  ;;  %534 = vmatprep.mubr.bf16.mxu1 %v2785_v40 }
  0x82   :  { %455 = vmatmul.mubr.bf16.gmra.mrb[12].mxu0 %v2791_v59  ;;  %535 = vmatmul.mubr.bf16.gmra.mrb[12].mxu1 %v2793_v46 }
  0x83   :  { %464 = vmatprep.mubr.bf16.mxu0 %v2795_v57  ;;  %544 = vmatprep.mubr.bf16.mxu1 %v2797_v26 }
  0x8a   :  { %465 = vmatmul.mubr.bf16.gmra.mrb[16].mxu0 %v2803_v13  ;;  %545 = vmatmul.mubr.bf16.gmra.mrb[16].mxu1 %v2805_v20 }
  0x8b   :  { %474 = vmatprep.mubr.bf16.mxu0 %v2807_v62  ;;  %554 = vmatprep.mubr.bf16.mxu1 %v2809_v8 }
  0x92   :  { %475 = vmatmul.mubr.bf16.gmra.mrb[20].mxu0 %v2815_v61  ;;  %555 = vmatmul.mubr.bf16.gmra.mrb[20].mxu1 %v2817_v3 }
  0x93   :  { %484 = vmatprep.mubr.bf16.mxu0 %v2819_v56  ;;  %564 = vmatprep.mubr.bf16.mxu1 %v2821_v60 }
  0x9a   :  { %485 = vmatmul.mubr.bf16.gmra.mrb[24].mxu0 %v2827_v55  ;;  %565 = vmatmul.mubr.bf16.gmra.mrb[24].mxu1 %v2829_v58 }
  0x9b   :  { %494 = vmatprep.mubr.bf16.mxu0 %v2831_v49  ;;  %574 = vmatprep.mubr.bf16.mxu1 %v2833_v54 }
  0xa2   :  { %495 = vmatmul.mubr.bf16.gmra.mrb[28].mxu0 %v2839_v48  ;;  %575 = vmatmul.mubr.bf16.gmra.mrb[28].mxu1 %v2841_v52 }
  0xa3   :  { %1033 = vmatprep.mubr.bf16.mxu1 %v2643_v43 }
 0x13d   :  { %v2846_v42 = vpop.f32.mrb[0].mxu0  ;;  %v2848_v47 = vpop.f32.mrb[0].mxu1 }
 0x13e   :  { %3564 = vst [vmem:[#allocation77_spill] sm:$0xff] %v2846_v42  ;;  %v2850_v41 = vpop.f32.mrb[1].mxu0  ;;  %v2852_v45 = vpop.f32.mrb[1].mxu1 }
 0x13f   :  { %3565 = vst [vmem:[#allocation78_spill] sm:$0xff] %v2850_v41  ;;  %v2854_v36 = vpop.f32.mrb[2].mxu0  ;;  %v2856_v39 = vpop.f32.mrb[2].mxu1 }
 0x140   :  { %3566 = vst [vmem:[#allocation79_spill] sm:$0xff] %v2854_v36  ;;  %v777_v35 = vpack.c.bf16 %v2854_v36, %v2846_v42  ;;  %v2860_v38 = vpop.f32.mrb[3].mxu0  ;;  %v2864_v30 = vpop.f32.mrb[3].mxu1 }
 0x141   :  { %3567 = vst [vmem:[#allocation80_spill] sm:$0xff] %v2860_v38  ;;  %v778_v34 = vpack.c.bf16 %v2860_v38, %v2850_v41 }
 0x143   :  { %1001 = vmatprep.subr.bf16.mxu1 %v778_v34 }
 0x144   :  { %1002 = vmatpush1.bf16.msra.mxu1 %v777_v35 }
 0x145   :  { %v2870_v33 = vpop.f32.mrb[4].mxu0  ;;  %v2872_v24 = vpop.f32.mrb[4].mxu1 }
 0x146   :  { %3568 = vst [vmem:[#allocation81_spill] sm:$0xff] %v2870_v33  ;;  %v2874_v28 = vpop.f32.mrb[5].mxu0  ;;  %v2876_v23 = vpop.f32.mrb[5].mxu1 }
 0x147   :  { %3569 = vst [vmem:[#allocation82_spill] sm:$0xff] %v2874_v28  ;;  %v2878_v27 = vpop.f32.mrb[6].mxu0  ;;  %v2880_v43 = vpop.f32.mrb[6].mxu1 }
 0x148   :  { %3570 = vst [vmem:[#allocation83_spill] sm:$0xff] %v2878_v27  ;;  %v779_v18 = vpack.c.bf16 %v2878_v27, %v2870_v33  ;;  %v2884_v22 = vpop.f32.mrb[7].mxu0  ;;  %v2888_v35 = vpop.f32.mrb[7].mxu1 }
 0x149   :  { %3571 = vst [vmem:[#allocation84_spill] sm:$0xff] %v2884_v22  ;;  %v780_v29 = vpack.c.bf16 %v2884_v22, %v2874_v28 }
 0x14b   :  { %1003 = vmatprep.subr.bf16.mxu1 %v780_v29 }
 0x14c   :  { %1004 = vmatpush1.bf16.msra.mxu1 %v779_v18 }
 0x14d   :  { %v2894_v21 = vpop.f32.mrb[8].mxu0  ;;  %v2896_v12 = vpop.f32.mrb[8].mxu1 }
 0x14e   :  { %3572 = vst [vmem:[#allocation85_spill] sm:$0xff] %v2894_v21  ;;  %v2898_v16 = vpop.f32.mrb[9].mxu0  ;;  %v2900_v11 = vpop.f32.mrb[9].mxu1 }
 0x14f   :  { %3573 = vst [vmem:[#allocation86_spill] sm:$0xff] %v2898_v16  ;;  %v2902_v15 = vpop.f32.mrb[10].mxu0  ;;  %v2904_v34 = vpop.f32.mrb[10].mxu1 }
 0x150   :  { %3574 = vst [vmem:[#allocation87_spill] sm:$0xff] %v2902_v15  ;;  %v781_v22 = vpack.c.bf16 %v2902_v15, %v2894_v21  ;;  %v2908_v6 = vpop.f32.mrb[11].mxu0  ;;  %v2912_v29 = vpop.f32.mrb[11].mxu1 }
 0x151   :  { %3575 = vst [vmem:[#allocation88_spill] sm:$0xff] %v2908_v6  ;;  %v782_v17 = vpack.c.bf16 %v2908_v6, %v2898_v16 }
 0x153   :  { %1005 = vmatprep.subr.bf16.mxu1 %v782_v17 }
 0x154   :  { %1006 = vmatpush1.bf16.msra.mxu1 %v781_v22 }
 0x155   :  { %v2918_v10 = vpop.f32.mrb[12].mxu0  ;;  %v2920_v28 = vpop.f32.mrb[12].mxu1 }
 0x156   :  { %3576 = vst [vmem:[#allocation89_spill] sm:$0xff] %v2918_v10  ;;  %v2922_v15 = vpop.f32.mrb[13].mxu0  ;;  %v2924_v21 = vpop.f32.mrb[13].mxu1 }
 0x157   :  { %3577 = vst [vmem:[#allocation90_spill] sm:$0xff] %v2922_v15  ;;  %v2926_v5 = vpop.f32.mrb[14].mxu0  ;;  %v2928_v18 = vpop.f32.mrb[14].mxu1 }
 0x158   :  { %3578 = vst [vmem:[#allocation91_spill] sm:$0xff] %v2926_v5  ;;  %v783_v6 = vpack.c.bf16 %v2926_v5, %v2918_v10  ;;  %v2932_v16 = vpop.f32.mrb[15].mxu0  ;;  %v2936_v22 = vpop.f32.mrb[15].mxu1 }
 0x159   :  { %3579 = vst [vmem:[#allocation92_spill] sm:$0xff] %v2932_v16  ;;  %v784_v27 = vpack.c.bf16 %v2932_v16, %v2922_v15 }
 0x15b   :  { %1007 = vmatprep.subr.bf16.mxu1 %v784_v27 }
 0x15c   :  { %1008 = vmatpush1.bf16.msra.mxu1 %v783_v6 }
 0x15d   :  { %v2942_v9 = vpop.f32.mrb[16].mxu0  ;;  %v2944_v38 = vpop.f32.mrb[16].mxu1 }
 0x15e   :  { %3580 = vst [vmem:[#allocation93_spill] sm:$0xff] %v2942_v9  ;;  %3581 = vst [vmem:[#allocation94_spill] sm:$0xff] %v2944_v38  ;;  %v2946_v5 = vpop.f32.mrb[17].mxu0  ;;  %v2948_v10 = vpop.f32.mrb[17].mxu1 }
 0x15f   :  { %3582 = vst [vmem:[#allocation95_spill] sm:$0xff] %v2946_v5  ;;  %3583 = vst [vmem:[#allocation96_spill] sm:$0xff] %v2948_v10  ;;  %v2950_v1 = vpop.f32.mrb[18].mxu0  ;;  %v2952_v17 = vpop.f32.mrb[18].mxu1 }
 0x160   :  { %3584 = vst [vmem:[#allocation97_spill] sm:$0xff] %v2950_v1  ;;  %3585 = vst [vmem:[#allocation98_spill] sm:$0xff] %v2952_v17  ;;  %v785_v16 = vpack.c.bf16 %v2950_v1, %v2942_v9  ;;  %v2956_v15 = vpop.f32.mrb[19].mxu0  ;;  %v801_v6 = vpack.c.bf16 %v2952_v17, %v2944_v38  ;;  %v2960_v27 = vpop.f32.mrb[19].mxu1 }
 0x161   :  { %3586 = vst [vmem:[#allocation99_spill] sm:$0xff] %v2956_v15  ;;  %3587 = vst [vmem:[#allocation100_spill] sm:$0xff] %v2960_v27  ;;  %v786_v33 = vpack.c.bf16 %v2956_v15, %v2946_v5  ;;  %v802_v36 = vpack.c.bf16 %v2960_v27, %v2948_v10 }
 0x163   :  { %1009 = vmatprep.subr.bf16.mxu1 %v786_v33 }
 0x164   :  { %1010 = vmatpush1.bf16.msra.mxu1 %v785_v16 }
 0x165   :  { %v2966_v4 = vpop.f32.mrb[20].mxu0  ;;  %v2968_v41 = vpop.f32.mrb[20].mxu1 }
 0x166   :  { %3588 = vst [vmem:[#allocation101_spill] sm:$0xff] %v2966_v4  ;;  %3589 = vst [vmem:[#allocation102_spill] sm:$0xff] %v2968_v41  ;;  %v2970_v1 = vpop.f32.mrb[21].mxu0  ;;  %v2972_v9 = vpop.f32.mrb[21].mxu1 }
 0x167   :  { %3590 = vst [vmem:[#allocation103_spill] sm:$0xff] %v2970_v1  ;;  %3591 = vst [vmem:[#allocation104_spill] sm:$0xff] %v2972_v9  ;;  %v2974_v0 = vpop.f32.mrb[22].mxu0  ;;  %v2976_v17 = vpop.f32.mrb[22].mxu1 }
 0x168   :  { %3592 = vst [vmem:[#allocation105_spill] sm:$0xff] %v2974_v0  ;;  %3593 = vst [vmem:[#allocation106_spill] sm:$0xff] %v2976_v17  ;;  %v787_v38 = vpack.c.bf16 %v2974_v0, %v2966_v4  ;;  %v2980_v15 = vpop.f32.mrb[23].mxu0  ;;  %v803_v16 = vpack.c.bf16 %v2976_v17, %v2968_v41  ;;  %v2984_v33 = vpop.f32.mrb[23].mxu1 }
 0x169   :  { %3594 = vst [vmem:[#allocation107_spill] sm:$0xff] %v2980_v15  ;;  %3595 = vst [vmem:[#allocation108_spill] sm:$0xff] %v2984_v33  ;;  %v788_v27 = vpack.c.bf16 %v2980_v15, %v2970_v1  ;;  %v804_v10 = vpack.c.bf16 %v2984_v33, %v2972_v9 }
 0x16b   :  { %1011 = vmatprep.subr.bf16.mxu1 %v788_v27 }
 0x16c   :  { %1012 = vmatpush1.bf16.msra.mxu1 %v787_v38 }
 0x16d   :  { %v2990_v5 = vpop.f32.mrb[24].mxu0  ;;  %v2992_v42 = vpop.f32.mrb[24].mxu1 }
 0x16e   :  { %3596 = vst [vmem:[#allocation109_spill] sm:$0xff] %v2990_v5  ;;  %3597 = vst [vmem:[#allocation110_spill] sm:$0xff] %v2992_v42  ;;  %v2994_v0 = vpop.f32.mrb[25].mxu0  ;;  %v2996_v4 = vpop.f32.mrb[25].mxu1 }
 0x16f   :  { %3598 = vst [vmem:[#allocation111_spill] sm:$0xff] %v2994_v0  ;;  %3599 = vst [vmem:[#allocation112_spill] sm:$0xff] %v2996_v4  ;;  %v2998_v2 = vpop.f32.mrb[26].mxu0  ;;  %v3000_v17 = vpop.f32.mrb[26].mxu1 }
 0x170   :  { %3600 = vst [vmem:[#allocation113_spill] sm:$0xff] %v2998_v2  ;;  %3601 = vst [vmem:[#allocation114_spill] sm:$0xff] %v3000_v17  ;;  %v789_v41 = vpack.c.bf16 %v2998_v2, %v2990_v5  ;;  %v3004_v15 = vpop.f32.mrb[27].mxu0  ;;  %v805_v38 = vpack.c.bf16 %v3000_v17, %v2992_v42  ;;  %v3008_v27 = vpop.f32.mrb[27].mxu1 }
 0x171   :  { %3602 = vst [vmem:[#allocation115_spill] sm:$0xff] %v3004_v15  ;;  %3603 = vst [vmem:[#allocation116_spill] sm:$0xff] %v3008_v27  ;;  %v790_v33 = vpack.c.bf16 %v3004_v15, %v2994_v0  ;;  %v806_v9 = vpack.c.bf16 %v3008_v27, %v2996_v4  ;;  %v3607_v0 = vpack.c.bf16 %v2864_v30, %v2852_v45 }
 0x173   :  { %1013 = vmatprep.subr.bf16.mxu1 %v790_v33 }
 0x174   :  { %1014 = vmatpush1.bf16.msra.mxu1 %v789_v41 }
 0x175   :  { %v3014_v1 = vpop.f32.mrb[28].mxu0  ;;  %v3016_v52 = vpop.f32.mrb[28].mxu1 }
 0x176   :  { %3604 = vst [vmem:[#allocation117_spill] sm:$0xff] %v3016_v52  ;;  %v3018_v2 = vpop.f32.mrb[29].mxu0  ;;  %v3020_v5 = vpop.f32.mrb[29].mxu1 }
 0x177   :  { %v3022_v54 = vpop.f32.mrb[30].mxu0  ;;  %v3024_v17 = vpop.f32.mrb[30].mxu1 }
 0x178   :  { %3605 = vst [vmem:[#allocation118_spill] sm:$0xff] %v3022_v54  ;;  %3606 = vst [vmem:[#allocation119_spill] sm:$0xff] %v3024_v17  ;;  %v791_v42 = vpack.c.bf16 %v3022_v54, %v3014_v1  ;;  %v3028_v15 = vpop.f32.mrb[31].mxu0  ;;  %v807_v41 = vpack.c.bf16 %v3024_v17, %v3016_v52  ;;  %v3032_v33 = vpop.f32.mrb[31].mxu1  ;;  %v3608_v54 = vpack.c.bf16 %v2856_v39, %v2848_v47 }
 0x179   :  { %v792_v27 = vpack.c.bf16 %v3028_v15, %v3018_v2  ;;  %v808_v4 = vpack.c.bf16 %v3032_v33, %v3020_v5  ;;  %v3609_v17 = vpack.c.bf16 %v2888_v35, %v2876_v23  ;;  %v3610_v52 = vpack.c.bf16 %v2880_v43, %v2872_v24 }
 0x17b   :  { %1015 = vmatprep.subr.bf16.mxu1 %v792_v27  ;;  %v3611_v27 = vpack.c.bf16 %v2912_v29, %v2900_v11 }
 0x17c   :  { %1016 = vmatpush1.bf16.msra.mxu1 %v791_v42  ;;  %v3612_v42 = vpack.c.bf16 %v2904_v34, %v2896_v12 }
 0x17d   :  { %1017 = vmatprep.subr.bf16.mxu1 %v3607_v0  ;;  %v3613_v0 = vpack.c.bf16 %v2936_v22, %v2924_v21 }
 0x180   :  { %1018 = vmatpush1.bf16.msra.mxu1 %v3608_v54  ;;  %v3614_v54 = vpack.c.bf16 %v2928_v18, %v2920_v28 }
 0x181   :  { %1019 = vmatprep.subr.bf16.mxu1 %v3609_v17 }
 0x184   :  { %1020 = vmatpush1.bf16.msra.mxu1 %v3610_v52  ;;  %v3620_v52 = vld [vmem:[#allocation78_spill] sm:$0xff] }
 0x185   :  { %1021 = vmatprep.subr.bf16.mxu1 %v3611_v27 }
 0x188   :  { %1022 = vmatpush1.bf16.msra.mxu1 %v3612_v42 }
 0x189   :  { %1023 = vmatprep.subr.bf16.mxu1 %v3613_v0 }
 0x18c   :  { %1024 = vmatpush1.bf16.msra.mxu1 %v3614_v54 }
 0x18d   :  { %1025 = vmatprep.subr.bf16.mxu1 %v802_v36  ;;  %v3618_v36 = vld [vmem:[#allocation77_spill] sm:$0xff] }
 0x190   :  { %1026 = vmatpush1.bf16.msra.mxu1 %v801_v6 }
 0x191   :  { %1027 = vmatprep.subr.bf16.mxu1 %v804_v10  ;;  %v3617_v10 = vld [vmem:[#allocation13_spill] sm:$0xff] }
 0x194   :  { %1028 = vmatpush1.bf16.msra.mxu1 %v803_v16 }
 0x195   :  { %1029 = vmatprep.subr.bf16.mxu1 %v806_v9  ;;  %v3616_v9 = vld [vmem:[#allocation76_spill] sm:$0xff] }
 0x198   :  { %1030 = vmatpush1.bf16.msra.mxu1 %v805_v38  ;;  %v3631_v38 = vld [vmem:[#allocation16_spill] sm:$0xff] }
 0x199   :  { %1031 = vmatprep.subr.bf16.mxu1 %v808_v4  ;;  %v3615_v4 = vld [vmem:[#allocation75_spill] sm:$0xff] }
 0x19c   :  { %1032 = vmatpush1.bf16.msra.mxu1 %v807_v41  ;;  %v3632_v41 = vld [vmem:[#allocation84_spill] sm:$0xff] }
 0x19d   :  { %v656_v27 = vadd.f32 %v3632_v41, %v3631_v38  ;;  %v3645_v41 = vld [vmem:[#allocation26_spill] sm:$0xff] }
 0x19f   :  { %1034 = vmatmul.mubr.bf16.vlgmr.msra.gmra.mrb[32].mxu1 %v2755_v7 }
 0x1a0   :  { %1043 = vmatprep.mubr.bf16.mxu1 %v2759_v25  ;;  %v3628_v25 = vld [vmem:[#allocation82_spill] sm:$0xff] }
 0x1a7   :  { %1044 = vmatmul.mubr.bf16.gmra.mrb[36].mxu1 %v2767_v32 }
 0x1a8   :  { %1053 = vmatprep.mubr.bf16.mxu1 %v2771_v63  ;;  %v3629_v63 = vld [vmem:[#allocation18_spill] sm:$0xff] }
 0x1af   :  { %1054 = vmatmul.mubr.bf16.gmra.mrb[40].mxu1 %v2779_v19  ;;  %v3630_v19 = vld [vmem:[#allocation83_spill] sm:$0xff] }
 0x1b0   :  { %1063 = vmatprep.mubr.bf16.mxu1 %v2783_v51  ;;  %v655_v17 = vadd.f32 %v3630_v19, %v3629_v63  ;;  %v3643_v19 = vld [vmem:[#allocation23_spill] sm:$0xff] }
 0x1b7   :  { %1064 = vmatmul.mubr.bf16.gmra.mrb[44].mxu1 %v2791_v59  ;;  %v3626_v59 = vld [vmem:[#allocation81_spill] sm:$0xff] }
 0x1b8   :  { %1073 = vmatprep.mubr.bf16.mxu1 %v2795_v57  ;;  %v3625_v57 = vld [vmem:[#allocation17_spill] sm:$0xff] }
 0x1b9   :  { %v653_v7 = vadd.f32 %v3626_v59, %v3625_v57 }
 0x1bf   :  { %1074 = vmatmul.mubr.bf16.gmra.mrb[48].mxu1 %v2803_v13  ;;  %v3624_v13 = vld [vmem:[#allocation80_spill] sm:$0xff] }
 0x1c0   :  { %1083 = vmatprep.mubr.bf16.mxu1 %v2807_v62  ;;  %v3622_v62 = vld [vmem:[#allocation79_spill] sm:$0xff] }
 0x1c7   :  { %1084 = vmatmul.mubr.bf16.gmra.mrb[52].mxu1 %v2815_v61  ;;  %v3621_v61 = vld [vmem:[#allocation14_spill] sm:$0xff] }
 0x1c8   :  { %1093 = vmatprep.mubr.bf16.mxu1 %v2819_v56 }
 0x1cf   :  { %1094 = vmatmul.mubr.bf16.gmra.mrb[56].mxu1 %v2827_v55 }
 0x1d0   :  { %1103 = vmatprep.mubr.bf16.mxu1 %v2831_v49  ;;  %v2390_v49 = vld [vmem:[#allocation2 + $0x4] ss:$8 sps:$4 sm:$0xff]  }
 0x1d1   :  { %1706 = vmatprep.mubr.bf16.mxu0 %v2390_v49  ;;  %v3634_v49 = vld [vmem:[#allocation85_spill] sm:$0xff] }
 0x1d7   :  { %1104 = vmatmul.mubr.bf16.gmra.mrb[60].mxu1 %v2839_v48  ;;  %v649_v48 = vadd.f32 %v3618_v36, %v3617_v10 }
 0x1d8   :  { %1113 = vmatprep.mubr.bf16.mxu1 %v2658_v50  ;;  %v3619_v50 = vld [vmem:[#allocation11_spill] sm:$0xff] }
 0x1d9   :  { %v650_v55 = vadd.f32 %v3620_v52, %v3619_v50  ;;  %v3635_v52 = vld [vmem:[#allocation19_spill] sm:$0xff] }
 0x1df   :  { %1114 = vmatmul.mubr.bf16.gmra.mrb[64].mxu1 %v2757_v31 }
 0x1e0   :  { %1123 = vmatprep.mubr.bf16.mxu1 %v2761_v37 }
 0x1e7   :  { %1124 = vmatmul.mubr.bf16.gmra.mrb[68].mxu1 %v2769_v53 }
 0x1e8   :  { %1133 = vmatprep.mubr.bf16.mxu1 %v2773_v14 }
 0x1ef   :  { %1134 = vmatmul.mubr.bf16.gmra.mrb[72].mxu1 %v2781_v44  ;;  %v3627_v44 = vld [vmem:[#allocation15_spill] sm:$0xff] }
 0x1f0   :  { %1143 = vmatprep.mubr.bf16.mxu1 %v2785_v40  ;;  %v654_v32 = vadd.f32 %v3628_v25, %v3627_v44 }
 0x1f7   :  { %1144 = vmatmul.mubr.bf16.gmra.mrb[76].mxu1 %v2793_v46 }
 0x1f8   :  { %1153 = vmatprep.mubr.bf16.mxu1 %v2797_v26 }
 0x1ff   :  { %1154 = vmatmul.mubr.bf16.gmra.mrb[80].mxu1 %v2805_v20 }
 0x200   :  { %1163 = vmatprep.mubr.bf16.mxu1 %v2809_v8  ;;  %v651_v8 = vadd.f32 %v3622_v62, %v3621_v61  ;;  %v3637_v62 = vld [vmem:[#allocation22_spill] sm:$0xff] }
 0x207   :  { %1164 = vmatmul.mubr.bf16.gmra.mrb[84].mxu1 %v2817_v3 }
 0x208   :  { %1173 = vmatprep.mubr.bf16.mxu1 %v2821_v60 }
 0x20f   :  { %1174 = vmatmul.mubr.bf16.gmra.mrb[88].mxu1 %v2829_v58  ;;  %v3623_v58 = vld [vmem:[#allocation12_spill] sm:$0xff] }
 0x210   :  { %1183 = vmatprep.mubr.bf16.mxu1 %v3615_v4  ;;  %v652_v14 = vadd.f32 %v3624_v13, %v3623_v58 }
 0x217   :  { %1184 = vmatmul.mubr.bf16.gmra.mrb[92].mxu1 %v3616_v9 }
 0x272   :  { %v1035_v56 = vpop.f32.mrb[32].mxu1 }
 0x273   :  { %v3099_v3 = vadd.f32 %v1035_v56, %v649_v48  ;;  %v1037_v60 = vpop.f32.mrb[33].mxu1  ;;  %v3633_v48 = vld [vmem:[#allocation21_spill] sm:$0xff] }
 0x274   :  { %v3103_v20 = vadd.f32 %v1037_v60, %v650_v55  ;;  %v1039_v26 = vpop.f32.mrb[34].mxu1  ;;  %v657_v50 = vadd.f32 %v3634_v49, %v3633_v48  ;;  %v3636_v55 = vld [vmem:[#allocation86_spill] sm:$0xff]  ;;  %v3648_v48 = vld [vmem:[#allocation92_spill] sm:$0xff] }
 0x275   :  { %v3105_v31 = vadd.f32 %v1039_v26, %v651_v8  ;;  %v1386_v37 = vpack.c.bf16 %v1039_v26, %v1035_v56  ;;  %v1041_v40 = vpop.f32.mrb[35].mxu1  ;;  %v658_v56 = vadd.f32 %v3636_v55, %v3635_v52  ;;  %v3638_v8 = vld [vmem:[#allocation87_spill] sm:$0xff]  ;;  %v3640_v26 = vld [vmem:[#allocation88_spill] sm:$0xff] }
 0x276   :  { %v3107_v46 = vadd.f32 %v1041_v40, %v652_v14  ;;  %v1387_v51 = vpack.c.bf16 %v1041_v40, %v1037_v60  ;;  %v659_v60 = vadd.f32 %v3638_v8, %v3637_v62  ;;  %v3639_v14 = vld [vmem:[#allocation20_spill] sm:$0xff] }
 0x278   :  { %1674 = vmatprep.subr.bf16.mxu0 %v1387_v51 }
 0x279   :  { %1675 = vmatpush1.bf16.msra.mxu0 %v1386_v37  ;;  %v660_v37 = vadd.f32 %v3640_v26, %v3639_v14  ;;  %v3651_v26 = vld [vmem:[#allocation27_spill] sm:$0xff] }
 0x27a   :  { %v1045_v53 = vpop.f32.mrb[36].mxu1 }
 0x27b   :  { %v3115_v6 = vadd.f32 %v1045_v53, %v653_v7  ;;  %v1047_v16 = vpop.f32.mrb[37].mxu1 }
 0x27c   :  { %v3119_v42 = vadd.f32 %v1047_v16, %v654_v32  ;;  %v1049_v0 = vpop.f32.mrb[38].mxu1  ;;  %v3641_v32 = vld [vmem:[#allocation25_spill] sm:$0xff] }
 0x27d   :  { %v3121_v54 = vadd.f32 %v1049_v0, %v655_v17  ;;  %v1388_v4 = vpack.c.bf16 %v1049_v0, %v1045_v53  ;;  %v1051_v9 = vpop.f32.mrb[39].mxu1  ;;  %v3642_v53 = vld [vmem:[#allocation89_spill] sm:$0xff]  ;;  %v3644_v17 = vld [vmem:[#allocation90_spill] sm:$0xff] }
 0x27e   :  { %v3123_v10 = vadd.f32 %v1051_v9, %v656_v27  ;;  %v1389_v36 = vpack.c.bf16 %v1051_v9, %v1047_v16  ;;  %v661_v63 = vadd.f32 %v3642_v53, %v3641_v32  ;;  %v662_v16 = vadd.f32 %v3644_v17, %v3643_v19  ;;  %v3646_v27 = vld [vmem:[#allocation91_spill] sm:$0xff]  ;;  %v3655_v19 = vld [vmem:[#allocation28_spill] sm:$0xff] }
 0x27f   :  { %v663_v0 = vadd.f32 %v3646_v27, %v3645_v41  ;;  %v3656_v17 = vld [vmem:[#allocation99_spill] sm:$0xff] }
 0x280   :  { %1676 = vmatprep.subr.bf16.mxu0 %v1389_v36  ;;  %v3647_v36 = vld [vmem:[#allocation24_spill] sm:$0xff] }
 0x281   :  { %1677 = vmatpush1.bf16.msra.mxu0 %v1388_v4  ;;  %v664_v49 = vadd.f32 %v3648_v48, %v3647_v36 }
 0x282   :  { %v1055_v61 = vpop.f32.mrb[40].mxu1 }
 0x283   :  { %v3131_v58 = vadd.f32 %v1055_v61, %v657_v50  ;;  %v1057_v13 = vpop.f32.mrb[41].mxu1 }
 0x284   :  { %v3135_v40 = vadd.f32 %v1057_v13, %v658_v56  ;;  %v1059_v51 = vpop.f32.mrb[42].mxu1 }
 0x285   :  { %v3137_v57 = vadd.f32 %v1059_v51, %v659_v60  ;;  %v1390_v59 = vpack.c.bf16 %v1059_v51, %v1055_v61  ;;  %v1061_v7 = vpop.f32.mrb[43].mxu1  ;;  %v3649_v60 = vld [vmem:[#allocation29_spill] sm:$0xff] }
 0x286   :  { %v3139_v44 = vadd.f32 %v1061_v7, %v660_v37  ;;  %v1391_v25 = vpack.c.bf16 %v1061_v7, %v1057_v13  ;;  %v3650_v13 = vld [vmem:[#allocation93_spill] sm:$0xff]  ;;  %v3652_v37 = vld [vmem:[#allocation95_spill] sm:$0xff]  ;;  %v3653_v7 = vld [vmem:[#allocation30_spill] sm:$0xff] }
 0x287   :  { %v665_v14 = vadd.f32 %v3650_v13, %v3649_v60  ;;  %v666_v51 = vadd.f32 %v3652_v37, %v3651_v26  ;;  %v3662_v26 = vld [vmem:[#allocation105_spill] sm:$0xff] }
 0x288   :  { %1678 = vmatprep.subr.bf16.mxu0 %v1391_v25  ;;  %v3654_v25 = vld [vmem:[#allocation97_spill] sm:$0xff] }
 0x289   :  { %1679 = vmatpush1.bf16.msra.mxu0 %v1390_v59  ;;  %v667_v32 = vadd.f32 %v3654_v25, %v3653_v7  ;;  %v3664_v25 = vld [vmem:[#allocation107_spill] sm:$0xff] }
 0x28a   :  { %v1065_v38 = vpop.f32.mrb[44].mxu1 }
 0x28b   :  { %v3147_v4 = vadd.f32 %v1065_v38, %v661_v63  ;;  %v1067_v9 = vpop.f32.mrb[45].mxu1 }
 0x28c   :  { %v3151_v50 = vadd.f32 %v1067_v9, %v662_v16  ;;  %v1069_v52 = vpop.f32.mrb[46].mxu1  ;;  %v668_v16 = vadd.f32 %v3656_v17, %v3655_v19 }
 0x28d   :  { %v3153_v55 = vadd.f32 %v1069_v52, %v663_v0  ;;  %v1392_v56 = vpack.c.bf16 %v1069_v52, %v1065_v38  ;;  %v1071_v61 = vpop.f32.mrb[47].mxu1  ;;  %v3658_v52 = vld [vmem:[#allocation101_spill] sm:$0xff] }
 0x28e   :  { %v3155_v62 = vadd.f32 %v1071_v61, %v664_v49  ;;  %v1393_v8 = vpack.c.bf16 %v1071_v61, %v1067_v9  ;;  %v3657_v49 = vld [vmem:[#allocation33_spill] sm:$0xff]  ;;  %v3659_v61 = vld [vmem:[#allocation31_spill] sm:$0xff] }
 0x290   :  { %1680 = vmatprep.subr.bf16.mxu0 %v1393_v8  ;;  %v3660_v8 = vld [vmem:[#allocation103_spill] sm:$0xff] }
 0x291   :  { %1681 = vmatpush1.bf16.msra.mxu0 %v1392_v56  ;;  %v669_v56 = vadd.f32 %v3658_v52, %v3657_v49  ;;  %v670_v60 = vadd.f32 %v3660_v8, %v3659_v61  ;;  %v3667_v49 = vld [vmem:[#allocation109_spill] sm:$0xff]  ;;  %v3669_v61 = vld [vmem:[#allocation111_spill] sm:$0xff] }
 0x292   :  { %v1075_v59 = vpop.f32.mrb[48].mxu1 }
 0x293   :  { %v3163_v53 = vadd.f32 %v1075_v59, %v665_v14  ;;  %v1077_v63 = vpop.f32.mrb[49].mxu1  ;;  %v3661_v14 = vld [vmem:[#allocation34_spill] sm:$0xff] }
 0x294   :  { %v3167_v38 = vadd.f32 %v1077_v63, %v666_v51  ;;  %v1079_v41 = vpop.f32.mrb[50].mxu1  ;;  %v671_v37 = vadd.f32 %v3662_v26, %v3661_v14  ;;  %v3670_v26 = vld [vmem:[#allocation38_spill] sm:$0xff] }
 0x295   :  { %v3169_v27 = vadd.f32 %v1079_v41, %v667_v32  ;;  %v1394_v0 = vpack.c.bf16 %v1079_v41, %v1075_v59  ;;  %v1081_v9 = vpop.f32.mrb[51].mxu1  ;;  %v3663_v59 = vld [vmem:[#allocation32_spill] sm:$0xff] }
 0x296   :  { %v3171_v36 = vadd.f32 %v1081_v9, %v668_v16  ;;  %v1395_v48 = vpack.c.bf16 %v1081_v9, %v1077_v63  ;;  %v672_v32 = vadd.f32 %v3664_v25, %v3663_v59 }
 0x298   :  { %1682 = vmatprep.subr.bf16.mxu0 %v1395_v48  ;;  %v3666_v48 = vld [vmem:[#allocation37_spill] sm:$0xff] }
 0x299   :  { %1683 = vmatpush1.bf16.msra.mxu0 %v1394_v0  ;;  %v673_v52 = vadd.f32 %v3667_v49, %v3666_v48 }
 0x29a   :  { %v1085_v13 = vpop.f32.mrb[52].mxu1 }
 0x29b   :  { %v3179_v51 = vadd.f32 %v1085_v13, %v669_v56  ;;  %v1087_v7 = vpop.f32.mrb[53].mxu1  ;;  %v3668_v56 = vld [vmem:[#allocation35_spill] sm:$0xff] }
 0x29c   :  { %v3183_v19 = vadd.f32 %v1087_v7, %v670_v60  ;;  %v1089_v63 = vpop.f32.mrb[54].mxu1  ;;  %v674_v8 = vadd.f32 %v3669_v61, %v3668_v56  ;;  %v3671_v60 = vld [vmem:[#allocation113_spill] sm:$0xff] }
 0x29d   :  { %v3185_v17 = vadd.f32 %v1089_v63, %v671_v37  ;;  %v1396_v16 = vpack.c.bf16 %v1089_v63, %v1085_v13  ;;  %v1091_v41 = vpop.f32.mrb[55].mxu1  ;;  %v675_v59 = vadd.f32 %v3671_v60, %v3670_v26  ;;  %v3672_v13 = vld [vmem:[#allocation36_spill] sm:$0xff]  ;;  %v3673_v63 = vld [vmem:[#allocation115_spill] sm:$0xff]  ;;  %v3675_v56 = vld [vmem:[#allocation41_spill] sm:$0xff] }
 0x29e   :  { %v3187_v0 = vadd.f32 %v1091_v41, %v672_v32  ;;  %v1397_v9 = vpack.c.bf16 %v1091_v41, %v1087_v7  ;;  %v676_v32 = vadd.f32 %v3673_v63, %v3672_v13  ;;  %v677_v61 = vadd.f32 %v3014_v1, %v3675_v56  ;;  %v3677_v13 = vld [vmem:[#allocation42_spill] sm:$0xff]  ;;  %v3680_v56 = vld [vmem:[#allocation45_spill] sm:$0xff] }
 0x2a0   :  { %3665 = vst [vmem:[#allocation75_spill] sm:$0xff] %v3187_v0  ;;  %1684 = vmatprep.subr.bf16.mxu0 %v1397_v9 }
 0x2a1   :  { %1685 = vmatpush1.bf16.msra.mxu0 %v1396_v16 }
 0x2a2   :  { %v1095_v14 = vpop.f32.mrb[56].mxu1 }
 0x2a3   :  { %v3195_v25 = vadd.f32 %v1095_v14, %v673_v52  ;;  %v1097_v37 = vpop.f32.mrb[57].mxu1  ;;  %v3676_v52 = vld [vmem:[#allocation39_spill] sm:$0xff] }
 0x2a4   :  { %v3199_v0 = vadd.f32 %v1097_v37, %v674_v8  ;;  %v1099_v7 = vpop.f32.mrb[58].mxu1  ;;  %v678_v26 = vadd.f32 %v3018_v2, %v3676_v52  ;;  %v3678_v8 = vld [vmem:[#allocation118_spill] sm:$0xff]  ;;  %v681_v52 = vadd.f32 %v2848_v47, %v3680_v56  ;;  %v3684_v56 = vld [vmem:[#allocation49_spill] sm:$0xff] }
 0x2a5   :  { %v3201_v41 = vadd.f32 %v1099_v7, %v675_v59  ;;  %v1398_v9 = vpack.c.bf16 %v1099_v7, %v1095_v14  ;;  %v1101_v16 = vpop.f32.mrb[59].mxu1  ;;  %v679_v63 = vadd.f32 %v3678_v8, %v3677_v13  ;;  %v3679_v14 = vld [vmem:[#allocation40_spill] sm:$0xff] }
 0x2a6   :  { %3674 = vst [vmem:[#allocation76_spill] sm:$0xff] %v3199_v0  ;;  %v3203_v48 = vadd.f32 %v1101_v16, %v676_v32  ;;  %v1399_v49 = vpack.c.bf16 %v1101_v16, %v1097_v37  ;;  %v680_v32 = vadd.f32 %v3028_v15, %v3679_v14  ;;  %v3682_v15 = vld [vmem:[#allocation46_spill] sm:$0xff] }
 0x2a8   :  { %1686 = vmatprep.subr.bf16.mxu0 %v1399_v49 }
 0x2a9   :  { %1687 = vmatpush1.bf16.msra.mxu0 %v1398_v9 }
 0x2aa   :  { %v1105_v60 = vpop.f32.mrb[60].mxu1 }
 0x2ab   :  { %v3211_v0 = vadd.f32 %v1105_v60, %v677_v61  ;;  %v1107_v59 = vpop.f32.mrb[61].mxu1  ;;  %v3681_v61 = vld [vmem:[#allocation43_spill] sm:$0xff] }
 0x2ac   :  { %v3215_v7 = vadd.f32 %v1107_v59, %v678_v26  ;;  %v1109_v37 = vpop.f32.mrb[62].mxu1  ;;  %v682_v13 = vadd.f32 %v2852_v45, %v3681_v61  ;;  %v683_v26 = vadd.f32 %v2856_v39, %v3682_v15  ;;  %v685_v39 = vadd.f32 %v2872_v24, %v3684_v56  ;;  %v3688_v56 = vld [vmem:[#allocation53_spill] sm:$0xff] }
 0x2ad   :  { %v3217_v16 = vadd.f32 %v1109_v37, %v679_v63  ;;  %v1400_v1 = vpack.c.bf16 %v1109_v37, %v1105_v60  ;;  %v1111_v9 = vpop.f32.mrb[63].mxu1  ;;  %v3683_v60 = vld [vmem:[#allocation44_spill] sm:$0xff] }
 0x2ae   :  { %v3219_v49 = vadd.f32 %v1111_v9, %v680_v32  ;;  %v1401_v2 = vpack.c.bf16 %v1111_v9, %v1107_v59  ;;  %v684_v32 = vadd.f32 %v2864_v30, %v3683_v60  ;;  %v3686_v30 = vld [vmem:[#allocation50_spill] sm:$0xff] }
 0x2b0   :  { %1688 = vmatprep.subr.bf16.mxu0 %v1401_v2 }
 0x2b1   :  { %1689 = vmatpush1.bf16.msra.mxu0 %v1400_v1 }
 0x2b2   :  { %v1115_v8 = vpop.f32.mrb[64].mxu1 }
 0x2b3   :  { %v3227_v14 = vadd.f32 %v1115_v8, %v681_v52  ;;  %v1117_v63 = vpop.f32.mrb[65].mxu1  ;;  %v3685_v52 = vld [vmem:[#allocation47_spill] sm:$0xff] }
 0x2b4   :  { %v3231_v37 = vadd.f32 %v1117_v63, %v682_v13  ;;  %v1119_v59 = vpop.f32.mrb[66].mxu1  ;;  %v686_v61 = vadd.f32 %v2876_v23, %v3685_v52  ;;  %v687_v13 = vadd.f32 %v2880_v43, %v3686_v30  ;;  %v689_v43 = vadd.f32 %v2896_v12, %v3688_v56  ;;  %v3693_v56 = vld [vmem:[#allocation57_spill] sm:$0xff] }
 0x2b5   :  { %v3233_v9 = vadd.f32 %v1119_v59, %v683_v26  ;;  %v1402_v47 = vpack.c.bf16 %v1119_v59, %v1115_v8  ;;  %v1121_v1 = vpop.f32.mrb[67].mxu1  ;;  %v3687_v8 = vld [vmem:[#allocation48_spill] sm:$0xff] }
 0x2b6   :  { %v3235_v2 = vadd.f32 %v1121_v1, %v684_v32  ;;  %v1403_v45 = vpack.c.bf16 %v1121_v1, %v1117_v63  ;;  %v688_v32 = vadd.f32 %v2888_v35, %v3687_v8  ;;  %v3690_v35 = vld [vmem:[#allocation54_spill] sm:$0xff] }
 0x2b8   :  { %1690 = vmatprep.subr.bf16.mxu0 %v1403_v45 }
 0x2b9   :  { %1691 = vmatpush1.bf16.msra.mxu0 %v1402_v47 }
 0x2ba   :  { %v1125_v15 = vpop.f32.mrb[68].mxu1 }
 0x2bb   :  { %v3243_v60 = vadd.f32 %v1125_v15, %v685_v39  ;;  %v1127_v26 = vpop.f32.mrb[69].mxu1  ;;  %v3689_v39 = vld [vmem:[#allocation51_spill] sm:$0xff] }
 0x2bc   :  { %v3247_v59 = vadd.f32 %v1127_v26, %v686_v61  ;;  %v1129_v63 = vpop.f32.mrb[70].mxu1  ;;  %v690_v52 = vadd.f32 %v2900_v11, %v3689_v39  ;;  %v691_v61 = vadd.f32 %v2904_v34, %v3690_v35  ;;  %v693_v34 = vadd.f32 %v2920_v28, %v3693_v56  ;;  %v3701_v56 = vld [vmem:[#allocation61_spill] sm:$0xff] }
 0x2bd   :  { %v3249_v1 = vadd.f32 %v1129_v63, %v687_v13  ;;  %v1404_v24 = vpack.c.bf16 %v1129_v63, %v1125_v15  ;;  %v1131_v47 = vpop.f32.mrb[71].mxu1  ;;  %v3691_v15 = vld [vmem:[#allocation52_spill] sm:$0xff] }
 0x2be   :  { %v3251_v45 = vadd.f32 %v1131_v47, %v688_v32  ;;  %v1405_v23 = vpack.c.bf16 %v1131_v47, %v1127_v26  ;;  %v692_v32 = vadd.f32 %v2912_v29, %v3691_v15  ;;  %v3695_v29 = vld [vmem:[#allocation58_spill] sm:$0xff] }
 0x2c0   :  { %1692 = vmatprep.subr.bf16.mxu0 %v1405_v23 }
 0x2c1   :  { %1693 = vmatpush1.bf16.msra.mxu0 %v1404_v24 }
 0x2c2   :  { %v1135_v30 = vpop.f32.mrb[72].mxu1 }
 0x2c3   :  { %v3259_v8 = vadd.f32 %v1135_v30, %v689_v43  ;;  %v1137_v13 = vpop.f32.mrb[73].mxu1  ;;  %v3694_v43 = vld [vmem:[#allocation55_spill] sm:$0xff] }
 0x2c4   :  { %v3263_v63 = vadd.f32 %v1137_v13, %v690_v52  ;;  %v1139_v26 = vpop.f32.mrb[74].mxu1  ;;  %v694_v39 = vadd.f32 %v2924_v21, %v3694_v43  ;;  %v695_v52 = vadd.f32 %v2928_v18, %v3695_v29  ;;  %v3702_v43 = vld [vmem:[#allocation94_spill] sm:$0xff]  ;;  %v3704_v29 = vld [vmem:[#allocation96_spill] sm:$0xff] }
 0x2c5   :  { %v3265_v47 = vadd.f32 %v1139_v26, %v691_v61  ;;  %v1406_v12 = vpack.c.bf16 %v1139_v26, %v1135_v30  ;;  %v1141_v24 = vpop.f32.mrb[75].mxu1  ;;  %v3697_v30 = vld [vmem:[#allocation56_spill] sm:$0xff]  ;;  %v697_v18 = vadd.f32 %v3702_v43, %v3701_v56 }
 0x2c6   :  { %v3267_v23 = vadd.f32 %v1141_v24, %v692_v32  ;;  %v1407_v11 = vpack.c.bf16 %v1141_v24, %v1137_v13  ;;  %v696_v32 = vadd.f32 %v2936_v22, %v3697_v30  ;;  %v3705_v22 = vld [vmem:[#allocation62_spill] sm:$0xff] }
 0x2c8   :  { %3692 = vst [vmem:[#allocation13_spill] sm:$0xff] %v3267_v23  ;;  %1694 = vmatprep.subr.bf16.mxu0 %v1407_v11 }
 0x2c9   :  { %1695 = vmatpush1.bf16.msra.mxu0 %v1406_v12 }
 0x2ca   :  { %v1145_v35 = vpop.f32.mrb[76].mxu1 }
 0x2cb   :  { %v3275_v15 = vadd.f32 %v1145_v35, %v693_v34  ;;  %v1147_v61 = vpop.f32.mrb[77].mxu1  ;;  %v3703_v34 = vld [vmem:[#allocation59_spill] sm:$0xff] }
 0x2cc   :  { %v3279_v26 = vadd.f32 %v1147_v61, %v694_v39  ;;  %v1149_v13 = vpop.f32.mrb[78].mxu1  ;;  %v3706_v39 = vld [vmem:[#allocation98_spill] sm:$0xff] }
 0x2cd   :  { %3696 = vst [vmem:[#allocation77_spill] sm:$0xff] %v3275_v15  ;;  %v3281_v24 = vadd.f32 %v1149_v13, %v695_v52  ;;  %v1408_v28 = vpack.c.bf16 %v1149_v13, %v1145_v35  ;;  %v1151_v12 = vpop.f32.mrb[79].mxu1  ;;  %v698_v15 = vadd.f32 %v3704_v29, %v3703_v34  ;;  %v699_v30 = vadd.f32 %v3706_v39, %v3705_v22  ;;  %v3708_v35 = vld [vmem:[#allocation60_spill] sm:$0xff]  ;;  %v3711_v34 = vld [vmem:[#allocation65_spill] sm:$0xff]  ;;  %v3712_v29 = vld [vmem:[#allocation102_spill] sm:$0xff] }
 0x2ce   :  { %3698 = vst [vmem:[#allocation11_spill] sm:$0xff] %v3279_v26  ;;  %v3283_v11 = vadd.f32 %v1151_v12, %v696_v32  ;;  %v1409_v21 = vpack.c.bf16 %v1151_v12, %v1147_v61  ;;  %v3709_v13 = vld [vmem:[#allocation100_spill] sm:$0xff]  ;;  %v701_v22 = vadd.f32 %v3712_v29, %v3711_v34  ;;  %v3719_v29 = vld [vmem:[#allocation69_spill] sm:$0xff] }
 0x2cf   :  { %3699 = vst [vmem:[#allocation78_spill] sm:$0xff] %v3281_v24  ;;  %v700_v32 = vadd.f32 %v3709_v13, %v3708_v35  ;;  %v3714_v39 = vld [vmem:[#allocation104_spill] sm:$0xff]  ;;  %v3715_v35 = vld [vmem:[#allocation66_spill] sm:$0xff] }
 0x2d0   :  { %3700 = vst [vmem:[#allocation14_spill] sm:$0xff] %v3283_v11  ;;  %1696 = vmatprep.subr.bf16.mxu0 %v1409_v21 }
 0x2d1   :  { %1697 = vmatpush1.bf16.msra.mxu0 %v1408_v28 }
 0x2d2   :  { %v1155_v23 = vpop.f32.mrb[80].mxu1 }
 0x2d3   :  { %v3291_v26 = vadd.f32 %v1155_v23, %v697_v18  ;;  %v1157_v52 = vpop.f32.mrb[81].mxu1  ;;  %v3713_v18 = vld [vmem:[#allocation63_spill] sm:$0xff] }
 0x2d4   :  { %v3295_v11 = vadd.f32 %v1157_v52, %v698_v15  ;;  %v1159_v61 = vpop.f32.mrb[82].mxu1  ;;  %v3716_v15 = vld [vmem:[#allocation106_spill] sm:$0xff] }
 0x2d5   :  { %3707 = vst [vmem:[#allocation79_spill] sm:$0xff] %v3291_v26  ;;  %v1308_v12 = vadd.f32 %v1159_v61, %v699_v30  ;;  %v1410_v21 = vpack.c.bf16 %v1159_v61, %v1155_v23  ;;  %v1161_v56 = vpop.f32.mrb[83].mxu1  ;;  %v702_v26 = vadd.f32 %v3714_v39, %v3713_v18  ;;  %v703_v13 = vadd.f32 %v3716_v15, %v3715_v35  ;;  %v3717_v23 = vld [vmem:[#allocation64_spill] sm:$0xff]  ;;  %v3720_v18 = vld [vmem:[#allocation110_spill] sm:$0xff] }
 0x2d6   :  { %3710 = vst [vmem:[#allocation12_spill] sm:$0xff] %v3295_v11  ;;  %v1309_v28 = vadd.f32 %v1161_v56, %v700_v32  ;;  %v1411_v43 = vpack.c.bf16 %v1161_v56, %v1157_v52  ;;  %v3718_v61 = vld [vmem:[#allocation108_spill] sm:$0xff]  ;;  %v705_v39 = vadd.f32 %v3720_v18, %v3719_v29  ;;  %v3727_v18 = vld [vmem:[#allocation73_spill] sm:$0xff] }
 0x2d7   :  { %1372 = vst [vmem:[#allocation7 + $0x190] sm:$0xff] %v1308_v12  ;;  %v704_v32 = vadd.f32 %v3718_v61, %v3717_v23  ;;  %v3722_v35 = vld [vmem:[#allocation112_spill] sm:$0xff]  ;;  %v3724_v61 = vld [vmem:[#allocation114_spill] sm:$0xff] }
 0x2d8   :  { %1373 = vst [vmem:[#allocation7 + $0x198] sm:$0xff] %v1309_v28  ;;  %1698 = vmatprep.subr.bf16.mxu0 %v1411_v43 }
 0x2d9   :  { %1699 = vmatpush1.bf16.msra.mxu0 %v1410_v21 }
 0x2da   :  { %v1165_v24 = vpop.f32.mrb[84].mxu1 }
 0x2db   :  { %v1310_v11 = vadd.f32 %v1165_v24, %v701_v22  ;;  %v1167_v30 = vpop.f32.mrb[85].mxu1  ;;  %v3721_v22 = vld [vmem:[#allocation67_spill] sm:$0xff] }
 0x2dc   :  { %v1311_v52 = vadd.f32 %v1167_v30, %v702_v26  ;;  %v1169_v12 = vpop.f32.mrb[86].mxu1  ;;  %v706_v15 = vadd.f32 %v3722_v35, %v3721_v22  ;;  %v3723_v26 = vld [vmem:[#allocation70_spill] sm:$0xff]  ;;  %v3728_v22 = vld [vmem:[#allocation117_spill] sm:$0xff] }
 0x2dd   :  { %1374 = vst [vmem:[#allocation7 + $0x1a0] sm:$0xff] %v1310_v11  ;;  %v1312_v56 = vadd.f32 %v1169_v12, %v703_v13  ;;  %v1412_v28 = vpack.c.bf16 %v1169_v12, %v1165_v24  ;;  %v1171_v43 = vpop.f32.mrb[87].mxu1  ;;  %v707_v11 = vadd.f32 %v3724_v61, %v3723_v26  ;;  %v3725_v12 = vld [vmem:[#allocation68_spill] sm:$0xff]  ;;  %v709_v35 = vadd.f32 %v3728_v22, %v3727_v18  ;;  %v2393_v18 = vld [vmem:[#allocation2 + $0x10] ss:$8 sps:$4 sm:$0xff]  }
 0x2de   :  { %1375 = vst [vmem:[#allocation7 + $0x1a8] sm:$0xff] %v1311_v52  ;;  %v1313_v21 = vadd.f32 %v1171_v43, %v704_v32  ;;  %v1413_v34 = vpack.c.bf16 %v1171_v43, %v1167_v30  ;;  %v3726_v52 = vld [vmem:[#allocation116_spill] sm:$0xff] }
 0x2df   :  { %1376 = vst [vmem:[#allocation7 + $0x1b0] sm:$0xff] %v1312_v56  ;;  %v708_v32 = vadd.f32 %v3726_v52, %v3725_v12  ;;  %v3731_v12 = vld [vmem:[#allocation119_spill] sm:$0xff]  ;;  %v3732_v52 = vld [vmem:[#allocation72_spill] sm:$0xff] }
 0x2e0   :  { %1377 = vst [vmem:[#allocation7 + $0x1b8] sm:$0xff] %v1313_v21  ;;  %1700 = vmatprep.subr.bf16.mxu0 %v1413_v34  ;;  %v2394_v22 = vld [vmem:[#allocation2 + $0x24] ss:$8 sps:$4 sm:$0xff]  }
 0x2e1   :  { %1701 = vmatpush1.bf16.msra.mxu0 %v1412_v28 }
 0x2e2   :  { %v1175_v23 = vpop.f32.mrb[88].mxu1 }
 0x2e3   :  { %v1314_v13 = vadd.f32 %v1175_v23, %v705_v39  ;;  %v1177_v24 = vpop.f32.mrb[89].mxu1  ;;  %v3729_v39 = vld [vmem:[#allocation71_spill] sm:$0xff] }
 0x2e4   :  { %v1315_v30 = vadd.f32 %v1177_v24, %v706_v15  ;;  %v1179_v56 = vpop.f32.mrb[90].mxu1  ;;  %v710_v26 = vadd.f32 %v3020_v5, %v3729_v39  ;;  %v3730_v15 = vld [vmem:[#allocation74_spill] sm:$0xff]  ;;  %v2388_v5 = vld [vmem:[#allocation2] ss:$8 sps:$4 sm:$0xff]  }
 0x2e5   :  { %1378 = vst [vmem:[#allocation7 + $0x1c0] sm:$0xff] %v1314_v13  ;;  %v1316_v43 = vadd.f32 %v1179_v56, %v707_v11  ;;  %v1414_v21 = vpack.c.bf16 %v1179_v56, %v1175_v23  ;;  %v1181_v34 = vpop.f32.mrb[91].mxu1  ;;  %v711_v13 = vadd.f32 %v3731_v12, %v3730_v15  ;;  %v2399_v39 = vld [vmem:[#allocation2 + $0x30] ss:$8 sps:$4 sm:$0xff]   ;;  %v2403_v15 = vld [vmem:[#allocation2 + $0x54] ss:$8 sps:$4 sm:$0xff]  }
 0x2e6   :  { %1379 = vst [vmem:[#allocation7 + $0x1c8] sm:$0xff] %v1315_v30  ;;  %v1317_v28 = vadd.f32 %v1181_v34, %v708_v32  ;;  %v1415_v29 = vpack.c.bf16 %v1181_v34, %v1177_v24  ;;  %v712_v32 = vadd.f32 %v3032_v33, %v3732_v52  ;;  %v2396_v33 = vld [vmem:[#allocation2 + $0x20] ss:$8 sps:$4 sm:$0xff]   ;;  %v2405_v12 = vld [vmem:[#allocation2 + $0x50] ss:$8 sps:$4 sm:$0xff]  }
 0x2e7   :  { %1380 = vst [vmem:[#allocation7 + $0x1d0] sm:$0xff] %v1316_v43  ;;  %v2411_v52 = vld [vmem:[#allocation2 + $0x70] ss:$8 sps:$4 sm:$0xff]  }
 0x2e8   :  { %1381 = vst [vmem:[#allocation7 + $0x1d8] sm:$0xff] %v1317_v28  ;;  %1702 = vmatprep.subr.bf16.mxu0 %v1415_v29  ;;  %v2391_v29 = vld [vmem:[#allocation2 + $0x14] ss:$8 sps:$4 sm:$0xff]  }
 0x2e9   :  { %1703 = vmatpush1.bf16.msra.mxu0 %v1414_v21 }
 0x2ea   :  { %v1185_v61 = vpop.f32.mrb[92].mxu1 }
 0x2eb   :  { %v1318_v11 = vadd.f32 %v1185_v61, %v709_v35  ;;  %v1187_v23 = vpop.f32.mrb[93].mxu1  ;;  %v2397_v35 = vld [vmem:[#allocation2 + $0x34] ss:$8 sps:$4 sm:$0xff]  }
 0x2ec   :  { %v1319_v24 = vadd.f32 %v1187_v23, %v710_v26  ;;  %v1189_v30 = vpop.f32.mrb[94].mxu1  ;;  %v2400_v26 = vld [vmem:[#allocation2 + $0x44] ss:$8 sps:$4 sm:$0xff]  }
 0x2ed   :  { %1382 = vst [vmem:[#allocation7 + $0x1e0] sm:$0xff] %v1318_v11  ;;  %v1320_v56 = vadd.f32 %v1189_v30, %v711_v13  ;;  %v1416_v43 = vpack.c.bf16 %v1189_v30, %v1185_v61  ;;  %v1191_v34 = vpop.f32.mrb[95].mxu1  ;;  %v2402_v61 = vld [vmem:[#allocation2 + $0x40] ss:$8 sps:$4 sm:$0xff]   ;;  %v2406_v13 = vld [vmem:[#allocation2 + $0x64] ss:$8 sps:$4 sm:$0xff]  }
 0x2ee   :  { %1383 = vst [vmem:[#allocation7 + $0x1e8] sm:$0xff] %v1319_v24  ;;  %v1321_v21 = vadd.f32 %v1191_v34, %v712_v32  ;;  %v1417_v28 = vpack.c.bf16 %v1191_v34, %v1187_v23  ;;  %v2408_v11 = vld [vmem:[#allocation2 + $0x60] ss:$8 sps:$4 sm:$0xff]   ;;  %v2409_v23 = vld [vmem:[#allocation2 + $0x74] ss:$8 sps:$4 sm:$0xff]  }
 0x2ef   :  { %1384 = vst [vmem:[#allocation7 + $0x1f0] sm:$0xff] %v1320_v56  ;;  %v2412_v32 = vld [vmem:[#allocation2 + $0x84] ss:$8 sps:$4 sm:$0xff]   ;;  %v2414_v24 = vld [vmem:[#allocation2 + $0x80] ss:$8 sps:$4 sm:$0xff]  }
 0x2f0   :  { %1385 = vst [vmem:[#allocation7 + $0x1f8] sm:$0xff] %v1321_v21  ;;  %1704 = vmatprep.subr.bf16.mxu0 %v1417_v28  ;;  %v2415_v30 = vld [vmem:[#allocation2 + $0x94] ss:$8 sps:$4 sm:$0xff]   ;;  %v2417_v56 = vld [vmem:[#allocation2 + $0x90] ss:$8 sps:$4 sm:$0xff]  }
 0x2f1   :  { %1705 = vmatpush1.bf16.msra.mxu0 %v1416_v43  ;;  %v2418_v43 = vld [vmem:[#allocation2 + $0xa4] ss:$8 sps:$4 sm:$0xff]   ;;  %v2420_v34 = vld [vmem:[#allocation2 + $0xa0] ss:$8 sps:$4 sm:$0xff]   ;;  %v2421_v21 = vld [vmem:[#allocation2 + $0xb4] ss:$8 sps:$4 sm:$0xff]  }
 0x2f2   :  { %v2423_v28 = vld [vmem:[#allocation2 + $0xb0] ss:$8 sps:$4 sm:$0xff]  }
 0x2f4   :  { %1707 = vmatmul.mubr.bf16.vlgmr.msra.gmra.mrb[32].mxu0 %v2388_v5  ;;  %v2424_v5 = vld [vmem:[#allocation2 + $0xc4] ss:$8 sps:$4 sm:$0xff]  }
 0x2f5   :  { %1716 = vmatprep.mubr.bf16.mxu0 %v2391_v29  ;;  %v2426_v29 = vld [vmem:[#allocation2 + $0xc0] ss:$8 sps:$4 sm:$0xff]  }
 0x2fc   :  { %1717 = vmatmul.mubr.bf16.gmra.mrb[36].mxu0 %v2393_v18  ;;  %v2427_v18 = vld [vmem:[#allocation2 + $0xd4] ss:$8 sps:$4 sm:$0xff]  }
 0x2fd   :  { %1726 = vmatprep.mubr.bf16.mxu0 %v2394_v22  ;;  %v2429_v22 = vld [vmem:[#allocation2 + $0xd0] ss:$8 sps:$4 sm:$0xff]  }
 0x304   :  { %1727 = vmatmul.mubr.bf16.gmra.mrb[40].mxu0 %v2396_v33  ;;  %v2430_v33 = vld [vmem:[#allocation2 + $0xe4] ss:$8 sps:$4 sm:$0xff]  }
 0x305   :  { %1736 = vmatprep.mubr.bf16.mxu0 %v2397_v35  ;;  %v2432_v35 = vld [vmem:[#allocation2 + $0xe0] ss:$8 sps:$4 sm:$0xff]  }
 0x30c   :  { %1737 = vmatmul.mubr.bf16.gmra.mrb[44].mxu0 %v2399_v39  ;;  %v2433_v39 = vld [vmem:[#allocation2 + $0xf4] ss:$8 sps:$4 sm:$0xff]  }
 0x30d   :  { %1746 = vmatprep.mubr.bf16.mxu0 %v2400_v26  ;;  %v2435_v26 = vld [vmem:[#allocation2 + $0xf0] ss:$8 sps:$4 sm:$0xff]  }
 0x314   :  { %1747 = vmatmul.mubr.bf16.gmra.mrb[48].mxu0 %v2402_v61 }
 0x315   :  { %1756 = vmatprep.mubr.bf16.mxu0 %v2403_v15 }
 0x31c   :  { %1757 = vmatmul.mubr.bf16.gmra.mrb[52].mxu0 %v2405_v12 }
 0x31d   :  { %1766 = vmatprep.mubr.bf16.mxu0 %v2406_v13 }
 0x324   :  { %1767 = vmatmul.mubr.bf16.gmra.mrb[56].mxu0 %v2408_v11 }
 0x325   :  { %1776 = vmatprep.mubr.bf16.mxu0 %v2409_v23 }
 0x32c   :  { %1777 = vmatmul.mubr.bf16.gmra.mrb[60].mxu0 %v2411_v52 }
 0x32d   :  { %1786 = vmatprep.mubr.bf16.mxu0 %v2412_v32 }
 0x334   :  { %1787 = vmatmul.mubr.bf16.gmra.mrb[64].mxu0 %v2414_v24 }
 0x335   :  { %1796 = vmatprep.mubr.bf16.mxu0 %v2415_v30 }
 0x33c   :  { %1797 = vmatmul.mubr.bf16.gmra.mrb[68].mxu0 %v2417_v56 }
 0x33d   :  { %1806 = vmatprep.mubr.bf16.mxu0 %v2418_v43 }
 0x344   :  { %1807 = vmatmul.mubr.bf16.gmra.mrb[72].mxu0 %v2420_v34 }
 0x345   :  { %1816 = vmatprep.mubr.bf16.mxu0 %v2421_v21 }
 0x34c   :  { %1817 = vmatmul.mubr.bf16.gmra.mrb[76].mxu0 %v2423_v28 }
 0x34d   :  { %1826 = vmatprep.mubr.bf16.mxu0 %v2424_v5 }
 0x354   :  { %1827 = vmatmul.mubr.bf16.gmra.mrb[80].mxu0 %v2426_v29 }
 0x355   :  { %1836 = vmatprep.mubr.bf16.mxu0 %v2427_v18 }
 0x35c   :  { %1837 = vmatmul.mubr.bf16.gmra.mrb[84].mxu0 %v2429_v22 }
 0x35d   :  { %1846 = vmatprep.mubr.bf16.mxu0 %v2430_v33 }
 0x364   :  { %1847 = vmatmul.mubr.bf16.gmra.mrb[88].mxu0 %v2432_v35 }
 0x365   :  { %1856 = vmatprep.mubr.bf16.mxu0 %v2433_v39 }
 0x36c   :  { %1857 = vmatmul.mubr.bf16.gmra.mrb[92].mxu0 %v2435_v26 }
 0x3c7   :  { %v1708_v61 = vpop.f32.mrb[32].mxu0 }
 0x3c8   :  { %v1867_v15 = vadd.f32 %v1708_v61, %v3099_v3  ;;  %v1710_v12 = vpop.f32.mrb[33].mxu0 }
 0x3c9   :  { %v1868_v13 = vadd.f32 %v1710_v12, %v3103_v20  ;;  %v1712_v11 = vpop.f32.mrb[34].mxu0 }
 0x3ca   :  { %v2059_v23 = vmul.f32 0.25, %v1867_v15  ;;  %v1869_v52 = vadd.f32 %v1712_v11, %v3105_v31  ;;  %v1714_v32 = vpop.f32.mrb[35].mxu0 }
 0x3cb   :  { %v2060_v24 = vmul.f32 0.25, %v1868_v13  ;;  %v1870_v30 = vadd.f32 %v1714_v32, %v3107_v46 }
 0x3cc   :  { %2123 = vst [vmem:[#allocation7] sm:$0xff] %v2059_v23  ;;  %v2061_v56 = vmul.f32 0.25, %v1869_v52 }
 0x3cd   :  { %2124 = vst [vmem:[#allocation7 + $0x8] sm:$0xff] %v2060_v24  ;;  %v2062_v43 = vmul.f32 0.25, %v1870_v30 }
 0x3ce   :  { %2125 = vst [vmem:[#allocation7 + $0x10] sm:$0xff] %v2061_v56 }
 0x3cf   :  { %2126 = vst [vmem:[#allocation7 + $0x18] sm:$0xff] %v2062_v43  ;;  %v1718_v34 = vpop.f32.mrb[36].mxu0 }
 0x3d0   :  { %v1871_v3 = vadd.f32 %v1718_v34, %v3115_v6  ;;  %v1720_v21 = vpop.f32.mrb[37].mxu0 }
 0x3d1   :  { %v1872_v20 = vadd.f32 %v1720_v21, %v3119_v42  ;;  %v1722_v28 = vpop.f32.mrb[38].mxu0 }
 0x3d2   :  { %v2063_v5 = vmul.f32 0.25, %v1871_v3  ;;  %v1873_v31 = vadd.f32 %v1722_v28, %v3121_v54  ;;  %v1724_v29 = vpop.f32.mrb[39].mxu0 }
 0x3d3   :  { %v2064_v18 = vmul.f32 0.25, %v1872_v20  ;;  %v1874_v46 = vadd.f32 %v1724_v29, %v3123_v10 }
 0x3d4   :  { %2127 = vst [vmem:[#allocation7 + $0x20] sm:$0xff] %v2063_v5  ;;  %v2065_v22 = vmul.f32 0.25, %v1873_v31 }
 0x3d5   :  { %2128 = vst [vmem:[#allocation7 + $0x28] sm:$0xff] %v2064_v18  ;;  %v2066_v33 = vmul.f32 0.25, %v1874_v46 }
 0x3d6   :  { %2129 = vst [vmem:[#allocation7 + $0x30] sm:$0xff] %v2065_v22 }
 0x3d7   :  { %2130 = vst [vmem:[#allocation7 + $0x38] sm:$0xff] %v2066_v33  ;;  %v1728_v35 = vpop.f32.mrb[40].mxu0 }
 0x3d8   :  { %v1875_v6 = vadd.f32 %v1728_v35, %v3131_v58  ;;  %v1730_v39 = vpop.f32.mrb[41].mxu0 }
 0x3d9   :  { %v1876_v42 = vadd.f32 %v1730_v39, %v3135_v40  ;;  %v1732_v26 = vpop.f32.mrb[42].mxu0 }
 0x3da   :  { %v2067_v61 = vmul.f32 0.25, %v1875_v6  ;;  %v1877_v54 = vadd.f32 %v1732_v26, %v3137_v57  ;;  %v1734_v15 = vpop.f32.mrb[43].mxu0 }
 0x3db   :  { %v2068_v12 = vmul.f32 0.25, %v1876_v42  ;;  %v1878_v10 = vadd.f32 %v1734_v15, %v3139_v44  ;;  %v3733_v42 = vld [vmem:[#allocation75_spill] sm:$0xff] }
 0x3dc   :  { %2131 = vst [vmem:[#allocation7 + $0x40] sm:$0xff] %v2067_v61  ;;  %v2069_v13 = vmul.f32 0.25, %v1877_v54 }
 0x3dd   :  { %2132 = vst [vmem:[#allocation7 + $0x48] sm:$0xff] %v2068_v12  ;;  %v2070_v11 = vmul.f32 0.25, %v1878_v10  ;;  %v3734_v12 = vld [vmem:[#allocation76_spill] sm:$0xff] }
 0x3de   :  { %2133 = vst [vmem:[#allocation7 + $0x50] sm:$0xff] %v2069_v13 }
 0x3df   :  { %2134 = vst [vmem:[#allocation7 + $0x58] sm:$0xff] %v2070_v11  ;;  %v1738_v23 = vpop.f32.mrb[44].mxu0 }
 0x3e0   :  { %v1879_v58 = vadd.f32 %v1738_v23, %v3147_v4  ;;  %v1740_v52 = vpop.f32.mrb[45].mxu0 }
 0x3e1   :  { %v1880_v40 = vadd.f32 %v1740_v52, %v3151_v50  ;;  %v1742_v32 = vpop.f32.mrb[46].mxu0 }
 0x3e2   :  { %v2071_v24 = vmul.f32 0.25, %v1879_v58  ;;  %v1881_v57 = vadd.f32 %v1742_v32, %v3153_v55  ;;  %v1744_v30 = vpop.f32.mrb[47].mxu0 }
 0x3e3   :  { %v2072_v56 = vmul.f32 0.25, %v1880_v40  ;;  %v1882_v44 = vadd.f32 %v1744_v30, %v3155_v62 }
 0x3e4   :  { %2135 = vst [vmem:[#allocation7 + $0x60] sm:$0xff] %v2071_v24  ;;  %v2073_v43 = vmul.f32 0.25, %v1881_v57 }
 0x3e5   :  { %2136 = vst [vmem:[#allocation7 + $0x68] sm:$0xff] %v2072_v56  ;;  %v2074_v34 = vmul.f32 0.25, %v1882_v44 }
 0x3e6   :  { %2137 = vst [vmem:[#allocation7 + $0x70] sm:$0xff] %v2073_v43 }
 0x3e7   :  { %2138 = vst [vmem:[#allocation7 + $0x78] sm:$0xff] %v2074_v34  ;;  %v1748_v3 = vpop.f32.mrb[48].mxu0 }
 0x3e8   :  { %v1883_v4 = vadd.f32 %v1748_v3, %v3163_v53  ;;  %v1750_v21 = vpop.f32.mrb[49].mxu0 }
 0x3e9   :  { %v1884_v50 = vadd.f32 %v1750_v21, %v3167_v38  ;;  %v1752_v20 = vpop.f32.mrb[50].mxu0 }
 0x3ea   :  { %v2075_v28 = vmul.f32 0.25, %v1883_v4  ;;  %v1885_v55 = vadd.f32 %v1752_v20, %v3169_v27  ;;  %v1754_v5 = vpop.f32.mrb[51].mxu0 }
 0x3eb   :  { %v2076_v31 = vmul.f32 0.25, %v1884_v50  ;;  %v1886_v62 = vadd.f32 %v1754_v5, %v3171_v36 }
 0x3ec   :  { %2139 = vst [vmem:[#allocation7 + $0x80] sm:$0xff] %v2075_v28  ;;  %v2077_v29 = vmul.f32 0.25, %v1885_v55 }
 0x3ed   :  { %2140 = vst [vmem:[#allocation7 + $0x88] sm:$0xff] %v2076_v31  ;;  %v2078_v18 = vmul.f32 0.25, %v1886_v62 }
 0x3ee   :  { %2141 = vst [vmem:[#allocation7 + $0x90] sm:$0xff] %v2077_v29 }
 0x3ef   :  { %2142 = vst [vmem:[#allocation7 + $0x98] sm:$0xff] %v2078_v18  ;;  %v1758_v46 = vpop.f32.mrb[52].mxu0 }
 0x3f0   :  { %v1887_v53 = vadd.f32 %v1758_v46, %v3179_v51  ;;  %v1760_v22 = vpop.f32.mrb[53].mxu0 }
 0x3f1   :  { %v1888_v38 = vadd.f32 %v1760_v22, %v3183_v19  ;;  %v1762_v33 = vpop.f32.mrb[54].mxu0 }
 0x3f2   :  { %v2079_v35 = vmul.f32 0.25, %v1887_v53  ;;  %v1889_v27 = vadd.f32 %v1762_v33, %v3185_v17  ;;  %v1764_v6 = vpop.f32.mrb[55].mxu0 }
 0x3f3   :  { %v2080_v39 = vmul.f32 0.25, %v1888_v38  ;;  %v1890_v36 = vadd.f32 %v1764_v6, %v3733_v42 }
 0x3f4   :  { %2143 = vst [vmem:[#allocation7 + $0xa0] sm:$0xff] %v2079_v35  ;;  %v2081_v26 = vmul.f32 0.25, %v1889_v27 }
 0x3f5   :  { %2144 = vst [vmem:[#allocation7 + $0xa8] sm:$0xff] %v2080_v39  ;;  %v2082_v61 = vmul.f32 0.25, %v1890_v36 }
 0x3f6   :  { %2145 = vst [vmem:[#allocation7 + $0xb0] sm:$0xff] %v2081_v26  ;;  %v3735_v26 = vld [vmem:[#allocation13_spill] sm:$0xff] }
 0x3f7   :  { %2146 = vst [vmem:[#allocation7 + $0xb8] sm:$0xff] %v2082_v61  ;;  %v1768_v54 = vpop.f32.mrb[56].mxu0 }
 0x3f8   :  { %v1891_v51 = vadd.f32 %v1768_v54, %v3195_v25  ;;  %v1770_v15 = vpop.f32.mrb[57].mxu0 }
 0x3f9   :  { %v1892_v19 = vadd.f32 %v1770_v15, %v3734_v12  ;;  %v1772_v10 = vpop.f32.mrb[58].mxu0  ;;  %v3736_v15 = vld [vmem:[#allocation77_spill] sm:$0xff] }
 0x3fa   :  { %v2083_v13 = vmul.f32 0.25, %v1891_v51  ;;  %v1893_v17 = vadd.f32 %v1772_v10, %v3201_v41  ;;  %v1774_v11 = vpop.f32.mrb[59].mxu0 }
 0x3fb   :  { %v2084_v23 = vmul.f32 0.25, %v1892_v19  ;;  %v1894_v58 = vadd.f32 %v1774_v11, %v3203_v48  ;;  %v3737_v19 = vld [vmem:[#allocation11_spill] sm:$0xff] }
 0x3fc   :  { %2147 = vst [vmem:[#allocation7 + $0xc0] sm:$0xff] %v2083_v13  ;;  %v2085_v52 = vmul.f32 0.25, %v1893_v17  ;;  %v3738_v17 = vld [vmem:[#allocation78_spill] sm:$0xff] }
 0x3fd   :  { %2148 = vst [vmem:[#allocation7 + $0xc8] sm:$0xff] %v2084_v23  ;;  %v2086_v40 = vmul.f32 0.25, %v1894_v58  ;;  %v3739_v58 = vld [vmem:[#allocation14_spill] sm:$0xff] }
 0x3fe   :  { %2149 = vst [vmem:[#allocation7 + $0xd0] sm:$0xff] %v2085_v52 }
 0x3ff   :  { %2150 = vst [vmem:[#allocation7 + $0xd8] sm:$0xff] %v2086_v40  ;;  %v1778_v32 = vpop.f32.mrb[60].mxu0 }
 0x400   :  { %v1895_v25 = vadd.f32 %v1778_v32, %v3211_v0  ;;  %v1780_v24 = vpop.f32.mrb[61].mxu0 }
 0x401   :  { %v1896_v57 = vadd.f32 %v1780_v24, %v3215_v7  ;;  %v1782_v30 = vpop.f32.mrb[62].mxu0  ;;  %v3740_v24 = vld [vmem:[#allocation79_spill] sm:$0xff] }
 0x402   :  { %v2087_v56 = vmul.f32 0.25, %v1895_v25  ;;  %v1897_v41 = vadd.f32 %v1782_v30, %v3217_v16  ;;  %v1784_v44 = vpop.f32.mrb[63].mxu0 }
 0x403   :  { %v2088_v43 = vmul.f32 0.25, %v1896_v57  ;;  %v1898_v48 = vadd.f32 %v1784_v44, %v3219_v49  ;;  %v1468_v44 = vld [vmem:[#allocation7 + $0x190] sm:$0xff] }
 0x404   :  { %2151 = vst [vmem:[#allocation7 + $0xe0] sm:$0xff] %v2087_v56  ;;  %v2089_v34 = vmul.f32 0.25, %v1897_v41  ;;  %v3741_v56 = vld [vmem:[#allocation12_spill] sm:$0xff] }
 0x405   :  { %2152 = vst [vmem:[#allocation7 + $0xe8] sm:$0xff] %v2088_v43  ;;  %v2090_v3 = vmul.f32 0.25, %v1898_v48 }
 0x406   :  { %2153 = vst [vmem:[#allocation7 + $0xf0] sm:$0xff] %v2089_v34 }
 0x407   :  { %2154 = vst [vmem:[#allocation7 + $0xf8] sm:$0xff] %v2090_v3  ;;  %v1788_v4 = vpop.f32.mrb[64].mxu0  ;;  %v1469_v3 = vld [vmem:[#allocation7 + $0x198] sm:$0xff] }
 0x408   :  { %v1899_v0 = vadd.f32 %v1788_v4, %v3227_v14  ;;  %v1790_v21 = vpop.f32.mrb[65].mxu0 }
 0x409   :  { %v1900_v7 = vadd.f32 %v1790_v21, %v3231_v37  ;;  %v1792_v50 = vpop.f32.mrb[66].mxu0 }
 0x40a   :  { %v2091_v20 = vmul.f32 0.25, %v1899_v0  ;;  %v1901_v16 = vadd.f32 %v1792_v50, %v3233_v9  ;;  %v1794_v28 = vpop.f32.mrb[67].mxu0 }
 0x40b   :  { %v2092_v55 = vmul.f32 0.25, %v1900_v7  ;;  %v1902_v49 = vadd.f32 %v1794_v28, %v3235_v2 }
 0x40c   :  { %2155 = vst [vmem:[#allocation7 + $0x100] sm:$0xff] %v2091_v20  ;;  %v2093_v5 = vmul.f32 0.25, %v1901_v16  ;;  %v1470_v20 = vld [vmem:[#allocation7 + $0x1a0] sm:$0xff] }
 0x40d   :  { %2156 = vst [vmem:[#allocation7 + $0x108] sm:$0xff] %v2092_v55  ;;  %v2094_v31 = vmul.f32 0.25, %v1902_v49  ;;  %v1471_v55 = vld [vmem:[#allocation7 + $0x1a8] sm:$0xff] }
 0x40e   :  { %2157 = vst [vmem:[#allocation7 + $0x110] sm:$0xff] %v2093_v5 }
 0x40f   :  { %2158 = vst [vmem:[#allocation7 + $0x118] sm:$0xff] %v2094_v31  ;;  %v1798_v62 = vpop.f32.mrb[68].mxu0  ;;  %v1472_v31 = vld [vmem:[#allocation7 + $0x1b0] sm:$0xff] }
 0x410   :  { %v1903_v14 = vadd.f32 %v1798_v62, %v3243_v60  ;;  %v1800_v29 = vpop.f32.mrb[69].mxu0 }
 0x411   :  { %v1904_v37 = vadd.f32 %v1800_v29, %v3247_v59  ;;  %v1802_v18 = vpop.f32.mrb[70].mxu0 }
 0x412   :  { %v2095_v46 = vmul.f32 0.25, %v1903_v14  ;;  %v1905_v9 = vadd.f32 %v1802_v18, %v3249_v1  ;;  %v1804_v53 = vpop.f32.mrb[71].mxu0 }
 0x413   :  { %v2096_v22 = vmul.f32 0.25, %v1904_v37  ;;  %v1906_v2 = vadd.f32 %v1804_v53, %v3251_v45  ;;  %v1473_v37 = vld [vmem:[#allocation7 + $0x1b8] sm:$0xff] }
 0x414   :  { %2159 = vst [vmem:[#allocation7 + $0x120] sm:$0xff] %v2095_v46  ;;  %v2097_v38 = vmul.f32 0.25, %v1905_v9 }
 0x415   :  { %2160 = vst [vmem:[#allocation7 + $0x128] sm:$0xff] %v2096_v22  ;;  %v2098_v33 = vmul.f32 0.25, %v1906_v2  ;;  %v1474_v2 = vld [vmem:[#allocation7 + $0x1c0] sm:$0xff] }
 0x416   :  { %2161 = vst [vmem:[#allocation7 + $0x130] sm:$0xff] %v2097_v38 }
 0x417   :  { %2162 = vst [vmem:[#allocation7 + $0x138] sm:$0xff] %v2098_v33  ;;  %v1808_v35 = vpop.f32.mrb[72].mxu0 }
 0x418   :  { %v1907_v60 = vadd.f32 %v1808_v35, %v3259_v8  ;;  %v1810_v27 = vpop.f32.mrb[73].mxu0  ;;  %v1475_v35 = vld [vmem:[#allocation7 + $0x1c8] sm:$0xff] }
 0x419   :  { %v1908_v59 = vadd.f32 %v1810_v27, %v3263_v63  ;;  %v1812_v6 = vpop.f32.mrb[74].mxu0 }
 0x41a   :  { %v2099_v39 = vmul.f32 0.25, %v1907_v60  ;;  %v1909_v1 = vadd.f32 %v1812_v6, %v3265_v47  ;;  %v1814_v42 = vpop.f32.mrb[75].mxu0 }
 0x41b   :  { %v2100_v36 = vmul.f32 0.25, %v1908_v59  ;;  %v1910_v45 = vadd.f32 %v1814_v42, %v3735_v26  ;;  %v1476_v59 = vld [vmem:[#allocation7 + $0x1d0] sm:$0xff]  ;;  %v1477_v42 = vld [vmem:[#allocation7 + $0x1d8] sm:$0xff] }
 0x41c   :  { %2163 = vst [vmem:[#allocation7 + $0x140] sm:$0xff] %v2099_v39  ;;  %v2101_v61 = vmul.f32 0.25, %v1909_v1 }
 0x41d   :  { %2164 = vst [vmem:[#allocation7 + $0x148] sm:$0xff] %v2100_v36  ;;  %v2102_v54 = vmul.f32 0.25, %v1910_v45 }
 0x41e   :  { %2165 = vst [vmem:[#allocation7 + $0x150] sm:$0xff] %v2101_v61 }
 0x41f   :  { %2166 = vst [vmem:[#allocation7 + $0x158] sm:$0xff] %v2102_v54  ;;  %v1818_v51 = vpop.f32.mrb[76].mxu0 }
 0x420   :  { %v1911_v8 = vadd.f32 %v1818_v51, %v3736_v15  ;;  %v1820_v12 = vpop.f32.mrb[77].mxu0  ;;  %v1478_v51 = vld [vmem:[#allocation7 + $0x1e0] sm:$0xff] }
 0x421   :  { %v1912_v63 = vadd.f32 %v1820_v12, %v3737_v19  ;;  %v1822_v10 = vpop.f32.mrb[78].mxu0  ;;  %v1479_v12 = vld [vmem:[#allocation7 + $0x1e8] sm:$0xff] }
 0x422   :  { %v2103_v13 = vmul.f32 0.25, %v1911_v8  ;;  %v1913_v47 = vadd.f32 %v1822_v10, %v3738_v17  ;;  %v1824_v11 = vpop.f32.mrb[79].mxu0  ;;  %v1480_v10 = vld [vmem:[#allocation7 + $0x1f0] sm:$0xff] }
 0x423   :  { %v2104_v23 = vmul.f32 0.25, %v1912_v63  ;;  %v1914_v52 = vadd.f32 %v1824_v11, %v3739_v58  ;;  %v1481_v11 = vld [vmem:[#allocation7 + $0x1f8] sm:$0xff] }
 0x424   :  { %2167 = vst [vmem:[#allocation7 + $0x160] sm:$0xff] %v2103_v13  ;;  %v2105_v40 = vmul.f32 0.25, %v1913_v47 }
 0x425   :  { %2168 = vst [vmem:[#allocation7 + $0x168] sm:$0xff] %v2104_v23  ;;  %v2106_v32 = vmul.f32 0.25, %v1914_v52 }
 0x426   :  { %2169 = vst [vmem:[#allocation7 + $0x170] sm:$0xff] %v2105_v40 }
 0x427   :  { %2170 = vst [vmem:[#allocation7 + $0x178] sm:$0xff] %v2106_v32  ;;  %v1828_v25 = vpop.f32.mrb[80].mxu0 }
 0x428   :  { %v1915_v57 = vadd.f32 %v1828_v25, %v3740_v24  ;;  %v1830_v30 = vpop.f32.mrb[81].mxu0 }
 0x429   :  { %v1916_v41 = vadd.f32 %v1830_v30, %v3741_v56  ;;  %v1832_v43 = vpop.f32.mrb[82].mxu0 }
 0x42a   :  { %v2107_v48 = vmul.f32 0.25, %v1915_v57  ;;  %v1917_v34 = vadd.f32 %v1832_v43, %v1468_v44  ;;  %v1834_v4 = vpop.f32.mrb[83].mxu0 }
 0x42b   :  { %v2108_v0 = vmul.f32 0.25, %v1916_v41  ;;  %v1918_v21 = vadd.f32 %v1834_v4, %v1469_v3 }
 0x42c   :  { %2171 = vst [vmem:[#allocation7 + $0x180] sm:$0xff] %v2107_v48  ;;  %v2109_v7 = vmul.f32 0.25, %v1917_v34 }
 0x42d   :  { %2172 = vst [vmem:[#allocation7 + $0x188] sm:$0xff] %v2108_v0  ;;  %v2110_v50 = vmul.f32 0.25, %v1918_v21 }
 0x42e   :  { %2173 = vst [vmem:[#allocation7 + $0x190] sm:$0xff] %v2109_v7 }
 0x42f   :  { %2174 = vst [vmem:[#allocation7 + $0x198] sm:$0xff] %v2110_v50  ;;  %v1838_v16 = vpop.f32.mrb[84].mxu0 }
 0x430   :  { %v1919_v28 = vadd.f32 %v1838_v16, %v1470_v20  ;;  %v1840_v49 = vpop.f32.mrb[85].mxu0 }
 0x431   :  { %v1920_v5 = vadd.f32 %v1840_v49, %v1471_v55  ;;  %v1842_v62 = vpop.f32.mrb[86].mxu0 }
 0x432   :  { %v2111_v14 = vmul.f32 0.25, %v1919_v28  ;;  %v1921_v29 = vadd.f32 %v1842_v62, %v1472_v31  ;;  %v1844_v18 = vpop.f32.mrb[87].mxu0 }
 0x433   :  { %v2112_v46 = vmul.f32 0.25, %v1920_v5  ;;  %v1922_v9 = vadd.f32 %v1844_v18, %v1473_v37 }
 0x434   :  { %2175 = vst [vmem:[#allocation7 + $0x1a0] sm:$0xff] %v2111_v14  ;;  %v2113_v53 = vmul.f32 0.25, %v1921_v29 }
 0x435   :  { %2176 = vst [vmem:[#allocation7 + $0x1a8] sm:$0xff] %v2112_v46  ;;  %v2114_v22 = vmul.f32 0.25, %v1922_v9 }
 0x436   :  { %2177 = vst [vmem:[#allocation7 + $0x1b0] sm:$0xff] %v2113_v53 }
 0x437   :  { %2178 = vst [vmem:[#allocation7 + $0x1b8] sm:$0xff] %v2114_v22  ;;  %v1848_v38 = vpop.f32.mrb[88].mxu0 }
 0x438   :  { %v1923_v33 = vadd.f32 %v1848_v38, %v1474_v2  ;;  %v1850_v60 = vpop.f32.mrb[89].mxu0 }
 0x439   :  { %v1924_v27 = vadd.f32 %v1850_v60, %v1475_v35  ;;  %v1852_v6 = vpop.f32.mrb[90].mxu0 }
 0x43a   :  { %v2115_v39 = vmul.f32 0.25, %v1923_v33  ;;  %v1925_v1 = vadd.f32 %v1852_v6, %v1476_v59  ;;  %v1854_v36 = vpop.f32.mrb[91].mxu0 }
 0x43b   :  { %v2116_v26 = vmul.f32 0.25, %v1924_v27  ;;  %v1926_v45 = vadd.f32 %v1854_v36, %v1477_v42 }
 0x43c   :  { %2179 = vst [vmem:[#allocation7 + $0x1c0] sm:$0xff] %v2115_v39  ;;  %v2117_v61 = vmul.f32 0.25, %v1925_v1 }
 0x43d   :  { %2180 = vst [vmem:[#allocation7 + $0x1c8] sm:$0xff] %v2116_v26  ;;  %v2118_v54 = vmul.f32 0.25, %v1926_v45 }
 0x43e   :  { %2181 = vst [vmem:[#allocation7 + $0x1d0] sm:$0xff] %v2117_v61 }
 0x43f   :  { %2182 = vst [vmem:[#allocation7 + $0x1d8] sm:$0xff] %v2118_v54  ;;  %v1858_v15 = vpop.f32.mrb[92].mxu0 }
 0x440   :  { %v1927_v8 = vadd.f32 %v1858_v15, %v1478_v51  ;;  %v1860_v19 = vpop.f32.mrb[93].mxu0 }
 0x441   :  { %v1928_v63 = vadd.f32 %v1860_v19, %v1479_v12  ;;  %v1862_v13 = vpop.f32.mrb[94].mxu0 }
 0x442   :  { %v2119_v17 = vmul.f32 0.25, %v1927_v8  ;;  %v1929_v47 = vadd.f32 %v1862_v13, %v1480_v10  ;;  %v1864_v23 = vpop.f32.mrb[95].mxu0 }
 0x443   :  { %v2120_v58 = vmul.f32 0.25, %v1928_v63  ;;  %v1930_v52 = vadd.f32 %v1864_v23, %v1481_v11 }
 0x444   :  { %2183 = vst [vmem:[#allocation7 + $0x1e0] sm:$0xff] %v2119_v17  ;;  %v2121_v40 = vmul.f32 0.25, %v1929_v47 }
 0x445   :  { %2184 = vst [vmem:[#allocation7 + $0x1e8] sm:$0xff] %v2120_v58  ;;  %v2122_v32 = vmul.f32 0.25, %v1930_v52 }
 0x446   :  { %2185 = vst [vmem:[#allocation7 + $0x1f0] sm:$0xff] %v2121_v40 }
 0x447   :  { %2186 = vst [vmem:[#allocation7 + $0x1f8] sm:$0xff] %v2122_v32 }
 0x448   :  { %2491 = shalt.err (!%p2488_p6)
}
 0x449   :  { %s2492_s12 = scalar_lea.hbm %s3388_s2, 8192 }
 0x44a   :  { %p2493_p7 = scmp.ne.s32.totalorder %s3388_s2, %s2492_s12  ;;  %p2496_p8 = scmp.lt.u32.totalorder %s2492_s12, %s3388_s2 }
 0x44c   :  { %p2498_p9 = pnand %p2496_p8, %p2493_p7 }
 0x44e   :  { %2501 = shalt.err (!%p2498_p9)
}
 0x44f   :  { %2198 = dma.vmem_to_hbm [thread:$0]  %s2193_s8, 8192, %s3388_s2, [#allocation4], %s2512_s0, %s2512_s0, %s2513_s5  }
 0x450   :  { %2506 = dma.done.wait [#allocation4], 8192  }
 0x451   :  { %2507 = vsyncadd [#allocation4], 4294959104 }
 0x452   :  { %2202 = vsyncpa [#allocation3], 1 }
 0x453   :  { %2203 = vsyncpa [#allocation6], 1 }
 0x454   :  { %2204 = vsyncpa [#allocation4], 1 }

</bundles_post_ra>
